<compile_context>
chip_gen: v7x
topology: tpu7x:2x2x1
jax: 0.10.0
libtpu: 0.0.40
codegen_flags: <defaults>
</compile_context>

<pallas_src>
import functools

import jax
import jax.numpy as jnp
from jax import lax
from jax.experimental import pallas as pl
from jax.experimental.pallas import tpu as pltpu

OUT_FILTERS = 256
NUM_CLASSES = 100
FC_PAD = 128            # lane-padded classifier width
KSIZE = 5
PAD = KSIZE // 2
BN_EPS = 1e-5


def _round_up(x, m):
    return (x + m - 1) // m * m


def tempcnn1_kernel(
    x_ref,            # (B*H*W, Cin)  bf16, rows in (b, h, w) order
    w_stem_ref,       # (Cin, C)      bf16, stem 1x1 weight * stem-BN scale
    stem_bias_ref,    # (1, C)        f32,  stem-BN shift
    w_dw_ref,         # (25, C)       f32,  depthwise taps * gate1
    w_pw_ref,         # (C, C)        bf16, pointwise 1x1 weight * gate2
    five_gamma_ref,   # (1, C)        f32
    five_beta_ref,    # (1, C)        f32
    w_fc_ref,         # (C, FC_PAD)   bf16
    b_fc_ref,         # (1, FC_PAD)   f32
    out_ref,          # (B, FC_PAD)   f32
    pad_ref,          # scratch (H+2*PAD, B*NC, C) f32, zero-padded activations
    dwb_ref,          # scratch (25, W, C)         f32, taps broadcast along W
    dw_ref,           # scratch (B*H*W, C)         bf16, depthwise-conv output
    *, B, H, W, NC, RB,
):
    C = OUT_FILTERS
    N = B * H * W
    n_blk = H // RB

    # ---- stem_conv: 1x1 conv as bf16 MXU matmul (BN scale pre-folded into
    #      weights), BN shift + five[0] ReLU.  (K=Cin under-fills the MXU but
    #      this matmul is tiny and not the bottleneck.)
    stem = jnp.dot(x_ref[...], w_stem_ref[...],
                   preferred_element_type=jnp.float32)             # (N, C) f32
    act = jnp.maximum(stem + stem_bias_ref[...], 0.0)

    # ---- one-time broadcast of the (25, C) taps to (25, W, C) VMEM scratch
    #      so the hot loop never re-broadcasts.
    for t in range(KSIZE * KSIZE):
        dwb_ref[t] = jnp.broadcast_to(w_dw_ref[pl.ds(t, 1), :], (W, C))

    # ---- fill the zero-padded depthwise-conv buffer.
    #      Rows = padded image rows.  Columns pack the batch: columns
    #      [b*NC, b*NC+W) hold image b; the remaining NC-W (>= 2*PAD) columns
    #      per image stay zero and double as left/right halo for the rolled
    #      windows below.  Every store is (8,128)-tile aligned.
    act4 = act.reshape(B, H, W, C)
    zero_rows = jnp.zeros((PAD, B * NC, C), jnp.float32)
    pad_ref[0:PAD] = zero_rows
    pad_ref[PAD + H:PAD + H + PAD] = zero_rows
    for b in range(B):
        c0 = b * NC
        pad_ref[PAD:PAD + H, c0:c0 + W, :] = act4[b]
        pad_ref[PAD:PAD + H, c0 + W:c0 + NC, :] = jnp.zeros(
            (H, NC - W, C), jnp.float32)

    # ---- five[1]+five[2]: depthwise 5x5 conv (gate1 folded into the taps).
    #      RB output rows per block: each of the RB+4 padded rows of the block
    #      is loaded once and its non-trivial dx-rolls (XLU sublane rotations)
    #      computed once; B*RB (W,C) accumulators stay register resident.
    #      Wrapped roll entries always land on zeroed halo columns.
    def block_body(hb, carry):
        accs = [[jnp.zeros((W, C), jnp.float32) for _ in range(RB)]
                for _ in range(B)]
        for p in range(RB + 2 * PAD):
            row = pad_ref[hb * RB + p]                              # (B*NC, C)
            for dx in range(KSIZE):
                s = (PAD - dx) % (B * NC)
                shifted = pltpu.roll(row, s, axis=0) if s else row
                for r in range(max(0, p - 2 * PAD), min(RB, p + 1)):
                    tap = dwb_ref[(p - r) * KSIZE + dx]             # (W, C)
                    for b in range(B):
                        win = shifted[b * NC:b * NC + W, :]         # (W, C)
                        accs[b][r] = accs[b][r] + win * tap
        for b in range(B):
            blk = jnp.concatenate([accs[b][r] for r in range(RB)], axis=0)
            row0 = pl.multiple_of(b * H * W + hb * (RB * W), RB * W)
            dw_ref[pl.ds(row0, RB * W), :] = blk.astype(jnp.bfloat16)
        return carry

    lax.fori_loop(0, n_blk, block_body, 0)

    # ---- five[3]+five[4]: pointwise 1x1 conv (gate2 folded into w_pw),
    #      bf16 MXU matmul with f32 accumulation, reading dw_ref directly.
    pw = jnp.dot(dw_ref[...], w_pw_ref[...],
                 preferred_element_type=jnp.float32)                # (N, C) f32

    # ---- five[5]: BatchNorm2d(track_running_stats=False) -> batch stats.
    #      Two-pass (mean, then centered variance) to avoid cancellation;
    #      biased variance like PyTorch.
    mean = jnp.mean(pw, axis=0, keepdims=True)
    ctr = pw - mean
    var = jnp.mean(ctr * ctr, axis=0, keepdims=True)
    scale = five_gamma_ref[...] * lax.rsqrt(var + BN_EPS)

    # ---- ReLU -> AdaptiveAvgPool2d(1); Dropout2d(0.1) is identity in eval.
    z = jnp.maximum(ctr * scale + five_beta_ref[...], 0.0)
    inv_hw = 1.0 / float(H * W)
    pooled = jnp.concatenate(
        [jnp.sum(z[b * H * W:(b + 1) * H * W, :], axis=0, keepdims=True) * inv_hw
         for b in range(B)], axis=0)                                # (B, C)

    # ---- final_fc: Linear(256 -> 100), lane-padded to 128.
    out_ref[...] = (jnp.dot(pooled.astype(jnp.bfloat16), w_fc_ref[...],
                            preferred_element_type=jnp.float32)
                    + b_fc_ref[...])


def tempcnn1_forward(x_nchw, params):
    B, Cin, H, W = x_nchw.shape
    C = OUT_FILTERS
    NC = _round_up(W + 2 * PAD, 8)   # packed columns per image in the pad buffer
    assert NC - W >= 2 * PAD, "halo columns must cover the 5x5 padding"
    RB = 1
    for rb in (4, 2, 1):
        if H % rb == 0:
            RB = rb
            break

    # ---- host-side (exact) weight folding ---------------------------------
    # Stem BN (running stats) folded into the 1x1 conv weights + a bias.
    s_scale = params["stem_gamma"] * lax.rsqrt(params["stem_var"] + BN_EPS)
    w_stem = (params["w_stem"] * s_scale[None, :]).astype(jnp.bfloat16)
    stem_bias = (params["stem_beta"] - params["stem_mean"] * s_scale).reshape(1, C)
    # gate1 folded into the depthwise taps (per-channel, exact).
    w_dw = (params["w_dw"] * params["gate1"][None, :]).astype(jnp.float32)     # (25, C)
    # gate2 folded into the pointwise 1x1 weight columns (exact).
    w_pw = (params["w_pw"] * params["gate2"][None, :]).astype(jnp.bfloat16)

    five_gamma = params["five_gamma"].reshape(1, C)
    five_beta = params["five_beta"].reshape(1, C)
    # Lane-pad classifier 100 -> 128 (sliced back after the kernel).
    w_fc = jnp.zeros((C, FC_PAD), jnp.float32).at[:, :NUM_CLASSES].set(
        params["w_fc"]).astype(jnp.bfloat16)
    b_fc = jnp.zeros((1, FC_PAD), jnp.float32).at[0, :NUM_CLASSES].set(
        params["b_fc"])

    # NCHW -> channels-last rows in (b, h, w) order, bf16 for the MXU.
    x_rows = jnp.transpose(x_nchw, (0, 2, 3, 1)).reshape(B * H * W, Cin)
    x_rows = x_rows.astype(jnp.bfloat16)

    args = (x_rows, w_stem, stem_bias, w_dw, w_pw,
            five_gamma, five_beta, w_fc, b_fc)

    def full_spec(a):
        nd = a.ndim
        return pl.BlockSpec(a.shape, lambda *_, nd=nd: (0,) * nd)

    kernel = functools.partial(tempcnn1_kernel, B=B, H=H, W=W, NC=NC, RB=RB)
    out_padded = pl.pallas_call(
        kernel,
        out_shape=jax.ShapeDtypeStruct((B, FC_PAD), jnp.float32),
        grid=(1,),
        in_specs=[full_spec(a) for a in args],
        out_specs=pl.BlockSpec((B, FC_PAD), lambda *_: (0, 0)),
        scratch_shapes=[
            pltpu.VMEM((H + 2 * PAD, B * NC, OUT_FILTERS), jnp.float32),
            pltpu.VMEM((KSIZE * KSIZE, W, OUT_FILTERS), jnp.float32),
            pltpu.VMEM((B * H * W, OUT_FILTERS), jnp.bfloat16),
        ],
        compiler_params=pltpu.CompilerParams(
            dimension_semantics=("arbitrary",),
            vmem_limit_bytes=32 * 1024 * 1024,
        ),
    )(*args)
    return out_padded[:, :NUM_CLASSES]


def init_params(key, hidden_size):
    C = OUT_FILTERS
    ks = jax.random.split(key, 6)
    return {
        # stem_conv[0]: Conv2d(hidden,256,1,bias=False); PyTorch weight
        # (C, Cin, 1, 1) stored transposed as (Cin, C).
        "w_stem": jax.random.normal(ks[0], (hidden_size, C), jnp.float32) * 0.05,
        # stem_conv[1]: BatchNorm2d(256) affine + running stats (init values;
        # for a trained model pass its real running_mean / running_var here).
        "stem_gamma": jnp.ones((C,), jnp.float32),
        "stem_beta": jnp.zeros((C,), jnp.float32),
        "stem_mean": jnp.zeros((C,), jnp.float32),
        "stem_var": jnp.ones((C,), jnp.float32),
        # five[1]: depthwise Conv2d(256,256,5,groups=256,bias=False);
        # PyTorch weight (C,1,5,5) stored as (25, C) with t = dy*5+dx.
        "w_dw": jax.random.normal(ks[1], (KSIZE * KSIZE, C), jnp.float32) * 0.1,
        # five[3]: pointwise Conv2d(256,256,1,bias=False); PyTorch weight
        # (C_out, C_in, 1, 1) stored transposed as (C_in, C_out).
        "w_pw": jax.random.normal(ks[2], (C, C), jnp.float32) * 0.05,
        # five[2]/five[4]: GateLayer per-channel scales (ones at init).
        "gate1": jnp.ones((C,), jnp.float32),
        "gate2": jnp.ones((C,), jnp.float32),
        # five[5]: BatchNorm2d(256, track_running_stats=False) affine.
        "five_gamma": jnp.ones((C,), jnp.float32),
        "five_beta": jnp.zeros((C,), jnp.float32),
        # final_fc: Linear(256,100); weight stored transposed as (C, 100).
        "w_fc": jax.random.normal(ks[3], (C, NUM_CLASSES), jnp.float32) * 0.05,
        "b_fc": jax.random.normal(ks[4], (NUM_CLASSES,), jnp.float32) * 0.01,
    }


if __name__ == "__main__":
    key = jax.random.PRNGKey(0)
    kx, kp = jax.random.split(key)

    B, hidden_size, H, W = 2, 32, 8, 8
    x = jax.random.normal(kx, (B, hidden_size, H, W), jnp.float32)   # NCHW
    params = init_params(kp, hidden_size)

    out = tempcnn1_forward(x, params)
    out = jax.block_until_ready(out)
    assert out.shape == (B, NUM_CLASSES) and out.dtype == jnp.float32
    assert bool(jnp.all(jnp.isfinite(out)))
    print("KERNEL_OK")
</pallas_src>

<mosaic_0001>
module attributes {stable_mosaic.version = 11 : i64} {
  func.func @tempcnn1_kernel(%arg0: i32, %arg1: memref<128x32xbf16, #tpu.memory_space<vmem>>, %arg2: memref<32x256xbf16, #tpu.memory_space<vmem>>, %arg3: memref<1x256xf32, #tpu.memory_space<vmem>>, %arg4: memref<25x256xf32, #tpu.memory_space<vmem>>, %arg5: memref<256x256xbf16, #tpu.memory_space<vmem>>, %arg6: memref<1x256xf32, #tpu.memory_space<vmem>>, %arg7: memref<1x256xf32, #tpu.memory_space<vmem>>, %arg8: memref<256x128xbf16, #tpu.memory_space<vmem>>, %arg9: memref<1x128xf32, #tpu.memory_space<vmem>>, %arg10: memref<2x128xf32, #tpu.memory_space<vmem>>, %arg11: memref<12x32x256xf32, #tpu.memory_space<vmem>>, %arg12: memref<25x8x256xf32, #tpu.memory_space<vmem>>, %arg13: memref<128x256xbf16, #tpu.memory_space<vmem>>) attributes {dimension_semantics = [#tpu.dimension_semantics<arbitrary>], iteration_bounds = array<i64: 1>, scalar_prefetch = 0 : i64, scratch_operands = 3 : i64, tpu.core_type = #tpu.core_type<tc>, window_params = [{pipeline_mode = #tpu.pipeline_mode<synchronous>, transform_indices = @transform_0, window_bounds = array<i64: 128, 32>}, {pipeline_mode = #tpu.pipeline_mode<synchronous>, transform_indices = @transform_1, window_bounds = array<i64: 32, 256>}, {pipeline_mode = #tpu.pipeline_mode<synchronous>, transform_indices = @transform_2, window_bounds = array<i64: 1, 256>}, {pipeline_mode = #tpu.pipeline_mode<synchronous>, transform_indices = @transform_3, window_bounds = array<i64: 25, 256>}, {pipeline_mode = #tpu.pipeline_mode<synchronous>, transform_indices = @transform_4, window_bounds = array<i64: 256, 256>}, {pipeline_mode = #tpu.pipeline_mode<synchronous>, transform_indices = @transform_5, window_bounds = array<i64: 1, 256>}, {pipeline_mode = #tpu.pipeline_mode<synchronous>, transform_indices = @transform_6, window_bounds = array<i64: 1, 256>}, {pipeline_mode = #tpu.pipeline_mode<synchronous>, transform_indices = @transform_7, window_bounds = array<i64: 256, 128>}, {pipeline_mode = #tpu.pipeline_mode<synchronous>, transform_indices = @transform_8, window_bounds = array<i64: 1, 128>}, {pipeline_mode = #tpu.pipeline_mode<synchronous>, transform_indices = @transform_9, window_bounds = array<i64: 2, 128>}]} {
    %c0 = arith.constant 0 : index
    %c0_0 = arith.constant 0 : index
    %0 = vector.load %arg1[%c0, %c0_0] : memref<128x32xbf16, #tpu.memory_space<vmem>>, vector<128x32xbf16>
    %c0_1 = arith.constant 0 : index
    %c0_2 = arith.constant 0 : index
    %1 = vector.load %arg2[%c0_1, %c0_2] : memref<32x256xbf16, #tpu.memory_space<vmem>>, vector<32x256xbf16>
    %cst = arith.constant dense<0.000000e+00> : vector<128x256xf32>
    %2 = tpu.matmul %0, %1, %cst {dimension_numbers = #tpu.dot_dimension_numbers<[1], [0], [0], [1], [0, 0, 1, 1], [], []>} : vector<128x32xbf16>, vector<32x256xbf16>, vector<128x256xf32> -> vector<128x256xf32>
    %c0_3 = arith.constant 0 : index
    %c0_4 = arith.constant 0 : index
    %3 = vector.load %arg3[%c0_3, %c0_4] : memref<1x256xf32, #tpu.memory_space<vmem>>, vector<1x256xf32>
    %4 = vector.broadcast %3 : vector<1x256xf32> to vector<128x256xf32>
    %5 = arith.addf %2, %4 : vector<128x256xf32>
    %cst_5 = arith.constant 0.000000e+00 : f32
    %6 = vector.broadcast %cst_5 : f32 to vector<128x256xf32>
    %7 = arith.maximumf %5, %6 : vector<128x256xf32>
    %c0_6 = arith.constant 0 : index
    %c0_7 = arith.constant 0 : index
    %8 = vector.load %arg4[%c0_6, %c0_7] : memref<25x256xf32, #tpu.memory_space<vmem>>, vector<1x256xf32>
    %9 = vector.shape_cast %8 : vector<1x256xf32> to vector<1x256xf32>
    %10 = vector.broadcast %9 : vector<1x256xf32> to vector<8x256xf32>
    %c0_8 = arith.constant 0 : index
    %c0_9 = arith.constant 0 : index
    %c0_10 = arith.constant 0 : index
    %11 = vector.load %arg12[%c0_8, %c0_9, %c0_10] : memref<25x8x256xf32, #tpu.memory_space<vmem>>, vector<1x8x256xf32>
    %12 = vector.shape_cast %11 : vector<1x8x256xf32> to vector<8x256xf32>
    %13 = vector.shape_cast %10 : vector<8x256xf32> to vector<1x8x256xf32>
    tpu.vector_store %arg12[%c0_8, %c0_9, %c0_10], %13 {strides = array<i32>} : memref<25x8x256xf32, #tpu.memory_space<vmem>>, vector<1x8x256xf32>,
    %c1 = arith.constant 1 : index
    %c0_11 = arith.constant 0 : index
    %14 = vector.load %arg4[%c1, %c0_11] : memref<25x256xf32, #tpu.memory_space<vmem>>, vector<1x256xf32>
    %15 = vector.shape_cast %14 : vector<1x256xf32> to vector<1x256xf32>
    %16 = vector.broadcast %15 : vector<1x256xf32> to vector<8x256xf32>
    %c1_12 = arith.constant 1 : index
    %c0_13 = arith.constant 0 : index
    %c0_14 = arith.constant 0 : index
    %17 = vector.load %arg12[%c1_12, %c0_13, %c0_14] : memref<25x8x256xf32, #tpu.memory_space<vmem>>, vector<1x8x256xf32>
    %18 = vector.shape_cast %17 : vector<1x8x256xf32> to vector<8x256xf32>
    %19 = vector.shape_cast %16 : vector<8x256xf32> to vector<1x8x256xf32>
    tpu.vector_store %arg12[%c1_12, %c0_13, %c0_14], %19 {strides = array<i32>} : memref<25x8x256xf32, #tpu.memory_space<vmem>>, vector<1x8x256xf32>,
    %c2 = arith.constant 2 : index
    %c0_15 = arith.constant 0 : index
    %20 = vector.load %arg4[%c2, %c0_15] : memref<25x256xf32, #tpu.memory_space<vmem>>, vector<1x256xf32>
    %21 = vector.shape_cast %20 : vector<1x256xf32> to vector<1x256xf32>
    %22 = vector.broadcast %21 : vector<1x256xf32> to vector<8x256xf32>
    %c2_16 = arith.constant 2 : index
    %c0_17 = arith.constant 0 : index
    %c0_18 = arith.constant 0 : index
    %23 = vector.load %arg12[%c2_16, %c0_17, %c0_18] : memref<25x8x256xf32, #tpu.memory_space<vmem>>, vector<1x8x256xf32>
    %24 = vector.shape_cast %23 : vector<1x8x256xf32> to vector<8x256xf32>
    %25 = vector.shape_cast %22 : vector<8x256xf32> to vector<1x8x256xf32>
    tpu.vector_store %arg12[%c2_16, %c0_17, %c0_18], %25 {strides = array<i32>} : memref<25x8x256xf32, #tpu.memory_space<vmem>>, vector<1x8x256xf32>,
    %c3 = arith.constant 3 : index
    %c0_19 = arith.constant 0 : index
    %26 = vector.load %arg4[%c3, %c0_19] : memref<25x256xf32, #tpu.memory_space<vmem>>, vector<1x256xf32>
    %27 = vector.shape_cast %26 : vector<1x256xf32> to vector<1x256xf32>
    %28 = vector.broadcast %27 : vector<1x256xf32> to vector<8x256xf32>
    %c3_20 = arith.constant 3 : index
    %c0_21 = arith.constant 0 : index
    %c0_22 = arith.constant 0 : index
    %29 = vector.load %arg12[%c3_20, %c0_21, %c0_22] : memref<25x8x256xf32, #tpu.memory_space<vmem>>, vector<1x8x256xf32>
    %30 = vector.shape_cast %29 : vector<1x8x256xf32> to vector<8x256xf32>
    %31 = vector.shape_cast %28 : vector<8x256xf32> to vector<1x8x256xf32>
    tpu.vector_store %arg12[%c3_20, %c0_21, %c0_22], %31 {strides = array<i32>} : memref<25x8x256xf32, #tpu.memory_space<vmem>>, vector<1x8x256xf32>,
    %c4 = arith.constant 4 : index
    %c0_23 = arith.constant 0 : index
    %32 = vector.load %arg4[%c4, %c0_23] : memref<25x256xf32, #tpu.memory_space<vmem>>, vector<1x256xf32>
    %33 = vector.shape_cast %32 : vector<1x256xf32> to vector<1x256xf32>
    %34 = vector.broadcast %33 : vector<1x256xf32> to vector<8x256xf32>
    %c4_24 = arith.constant 4 : index
    %c0_25 = arith.constant 0 : index
    %c0_26 = arith.constant 0 : index
    %35 = vector.load %arg12[%c4_24, %c0_25, %c0_26] : memref<25x8x256xf32, #tpu.memory_space<vmem>>, vector<1x8x256xf32>
    %36 = vector.shape_cast %35 : vector<1x8x256xf32> to vector<8x256xf32>
    %37 = vector.shape_cast %34 : vector<8x256xf32> to vector<1x8x256xf32>
    tpu.vector_store %arg12[%c4_24, %c0_25, %c0_26], %37 {strides = array<i32>} : memref<25x8x256xf32, #tpu.memory_space<vmem>>, vector<1x8x256xf32>,
    %c5 = arith.constant 5 : index
    %c0_27 = arith.constant 0 : index
    %38 = vector.load %arg4[%c5, %c0_27] : memref<25x256xf32, #tpu.memory_space<vmem>>, vector<1x256xf32>
    %39 = vector.shape_cast %38 : vector<1x256xf32> to vector<1x256xf32>
    %40 = vector.broadcast %39 : vector<1x256xf32> to vector<8x256xf32>
    %c5_28 = arith.constant 5 : index
    %c0_29 = arith.constant 0 : index
    %c0_30 = arith.constant 0 : index
    %41 = vector.load %arg12[%c5_28, %c0_29, %c0_30] : memref<25x8x256xf32, #tpu.memory_space<vmem>>, vector<1x8x256xf32>
    %42 = vector.shape_cast %41 : vector<1x8x256xf32> to vector<8x256xf32>
    %43 = vector.shape_cast %40 : vector<8x256xf32> to vector<1x8x256xf32>
    tpu.vector_store %arg12[%c5_28, %c0_29, %c0_30], %43 {strides = array<i32>} : memref<25x8x256xf32, #tpu.memory_space<vmem>>, vector<1x8x256xf32>,
    %c6 = arith.constant 6 : index
    %c0_31 = arith.constant 0 : index
    %44 = vector.load %arg4[%c6, %c0_31] : memref<25x256xf32, #tpu.memory_space<vmem>>, vector<1x256xf32>
    %45 = vector.shape_cast %44 : vector<1x256xf32> to vector<1x256xf32>
    %46 = vector.broadcast %45 : vector<1x256xf32> to vector<8x256xf32>
    %c6_32 = arith.constant 6 : index
    %c0_33 = arith.constant 0 : index
    %c0_34 = arith.constant 0 : index
    %47 = vector.load %arg12[%c6_32, %c0_33, %c0_34] : memref<25x8x256xf32, #tpu.memory_space<vmem>>, vector<1x8x256xf32>
    %48 = vector.shape_cast %47 : vector<1x8x256xf32> to vector<8x256xf32>
    %49 = vector.shape_cast %46 : vector<8x256xf32> to vector<1x8x256xf32>
    tpu.vector_store %arg12[%c6_32, %c0_33, %c0_34], %49 {strides = array<i32>} : memref<25x8x256xf32, #tpu.memory_space<vmem>>, vector<1x8x256xf32>,
    %c7 = arith.constant 7 : index
    %c0_35 = arith.constant 0 : index
    %50 = vector.load %arg4[%c7, %c0_35] : memref<25x256xf32, #tpu.memory_space<vmem>>, vector<1x256xf32>
    %51 = vector.shape_cast %50 : vector<1x256xf32> to vector<1x256xf32>
    %52 = vector.broadcast %51 : vector<1x256xf32> to vector<8x256xf32>
    %c7_36 = arith.constant 7 : index
    %c0_37 = arith.constant 0 : index
    %c0_38 = arith.constant 0 : index
    %53 = vector.load %arg12[%c7_36, %c0_37, %c0_38] : memref<25x8x256xf32, #tpu.memory_space<vmem>>, vector<1x8x256xf32>
    %54 = vector.shape_cast %53 : vector<1x8x256xf32> to vector<8x256xf32>
    %55 = vector.shape_cast %52 : vector<8x256xf32> to vector<1x8x256xf32>
    tpu.vector_store %arg12[%c7_36, %c0_37, %c0_38], %55 {strides = array<i32>} : memref<25x8x256xf32, #tpu.memory_space<vmem>>, vector<1x8x256xf32>,
    %c8 = arith.constant 8 : index
    %c0_39 = arith.constant 0 : index
    %56 = vector.load %arg4[%c8, %c0_39] : memref<25x256xf32, #tpu.memory_space<vmem>>, vector<1x256xf32>
    %57 = vector.shape_cast %56 : vector<1x256xf32> to vector<1x256xf32>
    %58 = vector.broadcast %57 : vector<1x256xf32> to vector<8x256xf32>
    %c8_40 = arith.constant 8 : index
    %c0_41 = arith.constant 0 : index
    %c0_42 = arith.constant 0 : index
    %59 = vector.load %arg12[%c8_40, %c0_41, %c0_42] : memref<25x8x256xf32, #tpu.memory_space<vmem>>, vector<1x8x256xf32>
    %60 = vector.shape_cast %59 : vector<1x8x256xf32> to vector<8x256xf32>
    %61 = vector.shape_cast %58 : vector<8x256xf32> to vector<1x8x256xf32>
    tpu.vector_store %arg12[%c8_40, %c0_41, %c0_42], %61 {strides = array<i32>} : memref<25x8x256xf32, #tpu.memory_space<vmem>>, vector<1x8x256xf32>,
    %c9 = arith.constant 9 : index
    %c0_43 = arith.constant 0 : index
    %62 = vector.load %arg4[%c9, %c0_43] : memref<25x256xf32, #tpu.memory_space<vmem>>, vector<1x256xf32>
    %63 = vector.shape_cast %62 : vector<1x256xf32> to vector<1x256xf32>
    %64 = vector.broadcast %63 : vector<1x256xf32> to vector<8x256xf32>
    %c9_44 = arith.constant 9 : index
    %c0_45 = arith.constant 0 : index
    %c0_46 = arith.constant 0 : index
    %65 = vector.load %arg12[%c9_44, %c0_45, %c0_46] : memref<25x8x256xf32, #tpu.memory_space<vmem>>, vector<1x8x256xf32>
    %66 = vector.shape_cast %65 : vector<1x8x256xf32> to vector<8x256xf32>
    %67 = vector.shape_cast %64 : vector<8x256xf32> to vector<1x8x256xf32>
    tpu.vector_store %arg12[%c9_44, %c0_45, %c0_46], %67 {strides = array<i32>} : memref<25x8x256xf32, #tpu.memory_space<vmem>>, vector<1x8x256xf32>,
    %c10 = arith.constant 10 : index
    %c0_47 = arith.constant 0 : index
    %68 = vector.load %arg4[%c10, %c0_47] : memref<25x256xf32, #tpu.memory_space<vmem>>, vector<1x256xf32>
    %69 = vector.shape_cast %68 : vector<1x256xf32> to vector<1x256xf32>
    %70 = vector.broadcast %69 : vector<1x256xf32> to vector<8x256xf32>
    %c10_48 = arith.constant 10 : index
    %c0_49 = arith.constant 0 : index
    %c0_50 = arith.constant 0 : index
    %71 = vector.load %arg12[%c10_48, %c0_49, %c0_50] : memref<25x8x256xf32, #tpu.memory_space<vmem>>, vector<1x8x256xf32>
    %72 = vector.shape_cast %71 : vector<1x8x256xf32> to vector<8x256xf32>
    %73 = vector.shape_cast %70 : vector<8x256xf32> to vector<1x8x256xf32>
    tpu.vector_store %arg12[%c10_48, %c0_49, %c0_50], %73 {strides = array<i32>} : memref<25x8x256xf32, #tpu.memory_space<vmem>>, vector<1x8x256xf32>,
    %c11 = arith.constant 11 : index
    %c0_51 = arith.constant 0 : index
    %74 = vector.load %arg4[%c11, %c0_51] : memref<25x256xf32, #tpu.memory_space<vmem>>, vector<1x256xf32>
    %75 = vector.shape_cast %74 : vector<1x256xf32> to vector<1x256xf32>
    %76 = vector.broadcast %75 : vector<1x256xf32> to vector<8x256xf32>
    %c11_52 = arith.constant 11 : index
    %c0_53 = arith.constant 0 : index
    %c0_54 = arith.constant 0 : index
    %77 = vector.load %arg12[%c11_52, %c0_53, %c0_54] : memref<25x8x256xf32, #tpu.memory_space<vmem>>, vector<1x8x256xf32>
    %78 = vector.shape_cast %77 : vector<1x8x256xf32> to vector<8x256xf32>
    %79 = vector.shape_cast %76 : vector<8x256xf32> to vector<1x8x256xf32>
    tpu.vector_store %arg12[%c11_52, %c0_53, %c0_54], %79 {strides = array<i32>} : memref<25x8x256xf32, #tpu.memory_space<vmem>>, vector<1x8x256xf32>,
    %c12 = arith.constant 12 : index
    %c0_55 = arith.constant 0 : index
    %80 = vector.load %arg4[%c12, %c0_55] : memref<25x256xf32, #tpu.memory_space<vmem>>, vector<1x256xf32>
    %81 = vector.shape_cast %80 : vector<1x256xf32> to vector<1x256xf32>
    %82 = vector.broadcast %81 : vector<1x256xf32> to vector<8x256xf32>
    %c12_56 = arith.constant 12 : index
    %c0_57 = arith.constant 0 : index
    %c0_58 = arith.constant 0 : index
    %83 = vector.load %arg12[%c12_56, %c0_57, %c0_58] : memref<25x8x256xf32, #tpu.memory_space<vmem>>, vector<1x8x256xf32>
    %84 = vector.shape_cast %83 : vector<1x8x256xf32> to vector<8x256xf32>
    %85 = vector.shape_cast %82 : vector<8x256xf32> to vector<1x8x256xf32>
    tpu.vector_store %arg12[%c12_56, %c0_57, %c0_58], %85 {strides = array<i32>} : memref<25x8x256xf32, #tpu.memory_space<vmem>>, vector<1x8x256xf32>,
    %c13 = arith.constant 13 : index
    %c0_59 = arith.constant 0 : index
    %86 = vector.load %arg4[%c13, %c0_59] : memref<25x256xf32, #tpu.memory_space<vmem>>, vector<1x256xf32>
    %87 = vector.shape_cast %86 : vector<1x256xf32> to vector<1x256xf32>
    %88 = vector.broadcast %87 : vector<1x256xf32> to vector<8x256xf32>
    %c13_60 = arith.constant 13 : index
    %c0_61 = arith.constant 0 : index
    %c0_62 = arith.constant 0 : index
    %89 = vector.load %arg12[%c13_60, %c0_61, %c0_62] : memref<25x8x256xf32, #tpu.memory_space<vmem>>, vector<1x8x256xf32>
    %90 = vector.shape_cast %89 : vector<1x8x256xf32> to vector<8x256xf32>
    %91 = vector.shape_cast %88 : vector<8x256xf32> to vector<1x8x256xf32>
    tpu.vector_store %arg12[%c13_60, %c0_61, %c0_62], %91 {strides = array<i32>} : memref<25x8x256xf32, #tpu.memory_space<vmem>>, vector<1x8x256xf32>,
    %c14 = arith.constant 14 : index
    %c0_63 = arith.constant 0 : index
    %92 = vector.load %arg4[%c14, %c0_63] : memref<25x256xf32, #tpu.memory_space<vmem>>, vector<1x256xf32>
    %93 = vector.shape_cast %92 : vector<1x256xf32> to vector<1x256xf32>
    %94 = vector.broadcast %93 : vector<1x256xf32> to vector<8x256xf32>
    %c14_64 = arith.constant 14 : index
    %c0_65 = arith.constant 0 : index
    %c0_66 = arith.constant 0 : index
    %95 = vector.load %arg12[%c14_64, %c0_65, %c0_66] : memref<25x8x256xf32, #tpu.memory_space<vmem>>, vector<1x8x256xf32>
    %96 = vector.shape_cast %95 : vector<1x8x256xf32> to vector<8x256xf32>
    %97 = vector.shape_cast %94 : vector<8x256xf32> to vector<1x8x256xf32>
    tpu.vector_store %arg12[%c14_64, %c0_65, %c0_66], %97 {strides = array<i32>} : memref<25x8x256xf32, #tpu.memory_space<vmem>>, vector<1x8x256xf32>,
    %c15 = arith.constant 15 : index
    %c0_67 = arith.constant 0 : index
    %98 = vector.load %arg4[%c15, %c0_67] : memref<25x256xf32, #tpu.memory_space<vmem>>, vector<1x256xf32>
    %99 = vector.shape_cast %98 : vector<1x256xf32> to vector<1x256xf32>
    %100 = vector.broadcast %99 : vector<1x256xf32> to vector<8x256xf32>
    %c15_68 = arith.constant 15 : index
    %c0_69 = arith.constant 0 : index
    %c0_70 = arith.constant 0 : index
    %101 = vector.load %arg12[%c15_68, %c0_69, %c0_70] : memref<25x8x256xf32, #tpu.memory_space<vmem>>, vector<1x8x256xf32>
    %102 = vector.shape_cast %101 : vector<1x8x256xf32> to vector<8x256xf32>
    %103 = vector.shape_cast %100 : vector<8x256xf32> to vector<1x8x256xf32>
    tpu.vector_store %arg12[%c15_68, %c0_69, %c0_70], %103 {strides = array<i32>} : memref<25x8x256xf32, #tpu.memory_space<vmem>>, vector<1x8x256xf32>,
    %c16 = arith.constant 16 : index
    %c0_71 = arith.constant 0 : index
    %104 = vector.load %arg4[%c16, %c0_71] : memref<25x256xf32, #tpu.memory_space<vmem>>, vector<1x256xf32>
    %105 = vector.shape_cast %104 : vector<1x256xf32> to vector<1x256xf32>
    %106 = vector.broadcast %105 : vector<1x256xf32> to vector<8x256xf32>
    %c16_72 = arith.constant 16 : index
    %c0_73 = arith.constant 0 : index
    %c0_74 = arith.constant 0 : index
    %107 = vector.load %arg12[%c16_72, %c0_73, %c0_74] : memref<25x8x256xf32, #tpu.memory_space<vmem>>, vector<1x8x256xf32>
    %108 = vector.shape_cast %107 : vector<1x8x256xf32> to vector<8x256xf32>
    %109 = vector.shape_cast %106 : vector<8x256xf32> to vector<1x8x256xf32>
    tpu.vector_store %arg12[%c16_72, %c0_73, %c0_74], %109 {strides = array<i32>} : memref<25x8x256xf32, #tpu.memory_space<vmem>>, vector<1x8x256xf32>,
    %c17 = arith.constant 17 : index
    %c0_75 = arith.constant 0 : index
    %110 = vector.load %arg4[%c17, %c0_75] : memref<25x256xf32, #tpu.memory_space<vmem>>, vector<1x256xf32>
    %111 = vector.shape_cast %110 : vector<1x256xf32> to vector<1x256xf32>
    %112 = vector.broadcast %111 : vector<1x256xf32> to vector<8x256xf32>
    %c17_76 = arith.constant 17 : index
    %c0_77 = arith.constant 0 : index
    %c0_78 = arith.constant 0 : index
    %113 = vector.load %arg12[%c17_76, %c0_77, %c0_78] : memref<25x8x256xf32, #tpu.memory_space<vmem>>, vector<1x8x256xf32>
    %114 = vector.shape_cast %113 : vector<1x8x256xf32> to vector<8x256xf32>
    %115 = vector.shape_cast %112 : vector<8x256xf32> to vector<1x8x256xf32>
    tpu.vector_store %arg12[%c17_76, %c0_77, %c0_78], %115 {strides = array<i32>} : memref<25x8x256xf32, #tpu.memory_space<vmem>>, vector<1x8x256xf32>,
    %c18 = arith.constant 18 : index
    %c0_79 = arith.constant 0 : index
    %116 = vector.load %arg4[%c18, %c0_79] : memref<25x256xf32, #tpu.memory_space<vmem>>, vector<1x256xf32>
    %117 = vector.shape_cast %116 : vector<1x256xf32> to vector<1x256xf32>
    %118 = vector.broadcast %117 : vector<1x256xf32> to vector<8x256xf32>
    %c18_80 = arith.constant 18 : index
    %c0_81 = arith.constant 0 : index
    %c0_82 = arith.constant 0 : index
    %119 = vector.load %arg12[%c18_80, %c0_81, %c0_82] : memref<25x8x256xf32, #tpu.memory_space<vmem>>, vector<1x8x256xf32>
    %120 = vector.shape_cast %119 : vector<1x8x256xf32> to vector<8x256xf32>
    %121 = vector.shape_cast %118 : vector<8x256xf32> to vector<1x8x256xf32>
    tpu.vector_store %arg12[%c18_80, %c0_81, %c0_82], %121 {strides = array<i32>} : memref<25x8x256xf32, #tpu.memory_space<vmem>>, vector<1x8x256xf32>,
    %c19 = arith.constant 19 : index
    %c0_83 = arith.constant 0 : index
    %122 = vector.load %arg4[%c19, %c0_83] : memref<25x256xf32, #tpu.memory_space<vmem>>, vector<1x256xf32>
    %123 = vector.shape_cast %122 : vector<1x256xf32> to vector<1x256xf32>
    %124 = vector.broadcast %123 : vector<1x256xf32> to vector<8x256xf32>
    %c19_84 = arith.constant 19 : index
    %c0_85 = arith.constant 0 : index
    %c0_86 = arith.constant 0 : index
    %125 = vector.load %arg12[%c19_84, %c0_85, %c0_86] : memref<25x8x256xf32, #tpu.memory_space<vmem>>, vector<1x8x256xf32>
    %126 = vector.shape_cast %125 : vector<1x8x256xf32> to vector<8x256xf32>
    %127 = vector.shape_cast %124 : vector<8x256xf32> to vector<1x8x256xf32>
    tpu.vector_store %arg12[%c19_84, %c0_85, %c0_86], %127 {strides = array<i32>} : memref<25x8x256xf32, #tpu.memory_space<vmem>>, vector<1x8x256xf32>,
    %c20 = arith.constant 20 : index
    %c0_87 = arith.constant 0 : index
    %128 = vector.load %arg4[%c20, %c0_87] : memref<25x256xf32, #tpu.memory_space<vmem>>, vector<1x256xf32>
    %129 = vector.shape_cast %128 : vector<1x256xf32> to vector<1x256xf32>
    %130 = vector.broadcast %129 : vector<1x256xf32> to vector<8x256xf32>
    %c20_88 = arith.constant 20 : index
    %c0_89 = arith.constant 0 : index
    %c0_90 = arith.constant 0 : index
    %131 = vector.load %arg12[%c20_88, %c0_89, %c0_90] : memref<25x8x256xf32, #tpu.memory_space<vmem>>, vector<1x8x256xf32>
    %132 = vector.shape_cast %131 : vector<1x8x256xf32> to vector<8x256xf32>
    %133 = vector.shape_cast %130 : vector<8x256xf32> to vector<1x8x256xf32>
    tpu.vector_store %arg12[%c20_88, %c0_89, %c0_90], %133 {strides = array<i32>} : memref<25x8x256xf32, #tpu.memory_space<vmem>>, vector<1x8x256xf32>,
    %c21 = arith.constant 21 : index
    %c0_91 = arith.constant 0 : index
    %134 = vector.load %arg4[%c21, %c0_91] : memref<25x256xf32, #tpu.memory_space<vmem>>, vector<1x256xf32>
    %135 = vector.shape_cast %134 : vector<1x256xf32> to vector<1x256xf32>
    %136 = vector.broadcast %135 : vector<1x256xf32> to vector<8x256xf32>
    %c21_92 = arith.constant 21 : index
    %c0_93 = arith.constant 0 : index
    %c0_94 = arith.constant 0 : index
    %137 = vector.load %arg12[%c21_92, %c0_93, %c0_94] : memref<25x8x256xf32, #tpu.memory_space<vmem>>, vector<1x8x256xf32>
    %138 = vector.shape_cast %137 : vector<1x8x256xf32> to vector<8x256xf32>
    %139 = vector.shape_cast %136 : vector<8x256xf32> to vector<1x8x256xf32>
    tpu.vector_store %arg12[%c21_92, %c0_93, %c0_94], %139 {strides = array<i32>} : memref<25x8x256xf32, #tpu.memory_space<vmem>>, vector<1x8x256xf32>,
    %c22 = arith.constant 22 : index
    %c0_95 = arith.constant 0 : index
    %140 = vector.load %arg4[%c22, %c0_95] : memref<25x256xf32, #tpu.memory_space<vmem>>, vector<1x256xf32>
    %141 = vector.shape_cast %140 : vector<1x256xf32> to vector<1x256xf32>
    %142 = vector.broadcast %141 : vector<1x256xf32> to vector<8x256xf32>
    %c22_96 = arith.constant 22 : index
    %c0_97 = arith.constant 0 : index
    %c0_98 = arith.constant 0 : index
    %143 = vector.load %arg12[%c22_96, %c0_97, %c0_98] : memref<25x8x256xf32, #tpu.memory_space<vmem>>, vector<1x8x256xf32>
    %144 = vector.shape_cast %143 : vector<1x8x256xf32> to vector<8x256xf32>
    %145 = vector.shape_cast %142 : vector<8x256xf32> to vector<1x8x256xf32>
    tpu.vector_store %arg12[%c22_96, %c0_97, %c0_98], %145 {strides = array<i32>} : memref<25x8x256xf32, #tpu.memory_space<vmem>>, vector<1x8x256xf32>,
    %c23 = arith.constant 23 : index
    %c0_99 = arith.constant 0 : index
    %146 = vector.load %arg4[%c23, %c0_99] : memref<25x256xf32, #tpu.memory_space<vmem>>, vector<1x256xf32>
    %147 = vector.shape_cast %146 : vector<1x256xf32> to vector<1x256xf32>
    %148 = vector.broadcast %147 : vector<1x256xf32> to vector<8x256xf32>
    %c23_100 = arith.constant 23 : index
    %c0_101 = arith.constant 0 : index
    %c0_102 = arith.constant 0 : index
    %149 = vector.load %arg12[%c23_100, %c0_101, %c0_102] : memref<25x8x256xf32, #tpu.memory_space<vmem>>, vector<1x8x256xf32>
    %150 = vector.shape_cast %149 : vector<1x8x256xf32> to vector<8x256xf32>
    %151 = vector.shape_cast %148 : vector<8x256xf32> to vector<1x8x256xf32>
    tpu.vector_store %arg12[%c23_100, %c0_101, %c0_102], %151 {strides = array<i32>} : memref<25x8x256xf32, #tpu.memory_space<vmem>>, vector<1x8x256xf32>,
    %c24 = arith.constant 24 : index
    %c0_103 = arith.constant 0 : index
    %152 = vector.load %arg4[%c24, %c0_103] : memref<25x256xf32, #tpu.memory_space<vmem>>, vector<1x256xf32>
    %153 = vector.shape_cast %152 : vector<1x256xf32> to vector<1x256xf32>
    %154 = vector.broadcast %153 : vector<1x256xf32> to vector<8x256xf32>
    %c24_104 = arith.constant 24 : index
    %c0_105 = arith.constant 0 : index
    %c0_106 = arith.constant 0 : index
    %155 = vector.load %arg12[%c24_104, %c0_105, %c0_106] : memref<25x8x256xf32, #tpu.memory_space<vmem>>, vector<1x8x256xf32>
    %156 = vector.shape_cast %155 : vector<1x8x256xf32> to vector<8x256xf32>
    %157 = vector.shape_cast %154 : vector<8x256xf32> to vector<1x8x256xf32>
    tpu.vector_store %arg12[%c24_104, %c0_105, %c0_106], %157 {strides = array<i32>} : memref<25x8x256xf32, #tpu.memory_space<vmem>>, vector<1x8x256xf32>,
    %158 = vector.shape_cast %7 : vector<128x256xf32> to vector<2x8x8x256xf32>
    %cst_107 = arith.constant 0.000000e+00 : f32
    %159 = vector.broadcast %cst_107 : f32 to vector<2x32x256xf32>
    %c0_108 = arith.constant 0 : index
    %c0_109 = arith.constant 0 : index
    %c0_110 = arith.constant 0 : index
    %160 = vector.load %arg11[%c0_108, %c0_109, %c0_110] : memref<12x32x256xf32, #tpu.memory_space<vmem>>, vector<2x32x256xf32>
    tpu.vector_store %arg11[%c0_108, %c0_109, %c0_110], %159 {strides = array<i32>} : memref<12x32x256xf32, #tpu.memory_space<vmem>>, vector<2x32x256xf32>,
    %c10_111 = arith.constant 10 : index
    %c0_112 = arith.constant 0 : index
    %c0_113 = arith.constant 0 : index
    %161 = vector.load %arg11[%c10_111, %c0_112, %c0_113] : memref<12x32x256xf32, #tpu.memory_space<vmem>>, vector<2x32x256xf32>
    tpu.vector_store %arg11[%c10_111, %c0_112, %c0_113], %159 {strides = array<i32>} : memref<12x32x256xf32, #tpu.memory_space<vmem>>, vector<2x32x256xf32>,
    %162 = vector.extract_strided_slice %158 {offsets = [0, 0, 0, 0], sizes = [1, 8, 8, 256], strides = [1, 1, 1, 1]} : vector<2x8x8x256xf32> to vector<1x8x8x256xf32>
    %163 = vector.shape_cast %162 : vector<1x8x8x256xf32> to vector<8x8x256xf32>
    %c2_114 = arith.constant 2 : index
    %c0_115 = arith.constant 0 : index
    %c0_116 = arith.constant 0 : index
    %164 = vector.load %arg11[%c2_114, %c0_115, %c0_116] : memref<12x32x256xf32, #tpu.memory_space<vmem>>, vector<8x8x256xf32>
    tpu.vector_store %arg11[%c2_114, %c0_115, %c0_116], %163 {strides = array<i32>} : memref<12x32x256xf32, #tpu.memory_space<vmem>>, vector<8x8x256xf32>,
    %cst_117 = arith.constant 0.000000e+00 : f32
    %165 = vector.broadcast %cst_117 : f32 to vector<8x8x256xf32>
    %c2_118 = arith.constant 2 : index
    %c8_119 = arith.constant 8 : index
    %c0_120 = arith.constant 0 : index
    %166 = vector.load %arg11[%c2_118, %c8_119, %c0_120] : memref<12x32x256xf32, #tpu.memory_space<vmem>>, vector<8x8x256xf32>
    tpu.vector_store %arg11[%c2_118, %c8_119, %c0_120], %165 {strides = array<i32>} : memref<12x32x256xf32, #tpu.memory_space<vmem>>, vector<8x8x256xf32>,
    %167 = vector.extract_strided_slice %158 {offsets = [1, 0, 0, 0], sizes = [1, 8, 8, 256], strides = [1, 1, 1, 1]} : vector<2x8x8x256xf32> to vector<1x8x8x256xf32>
    %168 = vector.shape_cast %167 : vector<1x8x8x256xf32> to vector<8x8x256xf32>
    %c2_121 = arith.constant 2 : index
    %c16_122 = arith.constant 16 : index
    %c0_123 = arith.constant 0 : index
    %169 = vector.load %arg11[%c2_121, %c16_122, %c0_123] : memref<12x32x256xf32, #tpu.memory_space<vmem>>, vector<8x8x256xf32>
    tpu.vector_store %arg11[%c2_121, %c16_122, %c0_123], %168 {strides = array<i32>} : memref<12x32x256xf32, #tpu.memory_space<vmem>>, vector<8x8x256xf32>,
    %cst_124 = arith.constant 0.000000e+00 : f32
    %170 = vector.broadcast %cst_124 : f32 to vector<8x8x256xf32>
    %c2_125 = arith.constant 2 : index
    %c24_126 = arith.constant 24 : index
    %c0_127 = arith.constant 0 : index
    %171 = vector.load %arg11[%c2_125, %c24_126, %c0_127] : memref<12x32x256xf32, #tpu.memory_space<vmem>>, vector<8x8x256xf32>
    tpu.vector_store %arg11[%c2_125, %c24_126, %c0_127], %170 {strides = array<i32>} : memref<12x32x256xf32, #tpu.memory_space<vmem>>, vector<8x8x256xf32>,
    %c0_i32 = arith.constant 0 : i32
    %c2_i32 = arith.constant 2 : i32
    %172 = arith.addi %c0_i32, %c2_i32 : i32
    %c1_i32 = arith.constant 1 : i32
    scf.for %arg14 = %c0_i32 to %172 step %c1_i32  : i32 {
      %cst_155 = arith.constant 0.000000e+00 : f32
      %217 = vector.broadcast %cst_155 : f32 to vector<8x256xf32>
      %cst_156 = arith.constant 0.000000e+00 : f32
      %218 = vector.broadcast %cst_156 : f32 to vector<8x256xf32>
      %cst_157 = arith.constant 0.000000e+00 : f32
      %219 = vector.broadcast %cst_157 : f32 to vector<8x256xf32>
      %cst_158 = arith.constant 0.000000e+00 : f32
      %220 = vector.broadcast %cst_158 : f32 to vector<8x256xf32>
      %cst_159 = arith.constant 0.000000e+00 : f32
      %221 = vector.broadcast %cst_159 : f32 to vector<8x256xf32>
      %cst_160 = arith.constant 0.000000e+00 : f32
      %222 = vector.broadcast %cst_160 : f32 to vector<8x256xf32>
      %cst_161 = arith.constant 0.000000e+00 : f32
      %223 = vector.broadcast %cst_161 : f32 to vector<8x256xf32>
      %cst_162 = arith.constant 0.000000e+00 : f32
      %224 = vector.broadcast %cst_162 : f32 to vector<8x256xf32>
      %c4_i32 = arith.constant 4 : i32
      %225 = arith.muli %arg14, %c4_i32 : i32
      %c0_i32_163 = arith.constant 0 : i32
      %226 = arith.addi %225, %c0_i32_163 : i32
      %227 = arith.index_cast %226 : i32 to index
      %c0_164 = arith.constant 0 : index
      %c0_165 = arith.constant 0 : index
      %228 = vector.load %arg11[%227, %c0_164, %c0_165] : memref<12x32x256xf32, #tpu.memory_space<vmem>>, vector<1x32x256xf32>
      %229 = vector.shape_cast %228 : vector<1x32x256xf32> to vector<32x256xf32>
      %c2_i32_166 = arith.constant 2 : i32
      %230 = tpu.dynamic_rotate %229 by %c2_i32_166 dim 0 : vector<32x256xf32>, i32 -> vector<32x256xf32>
      %c0_167 = arith.constant 0 : index
      %c0_168 = arith.constant 0 : index
      %c0_169 = arith.constant 0 : index
      %231 = vector.load %arg12[%c0_167, %c0_168, %c0_169] : memref<25x8x256xf32, #tpu.memory_space<vmem>>, vector<1x8x256xf32>
      %232 = vector.shape_cast %231 : vector<1x8x256xf32> to vector<8x256xf32>
      %233 = vector.extract_strided_slice %230 {offsets = [0, 0], sizes = [8, 256], strides = [1, 1]} : vector<32x256xf32> to vector<8x256xf32>
      %234 = arith.mulf %233, %232 : vector<8x256xf32>
      %235 = arith.addf %217, %234 : vector<8x256xf32>
      %236 = vector.extract_strided_slice %230 {offsets = [16, 0], sizes = [8, 256], strides = [1, 1]} : vector<32x256xf32> to vector<8x256xf32>
      %237 = arith.mulf %236, %232 : vector<8x256xf32>
      %238 = arith.addf %221, %237 : vector<8x256xf32>
      %c1_i32_170 = arith.constant 1 : i32
      %239 = tpu.dynamic_rotate %229 by %c1_i32_170 dim 0 : vector<32x256xf32>, i32 -> vector<32x256xf32>
      %c1_171 = arith.constant 1 : index
      %c0_172 = arith.constant 0 : index
      %c0_173 = arith.constant 0 : index
      %240 = vector.load %arg12[%c1_171, %c0_172, %c0_173] : memref<25x8x256xf32, #tpu.memory_space<vmem>>, vector<1x8x256xf32>
      %241 = vector.shape_cast %240 : vector<1x8x256xf32> to vector<8x256xf32>
      %242 = vector.extract_strided_slice %239 {offsets = [0, 0], sizes = [8, 256], strides = [1, 1]} : vector<32x256xf32> to vector<8x256xf32>
      %243 = arith.mulf %242, %241 : vector<8x256xf32>
      %244 = arith.addf %235, %243 : vector<8x256xf32>
      %245 = vector.extract_strided_slice %239 {offsets = [16, 0], sizes = [8, 256], strides = [1, 1]} : vector<32x256xf32> to vector<8x256xf32>
      %246 = arith.mulf %245, %241 : vector<8x256xf32>
      %247 = arith.addf %238, %246 : vector<8x256xf32>
      %c2_174 = arith.constant 2 : index
      %c0_175 = arith.constant 0 : index
      %c0_176 = arith.constant 0 : index
      %248 = vector.load %arg12[%c2_174, %c0_175, %c0_176] : memref<25x8x256xf32, #tpu.memory_space<vmem>>, vector<1x8x256xf32>
      %249 = vector.shape_cast %248 : vector<1x8x256xf32> to vector<8x256xf32>
      %250 = vector.extract_strided_slice %229 {offsets = [0, 0], sizes = [8, 256], strides = [1, 1]} : vector<32x256xf32> to vector<8x256xf32>
      %251 = arith.mulf %250, %249 : vector<8x256xf32>
      %252 = arith.addf %244, %251 : vector<8x256xf32>
      %253 = vector.extract_strided_slice %229 {offsets = [16, 0], sizes = [8, 256], strides = [1, 1]} : vector<32x256xf32> to vector<8x256xf32>
      %254 = arith.mulf %253, %249 : vector<8x256xf32>
      %255 = arith.addf %247, %254 : vector<8x256xf32>
      %c31_i32 = arith.constant 31 : i32
      %256 = tpu.dynamic_rotate %229 by %c31_i32 dim 0 : vector<32x256xf32>, i32 -> vector<32x256xf32>
      %c3_177 = arith.constant 3 : index
      %c0_178 = arith.constant 0 : index
      %c0_179 = arith.constant 0 : index
      %257 = vector.load %arg12[%c3_177, %c0_178, %c0_179] : memref<25x8x256xf32, #tpu.memory_space<vmem>>, vector<1x8x256xf32>
      %258 = vector.shape_cast %257 : vector<1x8x256xf32> to vector<8x256xf32>
      %259 = vector.extract_strided_slice %256 {offsets = [0, 0], sizes = [8, 256], strides = [1, 1]} : vector<32x256xf32> to vector<8x256xf32>
      %260 = arith.mulf %259, %258 : vector<8x256xf32>
      %261 = arith.addf %252, %260 : vector<8x256xf32>
      %262 = vector.extract_strided_slice %256 {offsets = [16, 0], sizes = [8, 256], strides = [1, 1]} : vector<32x256xf32> to vector<8x256xf32>
      %263 = arith.mulf %262, %258 : vector<8x256xf32>
      %264 = arith.addf %255, %263 : vector<8x256xf32>
      %c30_i32 = arith.constant 30 : i32
      %265 = tpu.dynamic_rotate %229 by %c30_i32 dim 0 : vector<32x256xf32>, i32 -> vector<32x256xf32>
      %c4_180 = arith.constant 4 : index
      %c0_181 = arith.constant 0 : index
      %c0_182 = arith.constant 0 : index
      %266 = vector.load %arg12[%c4_180, %c0_181, %c0_182] : memref<25x8x256xf32, #tpu.memory_space<vmem>>, vector<1x8x256xf32>
      %267 = vector.shape_cast %266 : vector<1x8x256xf32> to vector<8x256xf32>
      %268 = vector.extract_strided_slice %265 {offsets = [0, 0], sizes = [8, 256], strides = [1, 1]} : vector<32x256xf32> to vector<8x256xf32>
      %269 = arith.mulf %268, %267 : vector<8x256xf32>
      %270 = arith.addf %261, %269 : vector<8x256xf32>
      %271 = vector.extract_strided_slice %265 {offsets = [16, 0], sizes = [8, 256], strides = [1, 1]} : vector<32x256xf32> to vector<8x256xf32>
      %272 = arith.mulf %271, %267 : vector<8x256xf32>
      %273 = arith.addf %264, %272 : vector<8x256xf32>
      %c4_i32_183 = arith.constant 4 : i32
      %274 = arith.muli %arg14, %c4_i32_183 : i32
      %c1_i32_184 = arith.constant 1 : i32
      %275 = arith.addi %274, %c1_i32_184 : i32
      %276 = arith.index_cast %275 : i32 to index
      %c0_185 = arith.constant 0 : index
      %c0_186 = arith.constant 0 : index
      %277 = vector.load %arg11[%276, %c0_185, %c0_186] : memref<12x32x256xf32, #tpu.memory_space<vmem>>, vector<1x32x256xf32>
      %278 = vector.shape_cast %277 : vector<1x32x256xf32> to vector<32x256xf32>
      %c2_i32_187 = arith.constant 2 : i32
      %279 = tpu.dynamic_rotate %278 by %c2_i32_187 dim 0 : vector<32x256xf32>, i32 -> vector<32x256xf32>
      %c5_188 = arith.constant 5 : index
      %c0_189 = arith.constant 0 : index
      %c0_190 = arith.constant 0 : index
      %280 = vector.load %arg12[%c5_188, %c0_189, %c0_190] : memref<25x8x256xf32, #tpu.memory_space<vmem>>, vector<1x8x256xf32>
      %281 = vector.shape_cast %280 : vector<1x8x256xf32> to vector<8x256xf32>
      %282 = vector.extract_strided_slice %279 {offsets = [0, 0], sizes = [8, 256], strides = [1, 1]} : vector<32x256xf32> to vector<8x256xf32>
      %283 = arith.mulf %282, %281 : vector<8x256xf32>
      %284 = arith.addf %270, %283 : vector<8x256xf32>
      %285 = vector.extract_strided_slice %279 {offsets = [16, 0], sizes = [8, 256], strides = [1, 1]} : vector<32x256xf32> to vector<8x256xf32>
      %286 = arith.mulf %285, %281 : vector<8x256xf32>
      %287 = arith.addf %273, %286 : vector<8x256xf32>
      %c0_191 = arith.constant 0 : index
      %c0_192 = arith.constant 0 : index
      %c0_193 = arith.constant 0 : index
      %288 = vector.load %arg12[%c0_191, %c0_192, %c0_193] : memref<25x8x256xf32, #tpu.memory_space<vmem>>, vector<1x8x256xf32>
      %289 = vector.shape_cast %288 : vector<1x8x256xf32> to vector<8x256xf32>
      %290 = vector.extract_strided_slice %279 {offsets = [0, 0], sizes = [8, 256], strides = [1, 1]} : vector<32x256xf32> to vector<8x256xf32>
      %291 = arith.mulf %290, %289 : vector<8x256xf32>
      %292 = arith.addf %218, %291 : vector<8x256xf32>
      %293 = vector.extract_strided_slice %279 {offsets = [16, 0], sizes = [8, 256], strides = [1, 1]} : vector<32x256xf32> to vector<8x256xf32>
      %294 = arith.mulf %293, %289 : vector<8x256xf32>
      %295 = arith.addf %222, %294 : vector<8x256xf32>
      %c1_i32_194 = arith.constant 1 : i32
      %296 = tpu.dynamic_rotate %278 by %c1_i32_194 dim 0 : vector<32x256xf32>, i32 -> vector<32x256xf32>
      %c6_195 = arith.constant 6 : index
      %c0_196 = arith.constant 0 : index
      %c0_197 = arith.constant 0 : index
      %297 = vector.load %arg12[%c6_195, %c0_196, %c0_197] : memref<25x8x256xf32, #tpu.memory_space<vmem>>, vector<1x8x256xf32>
      %298 = vector.shape_cast %297 : vector<1x8x256xf32> to vector<8x256xf32>
      %299 = vector.extract_strided_slice %296 {offsets = [0, 0], sizes = [8, 256], strides = [1, 1]} : vector<32x256xf32> to vector<8x256xf32>
      %300 = arith.mulf %299, %298 : vector<8x256xf32>
      %301 = arith.addf %284, %300 : vector<8x256xf32>
      %302 = vector.extract_strided_slice %296 {offsets = [16, 0], sizes = [8, 256], strides = [1, 1]} : vector<32x256xf32> to vector<8x256xf32>
      %303 = arith.mulf %302, %298 : vector<8x256xf32>
      %304 = arith.addf %287, %303 : vector<8x256xf32>
      %c1_198 = arith.constant 1 : index
      %c0_199 = arith.constant 0 : index
      %c0_200 = arith.constant 0 : index
      %305 = vector.load %arg12[%c1_198, %c0_199, %c0_200] : memref<25x8x256xf32, #tpu.memory_space<vmem>>, vector<1x8x256xf32>
      %306 = vector.shape_cast %305 : vector<1x8x256xf32> to vector<8x256xf32>
      %307 = vector.extract_strided_slice %296 {offsets = [0, 0], sizes = [8, 256], strides = [1, 1]} : vector<32x256xf32> to vector<8x256xf32>
      %308 = arith.mulf %307, %306 : vector<8x256xf32>
      %309 = arith.addf %292, %308 : vector<8x256xf32>
      %310 = vector.extract_strided_slice %296 {offsets = [16, 0], sizes = [8, 256], strides = [1, 1]} : vector<32x256xf32> to vector<8x256xf32>
      %311 = arith.mulf %310, %306 : vector<8x256xf32>
      %312 = arith.addf %295, %311 : vector<8x256xf32>
      %c7_201 = arith.constant 7 : index
      %c0_202 = arith.constant 0 : index
      %c0_203 = arith.constant 0 : index
      %313 = vector.load %arg12[%c7_201, %c0_202, %c0_203] : memref<25x8x256xf32, #tpu.memory_space<vmem>>, vector<1x8x256xf32>
      %314 = vector.shape_cast %313 : vector<1x8x256xf32> to vector<8x256xf32>
      %315 = vector.extract_strided_slice %278 {offsets = [0, 0], sizes = [8, 256], strides = [1, 1]} : vector<32x256xf32> to vector<8x256xf32>
      %316 = arith.mulf %315, %314 : vector<8x256xf32>
      %317 = arith.addf %301, %316 : vector<8x256xf32>
      %318 = vector.extract_strided_slice %278 {offsets = [16, 0], sizes = [8, 256], strides = [1, 1]} : vector<32x256xf32> to vector<8x256xf32>
      %319 = arith.mulf %318, %314 : vector<8x256xf32>
      %320 = arith.addf %304, %319 : vector<8x256xf32>
      %c2_204 = arith.constant 2 : index
      %c0_205 = arith.constant 0 : index
      %c0_206 = arith.constant 0 : index
      %321 = vector.load %arg12[%c2_204, %c0_205, %c0_206] : memref<25x8x256xf32, #tpu.memory_space<vmem>>, vector<1x8x256xf32>
      %322 = vector.shape_cast %321 : vector<1x8x256xf32> to vector<8x256xf32>
      %323 = vector.extract_strided_slice %278 {offsets = [0, 0], sizes = [8, 256], strides = [1, 1]} : vector<32x256xf32> to vector<8x256xf32>
      %324 = arith.mulf %323, %322 : vector<8x256xf32>
      %325 = arith.addf %309, %324 : vector<8x256xf32>
      %326 = vector.extract_strided_slice %278 {offsets = [16, 0], sizes = [8, 256], strides = [1, 1]} : vector<32x256xf32> to vector<8x256xf32>
      %327 = arith.mulf %326, %322 : vector<8x256xf32>
      %328 = arith.addf %312, %327 : vector<8x256xf32>
      %c31_i32_207 = arith.constant 31 : i32
      %329 = tpu.dynamic_rotate %278 by %c31_i32_207 dim 0 : vector<32x256xf32>, i32 -> vector<32x256xf32>
      %c8_208 = arith.constant 8 : index
      %c0_209 = arith.constant 0 : index
      %c0_210 = arith.constant 0 : index
      %330 = vector.load %arg12[%c8_208, %c0_209, %c0_210] : memref<25x8x256xf32, #tpu.memory_space<vmem>>, vector<1x8x256xf32>
      %331 = vector.shape_cast %330 : vector<1x8x256xf32> to vector<8x256xf32>
      %332 = vector.extract_strided_slice %329 {offsets = [0, 0], sizes = [8, 256], strides = [1, 1]} : vector<32x256xf32> to vector<8x256xf32>
      %333 = arith.mulf %332, %331 : vector<8x256xf32>
      %334 = arith.addf %317, %333 : vector<8x256xf32>
      %335 = vector.extract_strided_slice %329 {offsets = [16, 0], sizes = [8, 256], strides = [1, 1]} : vector<32x256xf32> to vector<8x256xf32>
      %336 = arith.mulf %335, %331 : vector<8x256xf32>
      %337 = arith.addf %320, %336 : vector<8x256xf32>
      %c3_211 = arith.constant 3 : index
      %c0_212 = arith.constant 0 : index
      %c0_213 = arith.constant 0 : index
      %338 = vector.load %arg12[%c3_211, %c0_212, %c0_213] : memref<25x8x256xf32, #tpu.memory_space<vmem>>, vector<1x8x256xf32>
      %339 = vector.shape_cast %338 : vector<1x8x256xf32> to vector<8x256xf32>
      %340 = vector.extract_strided_slice %329 {offsets = [0, 0], sizes = [8, 256], strides = [1, 1]} : vector<32x256xf32> to vector<8x256xf32>
      %341 = arith.mulf %340, %339 : vector<8x256xf32>
      %342 = arith.addf %325, %341 : vector<8x256xf32>
      %343 = vector.extract_strided_slice %329 {offsets = [16, 0], sizes = [8, 256], strides = [1, 1]} : vector<32x256xf32> to vector<8x256xf32>
      %344 = arith.mulf %343, %339 : vector<8x256xf32>
      %345 = arith.addf %328, %344 : vector<8x256xf32>
      %c30_i32_214 = arith.constant 30 : i32
      %346 = tpu.dynamic_rotate %278 by %c30_i32_214 dim 0 : vector<32x256xf32>, i32 -> vector<32x256xf32>
      %c9_215 = arith.constant 9 : index
      %c0_216 = arith.constant 0 : index
      %c0_217 = arith.constant 0 : index
      %347 = vector.load %arg12[%c9_215, %c0_216, %c0_217] : memref<25x8x256xf32, #tpu.memory_space<vmem>>, vector<1x8x256xf32>
      %348 = vector.shape_cast %347 : vector<1x8x256xf32> to vector<8x256xf32>
      %349 = vector.extract_strided_slice %346 {offsets = [0, 0], sizes = [8, 256], strides = [1, 1]} : vector<32x256xf32> to vector<8x256xf32>
      %350 = arith.mulf %349, %348 : vector<8x256xf32>
      %351 = arith.addf %334, %350 : vector<8x256xf32>
      %352 = vector.extract_strided_slice %346 {offsets = [16, 0], sizes = [8, 256], strides = [1, 1]} : vector<32x256xf32> to vector<8x256xf32>
      %353 = arith.mulf %352, %348 : vector<8x256xf32>
      %354 = arith.addf %337, %353 : vector<8x256xf32>
      %c4_218 = arith.constant 4 : index
      %c0_219 = arith.constant 0 : index
      %c0_220 = arith.constant 0 : index
      %355 = vector.load %arg12[%c4_218, %c0_219, %c0_220] : memref<25x8x256xf32, #tpu.memory_space<vmem>>, vector<1x8x256xf32>
      %356 = vector.shape_cast %355 : vector<1x8x256xf32> to vector<8x256xf32>
      %357 = vector.extract_strided_slice %346 {offsets = [0, 0], sizes = [8, 256], strides = [1, 1]} : vector<32x256xf32> to vector<8x256xf32>
      %358 = arith.mulf %357, %356 : vector<8x256xf32>
      %359 = arith.addf %342, %358 : vector<8x256xf32>
      %360 = vector.extract_strided_slice %346 {offsets = [16, 0], sizes = [8, 256], strides = [1, 1]} : vector<32x256xf32> to vector<8x256xf32>
      %361 = arith.mulf %360, %356 : vector<8x256xf32>
      %362 = arith.addf %345, %361 : vector<8x256xf32>
      %c4_i32_221 = arith.constant 4 : i32
      %363 = arith.muli %arg14, %c4_i32_221 : i32
      %c2_i32_222 = arith.constant 2 : i32
      %364 = arith.addi %363, %c2_i32_222 : i32
      %365 = arith.index_cast %364 : i32 to index
      %c0_223 = arith.constant 0 : index
      %c0_224 = arith.constant 0 : index
      %366 = vector.load %arg11[%365, %c0_223, %c0_224] : memref<12x32x256xf32, #tpu.memory_space<vmem>>, vector<1x32x256xf32>
      %367 = vector.shape_cast %366 : vector<1x32x256xf32> to vector<32x256xf32>
      %c2_i32_225 = arith.constant 2 : i32
      %368 = tpu.dynamic_rotate %367 by %c2_i32_225 dim 0 : vector<32x256xf32>, i32 -> vector<32x256xf32>
      %c10_226 = arith.constant 10 : index
      %c0_227 = arith.constant 0 : index
      %c0_228 = arith.constant 0 : index
      %369 = vector.load %arg12[%c10_226, %c0_227, %c0_228] : memref<25x8x256xf32, #tpu.memory_space<vmem>>, vector<1x8x256xf32>
      %370 = vector.shape_cast %369 : vector<1x8x256xf32> to vector<8x256xf32>
      %371 = vector.extract_strided_slice %368 {offsets = [0, 0], sizes = [8, 256], strides = [1, 1]} : vector<32x256xf32> to vector<8x256xf32>
      %372 = arith.mulf %371, %370 : vector<8x256xf32>
      %373 = arith.addf %351, %372 : vector<8x256xf32>
      %374 = vector.extract_strided_slice %368 {offsets = [16, 0], sizes = [8, 256], strides = [1, 1]} : vector<32x256xf32> to vector<8x256xf32>
      %375 = arith.mulf %374, %370 : vector<8x256xf32>
      %376 = arith.addf %354, %375 : vector<8x256xf32>
      %c5_229 = arith.constant 5 : index
      %c0_230 = arith.constant 0 : index
      %c0_231 = arith.constant 0 : index
      %377 = vector.load %arg12[%c5_229, %c0_230, %c0_231] : memref<25x8x256xf32, #tpu.memory_space<vmem>>, vector<1x8x256xf32>
      %378 = vector.shape_cast %377 : vector<1x8x256xf32> to vector<8x256xf32>
      %379 = vector.extract_strided_slice %368 {offsets = [0, 0], sizes = [8, 256], strides = [1, 1]} : vector<32x256xf32> to vector<8x256xf32>
      %380 = arith.mulf %379, %378 : vector<8x256xf32>
      %381 = arith.addf %359, %380 : vector<8x256xf32>
      %382 = vector.extract_strided_slice %368 {offsets = [16, 0], sizes = [8, 256], strides = [1, 1]} : vector<32x256xf32> to vector<8x256xf32>
      %383 = arith.mulf %382, %378 : vector<8x256xf32>
      %384 = arith.addf %362, %383 : vector<8x256xf32>
      %c0_232 = arith.constant 0 : index
      %c0_233 = arith.constant 0 : index
      %c0_234 = arith.constant 0 : index
      %385 = vector.load %arg12[%c0_232, %c0_233, %c0_234] : memref<25x8x256xf32, #tpu.memory_space<vmem>>, vector<1x8x256xf32>
      %386 = vector.shape_cast %385 : vector<1x8x256xf32> to vector<8x256xf32>
      %387 = vector.extract_strided_slice %368 {offsets = [0, 0], sizes = [8, 256], strides = [1, 1]} : vector<32x256xf32> to vector<8x256xf32>
      %388 = arith.mulf %387, %386 : vector<8x256xf32>
      %389 = arith.addf %219, %388 : vector<8x256xf32>
      %390 = vector.extract_strided_slice %368 {offsets = [16, 0], sizes = [8, 256], strides = [1, 1]} : vector<32x256xf32> to vector<8x256xf32>
      %391 = arith.mulf %390, %386 : vector<8x256xf32>
      %392 = arith.addf %223, %391 : vector<8x256xf32>
      %c1_i32_235 = arith.constant 1 : i32
      %393 = tpu.dynamic_rotate %367 by %c1_i32_235 dim 0 : vector<32x256xf32>, i32 -> vector<32x256xf32>
      %c11_236 = arith.constant 11 : index
      %c0_237 = arith.constant 0 : index
      %c0_238 = arith.constant 0 : index
      %394 = vector.load %arg12[%c11_236, %c0_237, %c0_238] : memref<25x8x256xf32, #tpu.memory_space<vmem>>, vector<1x8x256xf32>
      %395 = vector.shape_cast %394 : vector<1x8x256xf32> to vector<8x256xf32>
      %396 = vector.extract_strided_slice %393 {offsets = [0, 0], sizes = [8, 256], strides = [1, 1]} : vector<32x256xf32> to vector<8x256xf32>
      %397 = arith.mulf %396, %395 : vector<8x256xf32>
      %398 = arith.addf %373, %397 : vector<8x256xf32>
      %399 = vector.extract_strided_slice %393 {offsets = [16, 0], sizes = [8, 256], strides = [1, 1]} : vector<32x256xf32> to vector<8x256xf32>
      %400 = arith.mulf %399, %395 : vector<8x256xf32>
      %401 = arith.addf %376, %400 : vector<8x256xf32>
      %c6_239 = arith.constant 6 : index
      %c0_240 = arith.constant 0 : index
      %c0_241 = arith.constant 0 : index
      %402 = vector.load %arg12[%c6_239, %c0_240, %c0_241] : memref<25x8x256xf32, #tpu.memory_space<vmem>>, vector<1x8x256xf32>
      %403 = vector.shape_cast %402 : vector<1x8x256xf32> to vector<8x256xf32>
      %404 = vector.extract_strided_slice %393 {offsets = [0, 0], sizes = [8, 256], strides = [1, 1]} : vector<32x256xf32> to vector<8x256xf32>
      %405 = arith.mulf %404, %403 : vector<8x256xf32>
      %406 = arith.addf %381, %405 : vector<8x256xf32>
      %407 = vector.extract_strided_slice %393 {offsets = [16, 0], sizes = [8, 256], strides = [1, 1]} : vector<32x256xf32> to vector<8x256xf32>
      %408 = arith.mulf %407, %403 : vector<8x256xf32>
      %409 = arith.addf %384, %408 : vector<8x256xf32>
      %c1_242 = arith.constant 1 : index
      %c0_243 = arith.constant 0 : index
      %c0_244 = arith.constant 0 : index
      %410 = vector.load %arg12[%c1_242, %c0_243, %c0_244] : memref<25x8x256xf32, #tpu.memory_space<vmem>>, vector<1x8x256xf32>
      %411 = vector.shape_cast %410 : vector<1x8x256xf32> to vector<8x256xf32>
      %412 = vector.extract_strided_slice %393 {offsets = [0, 0], sizes = [8, 256], strides = [1, 1]} : vector<32x256xf32> to vector<8x256xf32>
      %413 = arith.mulf %412, %411 : vector<8x256xf32>
      %414 = arith.addf %389, %413 : vector<8x256xf32>
      %415 = vector.extract_strided_slice %393 {offsets = [16, 0], sizes = [8, 256], strides = [1, 1]} : vector<32x256xf32> to vector<8x256xf32>
      %416 = arith.mulf %415, %411 : vector<8x256xf32>
      %417 = arith.addf %392, %416 : vector<8x256xf32>
      %c12_245 = arith.constant 12 : index
      %c0_246 = arith.constant 0 : index
      %c0_247 = arith.constant 0 : index
      %418 = vector.load %arg12[%c12_245, %c0_246, %c0_247] : memref<25x8x256xf32, #tpu.memory_space<vmem>>, vector<1x8x256xf32>
      %419 = vector.shape_cast %418 : vector<1x8x256xf32> to vector<8x256xf32>
      %420 = vector.extract_strided_slice %367 {offsets = [0, 0], sizes = [8, 256], strides = [1, 1]} : vector<32x256xf32> to vector<8x256xf32>
      %421 = arith.mulf %420, %419 : vector<8x256xf32>
      %422 = arith.addf %398, %421 : vector<8x256xf32>
      %423 = vector.extract_strided_slice %367 {offsets = [16, 0], sizes = [8, 256], strides = [1, 1]} : vector<32x256xf32> to vector<8x256xf32>
      %424 = arith.mulf %423, %419 : vector<8x256xf32>
      %425 = arith.addf %401, %424 : vector<8x256xf32>
      %c7_248 = arith.constant 7 : index
      %c0_249 = arith.constant 0 : index
      %c0_250 = arith.constant 0 : index
      %426 = vector.load %arg12[%c7_248, %c0_249, %c0_250] : memref<25x8x256xf32, #tpu.memory_space<vmem>>, vector<1x8x256xf32>
      %427 = vector.shape_cast %426 : vector<1x8x256xf32> to vector<8x256xf32>
      %428 = vector.extract_strided_slice %367 {offsets = [0, 0], sizes = [8, 256], strides = [1, 1]} : vector<32x256xf32> to vector<8x256xf32>
      %429 = arith.mulf %428, %427 : vector<8x256xf32>
      %430 = arith.addf %406, %429 : vector<8x256xf32>
      %431 = vector.extract_strided_slice %367 {offsets = [16, 0], sizes = [8, 256], strides = [1, 1]} : vector<32x256xf32> to vector<8x256xf32>
      %432 = arith.mulf %431, %427 : vector<8x256xf32>
      %433 = arith.addf %409, %432 : vector<8x256xf32>
      %c2_251 = arith.constant 2 : index
      %c0_252 = arith.constant 0 : index
      %c0_253 = arith.constant 0 : index
      %434 = vector.load %arg12[%c2_251, %c0_252, %c0_253] : memref<25x8x256xf32, #tpu.memory_space<vmem>>, vector<1x8x256xf32>
      %435 = vector.shape_cast %434 : vector<1x8x256xf32> to vector<8x256xf32>
      %436 = vector.extract_strided_slice %367 {offsets = [0, 0], sizes = [8, 256], strides = [1, 1]} : vector<32x256xf32> to vector<8x256xf32>
      %437 = arith.mulf %436, %435 : vector<8x256xf32>
      %438 = arith.addf %414, %437 : vector<8x256xf32>
      %439 = vector.extract_strided_slice %367 {offsets = [16, 0], sizes = [8, 256], strides = [1, 1]} : vector<32x256xf32> to vector<8x256xf32>
      %440 = arith.mulf %439, %435 : vector<8x256xf32>
      %441 = arith.addf %417, %440 : vector<8x256xf32>
      %c31_i32_254 = arith.constant 31 : i32
      %442 = tpu.dynamic_rotate %367 by %c31_i32_254 dim 0 : vector<32x256xf32>, i32 -> vector<32x256xf32>
      %c13_255 = arith.constant 13 : index
      %c0_256 = arith.constant 0 : index
      %c0_257 = arith.constant 0 : index
      %443 = vector.load %arg12[%c13_255, %c0_256, %c0_257] : memref<25x8x256xf32, #tpu.memory_space<vmem>>, vector<1x8x256xf32>
      %444 = vector.shape_cast %443 : vector<1x8x256xf32> to vector<8x256xf32>
      %445 = vector.extract_strided_slice %442 {offsets = [0, 0], sizes = [8, 256], strides = [1, 1]} : vector<32x256xf32> to vector<8x256xf32>
      %446 = arith.mulf %445, %444 : vector<8x256xf32>
      %447 = arith.addf %422, %446 : vector<8x256xf32>
      %448 = vector.extract_strided_slice %442 {offsets = [16, 0], sizes = [8, 256], strides = [1, 1]} : vector<32x256xf32> to vector<8x256xf32>
      %449 = arith.mulf %448, %444 : vector<8x256xf32>
      %450 = arith.addf %425, %449 : vector<8x256xf32>
      %c8_258 = arith.constant 8 : index
      %c0_259 = arith.constant 0 : index
      %c0_260 = arith.constant 0 : index
      %451 = vector.load %arg12[%c8_258, %c0_259, %c0_260] : memref<25x8x256xf32, #tpu.memory_space<vmem>>, vector<1x8x256xf32>
      %452 = vector.shape_cast %451 : vector<1x8x256xf32> to vector<8x256xf32>
      %453 = vector.extract_strided_slice %442 {offsets = [0, 0], sizes = [8, 256], strides = [1, 1]} : vector<32x256xf32> to vector<8x256xf32>
      %454 = arith.mulf %453, %452 : vector<8x256xf32>
      %455 = arith.addf %430, %454 : vector<8x256xf32>
      %456 = vector.extract_strided_slice %442 {offsets = [16, 0], sizes = [8, 256], strides = [1, 1]} : vector<32x256xf32> to vector<8x256xf32>
      %457 = arith.mulf %456, %452 : vector<8x256xf32>
      %458 = arith.addf %433, %457 : vector<8x256xf32>
      %c3_261 = arith.constant 3 : index
      %c0_262 = arith.constant 0 : index
      %c0_263 = arith.constant 0 : index
      %459 = vector.load %arg12[%c3_261, %c0_262, %c0_263] : memref<25x8x256xf32, #tpu.memory_space<vmem>>, vector<1x8x256xf32>
      %460 = vector.shape_cast %459 : vector<1x8x256xf32> to vector<8x256xf32>
      %461 = vector.extract_strided_slice %442 {offsets = [0, 0], sizes = [8, 256], strides = [1, 1]} : vector<32x256xf32> to vector<8x256xf32>
      %462 = arith.mulf %461, %460 : vector<8x256xf32>
      %463 = arith.addf %438, %462 : vector<8x256xf32>
      %464 = vector.extract_strided_slice %442 {offsets = [16, 0], sizes = [8, 256], strides = [1, 1]} : vector<32x256xf32> to vector<8x256xf32>
      %465 = arith.mulf %464, %460 : vector<8x256xf32>
      %466 = arith.addf %441, %465 : vector<8x256xf32>
      %c30_i32_264 = arith.constant 30 : i32
      %467 = tpu.dynamic_rotate %367 by %c30_i32_264 dim 0 : vector<32x256xf32>, i32 -> vector<32x256xf32>
      %c14_265 = arith.constant 14 : index
      %c0_266 = arith.constant 0 : index
      %c0_267 = arith.constant 0 : index
      %468 = vector.load %arg12[%c14_265, %c0_266, %c0_267] : memref<25x8x256xf32, #tpu.memory_space<vmem>>, vector<1x8x256xf32>
      %469 = vector.shape_cast %468 : vector<1x8x256xf32> to vector<8x256xf32>
      %470 = vector.extract_strided_slice %467 {offsets = [0, 0], sizes = [8, 256], strides = [1, 1]} : vector<32x256xf32> to vector<8x256xf32>
      %471 = arith.mulf %470, %469 : vector<8x256xf32>
      %472 = arith.addf %447, %471 : vector<8x256xf32>
      %473 = vector.extract_strided_slice %467 {offsets = [16, 0], sizes = [8, 256], strides = [1, 1]} : vector<32x256xf32> to vector<8x256xf32>
      %474 = arith.mulf %473, %469 : vector<8x256xf32>
      %475 = arith.addf %450, %474 : vector<8x256xf32>
      %c9_268 = arith.constant 9 : index
      %c0_269 = arith.constant 0 : index
      %c0_270 = arith.constant 0 : index
      %476 = vector.load %arg12[%c9_268, %c0_269, %c0_270] : memref<25x8x256xf32, #tpu.memory_space<vmem>>, vector<1x8x256xf32>
      %477 = vector.shape_cast %476 : vector<1x8x256xf32> to vector<8x256xf32>
      %478 = vector.extract_strided_slice %467 {offsets = [0, 0], sizes = [8, 256], strides = [1, 1]} : vector<32x256xf32> to vector<8x256xf32>
      %479 = arith.mulf %478, %477 : vector<8x256xf32>
      %480 = arith.addf %455, %479 : vector<8x256xf32>
      %481 = vector.extract_strided_slice %467 {offsets = [16, 0], sizes = [8, 256], strides = [1, 1]} : vector<32x256xf32> to vector<8x256xf32>
      %482 = arith.mulf %481, %477 : vector<8x256xf32>
      %483 = arith.addf %458, %482 : vector<8x256xf32>
      %c4_271 = arith.constant 4 : index
      %c0_272 = arith.constant 0 : index
      %c0_273 = arith.constant 0 : index
      %484 = vector.load %arg12[%c4_271, %c0_272, %c0_273] : memref<25x8x256xf32, #tpu.memory_space<vmem>>, vector<1x8x256xf32>
      %485 = vector.shape_cast %484 : vector<1x8x256xf32> to vector<8x256xf32>
      %486 = vector.extract_strided_slice %467 {offsets = [0, 0], sizes = [8, 256], strides = [1, 1]} : vector<32x256xf32> to vector<8x256xf32>
      %487 = arith.mulf %486, %485 : vector<8x256xf32>
      %488 = arith.addf %463, %487 : vector<8x256xf32>
      %489 = vector.extract_strided_slice %467 {offsets = [16, 0], sizes = [8, 256], strides = [1, 1]} : vector<32x256xf32> to vector<8x256xf32>
      %490 = arith.mulf %489, %485 : vector<8x256xf32>
      %491 = arith.addf %466, %490 : vector<8x256xf32>
      %c4_i32_274 = arith.constant 4 : i32
      %492 = arith.muli %arg14, %c4_i32_274 : i32
      %c3_i32 = arith.constant 3 : i32
      %493 = arith.addi %492, %c3_i32 : i32
      %494 = arith.index_cast %493 : i32 to index
      %c0_275 = arith.constant 0 : index
      %c0_276 = arith.constant 0 : index
      %495 = vector.load %arg11[%494, %c0_275, %c0_276] : memref<12x32x256xf32, #tpu.memory_space<vmem>>, vector<1x32x256xf32>
      %496 = vector.shape_cast %495 : vector<1x32x256xf32> to vector<32x256xf32>
      %c2_i32_277 = arith.constant 2 : i32
      %497 = tpu.dynamic_rotate %496 by %c2_i32_277 dim 0 : vector<32x256xf32>, i32 -> vector<32x256xf32>
      %c15_278 = arith.constant 15 : index
      %c0_279 = arith.constant 0 : index
      %c0_280 = arith.constant 0 : index
      %498 = vector.load %arg12[%c15_278, %c0_279, %c0_280] : memref<25x8x256xf32, #tpu.memory_space<vmem>>, vector<1x8x256xf32>
      %499 = vector.shape_cast %498 : vector<1x8x256xf32> to vector<8x256xf32>
      %500 = vector.extract_strided_slice %497 {offsets = [0, 0], sizes = [8, 256], strides = [1, 1]} : vector<32x256xf32> to vector<8x256xf32>
      %501 = arith.mulf %500, %499 : vector<8x256xf32>
      %502 = arith.addf %472, %501 : vector<8x256xf32>
      %503 = vector.extract_strided_slice %497 {offsets = [16, 0], sizes = [8, 256], strides = [1, 1]} : vector<32x256xf32> to vector<8x256xf32>
      %504 = arith.mulf %503, %499 : vector<8x256xf32>
      %505 = arith.addf %475, %504 : vector<8x256xf32>
      %c10_281 = arith.constant 10 : index
      %c0_282 = arith.constant 0 : index
      %c0_283 = arith.constant 0 : index
      %506 = vector.load %arg12[%c10_281, %c0_282, %c0_283] : memref<25x8x256xf32, #tpu.memory_space<vmem>>, vector<1x8x256xf32>
      %507 = vector.shape_cast %506 : vector<1x8x256xf32> to vector<8x256xf32>
      %508 = vector.extract_strided_slice %497 {offsets = [0, 0], sizes = [8, 256], strides = [1, 1]} : vector<32x256xf32> to vector<8x256xf32>
      %509 = arith.mulf %508, %507 : vector<8x256xf32>
      %510 = arith.addf %480, %509 : vector<8x256xf32>
      %511 = vector.extract_strided_slice %497 {offsets = [16, 0], sizes = [8, 256], strides = [1, 1]} : vector<32x256xf32> to vector<8x256xf32>
      %512 = arith.mulf %511, %507 : vector<8x256xf32>
      %513 = arith.addf %483, %512 : vector<8x256xf32>
      %c5_284 = arith.constant 5 : index
      %c0_285 = arith.constant 0 : index
      %c0_286 = arith.constant 0 : index
      %514 = vector.load %arg12[%c5_284, %c0_285, %c0_286] : memref<25x8x256xf32, #tpu.memory_space<vmem>>, vector<1x8x256xf32>
      %515 = vector.shape_cast %514 : vector<1x8x256xf32> to vector<8x256xf32>
      %516 = vector.extract_strided_slice %497 {offsets = [0, 0], sizes = [8, 256], strides = [1, 1]} : vector<32x256xf32> to vector<8x256xf32>
      %517 = arith.mulf %516, %515 : vector<8x256xf32>
      %518 = arith.addf %488, %517 : vector<8x256xf32>
      %519 = vector.extract_strided_slice %497 {offsets = [16, 0], sizes = [8, 256], strides = [1, 1]} : vector<32x256xf32> to vector<8x256xf32>
      %520 = arith.mulf %519, %515 : vector<8x256xf32>
      %521 = arith.addf %491, %520 : vector<8x256xf32>
      %c0_287 = arith.constant 0 : index
      %c0_288 = arith.constant 0 : index
      %c0_289 = arith.constant 0 : index
      %522 = vector.load %arg12[%c0_287, %c0_288, %c0_289] : memref<25x8x256xf32, #tpu.memory_space<vmem>>, vector<1x8x256xf32>
      %523 = vector.shape_cast %522 : vector<1x8x256xf32> to vector<8x256xf32>
      %524 = vector.extract_strided_slice %497 {offsets = [0, 0], sizes = [8, 256], strides = [1, 1]} : vector<32x256xf32> to vector<8x256xf32>
      %525 = arith.mulf %524, %523 : vector<8x256xf32>
      %526 = arith.addf %220, %525 : vector<8x256xf32>
      %527 = vector.extract_strided_slice %497 {offsets = [16, 0], sizes = [8, 256], strides = [1, 1]} : vector<32x256xf32> to vector<8x256xf32>
      %528 = arith.mulf %527, %523 : vector<8x256xf32>
      %529 = arith.addf %224, %528 : vector<8x256xf32>
      %c1_i32_290 = arith.constant 1 : i32
      %530 = tpu.dynamic_rotate %496 by %c1_i32_290 dim 0 : vector<32x256xf32>, i32 -> vector<32x256xf32>
      %c16_291 = arith.constant 16 : index
      %c0_292 = arith.constant 0 : index
      %c0_293 = arith.constant 0 : index
      %531 = vector.load %arg12[%c16_291, %c0_292, %c0_293] : memref<25x8x256xf32, #tpu.memory_space<vmem>>, vector<1x8x256xf32>
      %532 = vector.shape_cast %531 : vector<1x8x256xf32> to vector<8x256xf32>
      %533 = vector.extract_strided_slice %530 {offsets = [0, 0], sizes = [8, 256], strides = [1, 1]} : vector<32x256xf32> to vector<8x256xf32>
      %534 = arith.mulf %533, %532 : vector<8x256xf32>
      %535 = arith.addf %502, %534 : vector<8x256xf32>
      %536 = vector.extract_strided_slice %530 {offsets = [16, 0], sizes = [8, 256], strides = [1, 1]} : vector<32x256xf32> to vector<8x256xf32>
      %537 = arith.mulf %536, %532 : vector<8x256xf32>
      %538 = arith.addf %505, %537 : vector<8x256xf32>
      %c11_294 = arith.constant 11 : index
      %c0_295 = arith.constant 0 : index
      %c0_296 = arith.constant 0 : index
      %539 = vector.load %arg12[%c11_294, %c0_295, %c0_296] : memref<25x8x256xf32, #tpu.memory_space<vmem>>, vector<1x8x256xf32>
      %540 = vector.shape_cast %539 : vector<1x8x256xf32> to vector<8x256xf32>
      %541 = vector.extract_strided_slice %530 {offsets = [0, 0], sizes = [8, 256], strides = [1, 1]} : vector<32x256xf32> to vector<8x256xf32>
      %542 = arith.mulf %541, %540 : vector<8x256xf32>
      %543 = arith.addf %510, %542 : vector<8x256xf32>
      %544 = vector.extract_strided_slice %530 {offsets = [16, 0], sizes = [8, 256], strides = [1, 1]} : vector<32x256xf32> to vector<8x256xf32>
      %545 = arith.mulf %544, %540 : vector<8x256xf32>
      %546 = arith.addf %513, %545 : vector<8x256xf32>
      %c6_297 = arith.constant 6 : index
      %c0_298 = arith.constant 0 : index
      %c0_299 = arith.constant 0 : index
      %547 = vector.load %arg12[%c6_297, %c0_298, %c0_299] : memref<25x8x256xf32, #tpu.memory_space<vmem>>, vector<1x8x256xf32>
      %548 = vector.shape_cast %547 : vector<1x8x256xf32> to vector<8x256xf32>
      %549 = vector.extract_strided_slice %530 {offsets = [0, 0], sizes = [8, 256], strides = [1, 1]} : vector<32x256xf32> to vector<8x256xf32>
      %550 = arith.mulf %549, %548 : vector<8x256xf32>
      %551 = arith.addf %518, %550 : vector<8x256xf32>
      %552 = vector.extract_strided_slice %530 {offsets = [16, 0], sizes = [8, 256], strides = [1, 1]} : vector<32x256xf32> to vector<8x256xf32>
      %553 = arith.mulf %552, %548 : vector<8x256xf32>
      %554 = arith.addf %521, %553 : vector<8x256xf32>
      %c1_300 = arith.constant 1 : index
      %c0_301 = arith.constant 0 : index
      %c0_302 = arith.constant 0 : index
      %555 = vector.load %arg12[%c1_300, %c0_301, %c0_302] : memref<25x8x256xf32, #tpu.memory_space<vmem>>, vector<1x8x256xf32>
      %556 = vector.shape_cast %555 : vector<1x8x256xf32> to vector<8x256xf32>
      %557 = vector.extract_strided_slice %530 {offsets = [0, 0], sizes = [8, 256], strides = [1, 1]} : vector<32x256xf32> to vector<8x256xf32>
      %558 = arith.mulf %557, %556 : vector<8x256xf32>
      %559 = arith.addf %526, %558 : vector<8x256xf32>
      %560 = vector.extract_strided_slice %530 {offsets = [16, 0], sizes = [8, 256], strides = [1, 1]} : vector<32x256xf32> to vector<8x256xf32>
      %561 = arith.mulf %560, %556 : vector<8x256xf32>
      %562 = arith.addf %529, %561 : vector<8x256xf32>
      %c17_303 = arith.constant 17 : index
      %c0_304 = arith.constant 0 : index
      %c0_305 = arith.constant 0 : index
      %563 = vector.load %arg12[%c17_303, %c0_304, %c0_305] : memref<25x8x256xf32, #tpu.memory_space<vmem>>, vector<1x8x256xf32>
      %564 = vector.shape_cast %563 : vector<1x8x256xf32> to vector<8x256xf32>
      %565 = vector.extract_strided_slice %496 {offsets = [0, 0], sizes = [8, 256], strides = [1, 1]} : vector<32x256xf32> to vector<8x256xf32>
      %566 = arith.mulf %565, %564 : vector<8x256xf32>
      %567 = arith.addf %535, %566 : vector<8x256xf32>
      %568 = vector.extract_strided_slice %496 {offsets = [16, 0], sizes = [8, 256], strides = [1, 1]} : vector<32x256xf32> to vector<8x256xf32>
      %569 = arith.mulf %568, %564 : vector<8x256xf32>
      %570 = arith.addf %538, %569 : vector<8x256xf32>
      %c12_306 = arith.constant 12 : index
      %c0_307 = arith.constant 0 : index
      %c0_308 = arith.constant 0 : index
      %571 = vector.load %arg12[%c12_306, %c0_307, %c0_308] : memref<25x8x256xf32, #tpu.memory_space<vmem>>, vector<1x8x256xf32>
      %572 = vector.shape_cast %571 : vector<1x8x256xf32> to vector<8x256xf32>
      %573 = vector.extract_strided_slice %496 {offsets = [0, 0], sizes = [8, 256], strides = [1, 1]} : vector<32x256xf32> to vector<8x256xf32>
      %574 = arith.mulf %573, %572 : vector<8x256xf32>
      %575 = arith.addf %543, %574 : vector<8x256xf32>
      %576 = vector.extract_strided_slice %496 {offsets = [16, 0], sizes = [8, 256], strides = [1, 1]} : vector<32x256xf32> to vector<8x256xf32>
      %577 = arith.mulf %576, %572 : vector<8x256xf32>
      %578 = arith.addf %546, %577 : vector<8x256xf32>
      %c7_309 = arith.constant 7 : index
      %c0_310 = arith.constant 0 : index
      %c0_311 = arith.constant 0 : index
      %579 = vector.load %arg12[%c7_309, %c0_310, %c0_311] : memref<25x8x256xf32, #tpu.memory_space<vmem>>, vector<1x8x256xf32>
      %580 = vector.shape_cast %579 : vector<1x8x256xf32> to vector<8x256xf32>
      %581 = vector.extract_strided_slice %496 {offsets = [0, 0], sizes = [8, 256], strides = [1, 1]} : vector<32x256xf32> to vector<8x256xf32>
      %582 = arith.mulf %581, %580 : vector<8x256xf32>
      %583 = arith.addf %551, %582 : vector<8x256xf32>
      %584 = vector.extract_strided_slice %496 {offsets = [16, 0], sizes = [8, 256], strides = [1, 1]} : vector<32x256xf32> to vector<8x256xf32>
      %585 = arith.mulf %584, %580 : vector<8x256xf32>
      %586 = arith.addf %554, %585 : vector<8x256xf32>
      %c2_312 = arith.constant 2 : index
      %c0_313 = arith.constant 0 : index
      %c0_314 = arith.constant 0 : index
      %587 = vector.load %arg12[%c2_312, %c0_313, %c0_314] : memref<25x8x256xf32, #tpu.memory_space<vmem>>, vector<1x8x256xf32>
      %588 = vector.shape_cast %587 : vector<1x8x256xf32> to vector<8x256xf32>
      %589 = vector.extract_strided_slice %496 {offsets = [0, 0], sizes = [8, 256], strides = [1, 1]} : vector<32x256xf32> to vector<8x256xf32>
      %590 = arith.mulf %589, %588 : vector<8x256xf32>
      %591 = arith.addf %559, %590 : vector<8x256xf32>
      %592 = vector.extract_strided_slice %496 {offsets = [16, 0], sizes = [8, 256], strides = [1, 1]} : vector<32x256xf32> to vector<8x256xf32>
      %593 = arith.mulf %592, %588 : vector<8x256xf32>
      %594 = arith.addf %562, %593 : vector<8x256xf32>
      %c31_i32_315 = arith.constant 31 : i32
      %595 = tpu.dynamic_rotate %496 by %c31_i32_315 dim 0 : vector<32x256xf32>, i32 -> vector<32x256xf32>
      %c18_316 = arith.constant 18 : index
      %c0_317 = arith.constant 0 : index
      %c0_318 = arith.constant 0 : index
      %596 = vector.load %arg12[%c18_316, %c0_317, %c0_318] : memref<25x8x256xf32, #tpu.memory_space<vmem>>, vector<1x8x256xf32>
      %597 = vector.shape_cast %596 : vector<1x8x256xf32> to vector<8x256xf32>
      %598 = vector.extract_strided_slice %595 {offsets = [0, 0], sizes = [8, 256], strides = [1, 1]} : vector<32x256xf32> to vector<8x256xf32>
      %599 = arith.mulf %598, %597 : vector<8x256xf32>
      %600 = arith.addf %567, %599 : vector<8x256xf32>
      %601 = vector.extract_strided_slice %595 {offsets = [16, 0], sizes = [8, 256], strides = [1, 1]} : vector<32x256xf32> to vector<8x256xf32>
      %602 = arith.mulf %601, %597 : vector<8x256xf32>
      %603 = arith.addf %570, %602 : vector<8x256xf32>
      %c13_319 = arith.constant 13 : index
      %c0_320 = arith.constant 0 : index
      %c0_321 = arith.constant 0 : index
      %604 = vector.load %arg12[%c13_319, %c0_320, %c0_321] : memref<25x8x256xf32, #tpu.memory_space<vmem>>, vector<1x8x256xf32>
      %605 = vector.shape_cast %604 : vector<1x8x256xf32> to vector<8x256xf32>
      %606 = vector.extract_strided_slice %595 {offsets = [0, 0], sizes = [8, 256], strides = [1, 1]} : vector<32x256xf32> to vector<8x256xf32>
      %607 = arith.mulf %606, %605 : vector<8x256xf32>
      %608 = arith.addf %575, %607 : vector<8x256xf32>
      %609 = vector.extract_strided_slice %595 {offsets = [16, 0], sizes = [8, 256], strides = [1, 1]} : vector<32x256xf32> to vector<8x256xf32>
      %610 = arith.mulf %609, %605 : vector<8x256xf32>
      %611 = arith.addf %578, %610 : vector<8x256xf32>
      %c8_322 = arith.constant 8 : index
      %c0_323 = arith.constant 0 : index
      %c0_324 = arith.constant 0 : index
      %612 = vector.load %arg12[%c8_322, %c0_323, %c0_324] : memref<25x8x256xf32, #tpu.memory_space<vmem>>, vector<1x8x256xf32>
      %613 = vector.shape_cast %612 : vector<1x8x256xf32> to vector<8x256xf32>
      %614 = vector.extract_strided_slice %595 {offsets = [0, 0], sizes = [8, 256], strides = [1, 1]} : vector<32x256xf32> to vector<8x256xf32>
      %615 = arith.mulf %614, %613 : vector<8x256xf32>
      %616 = arith.addf %583, %615 : vector<8x256xf32>
      %617 = vector.extract_strided_slice %595 {offsets = [16, 0], sizes = [8, 256], strides = [1, 1]} : vector<32x256xf32> to vector<8x256xf32>
      %618 = arith.mulf %617, %613 : vector<8x256xf32>
      %619 = arith.addf %586, %618 : vector<8x256xf32>
      %c3_325 = arith.constant 3 : index
      %c0_326 = arith.constant 0 : index
      %c0_327 = arith.constant 0 : index
      %620 = vector.load %arg12[%c3_325, %c0_326, %c0_327] : memref<25x8x256xf32, #tpu.memory_space<vmem>>, vector<1x8x256xf32>
      %621 = vector.shape_cast %620 : vector<1x8x256xf32> to vector<8x256xf32>
      %622 = vector.extract_strided_slice %595 {offsets = [0, 0], sizes = [8, 256], strides = [1, 1]} : vector<32x256xf32> to vector<8x256xf32>
      %623 = arith.mulf %622, %621 : vector<8x256xf32>
      %624 = arith.addf %591, %623 : vector<8x256xf32>
      %625 = vector.extract_strided_slice %595 {offsets = [16, 0], sizes = [8, 256], strides = [1, 1]} : vector<32x256xf32> to vector<8x256xf32>
      %626 = arith.mulf %625, %621 : vector<8x256xf32>
      %627 = arith.addf %594, %626 : vector<8x256xf32>
      %c30_i32_328 = arith.constant 30 : i32
      %628 = tpu.dynamic_rotate %496 by %c30_i32_328 dim 0 : vector<32x256xf32>, i32 -> vector<32x256xf32>
      %c19_329 = arith.constant 19 : index
      %c0_330 = arith.constant 0 : index
      %c0_331 = arith.constant 0 : index
      %629 = vector.load %arg12[%c19_329, %c0_330, %c0_331] : memref<25x8x256xf32, #tpu.memory_space<vmem>>, vector<1x8x256xf32>
      %630 = vector.shape_cast %629 : vector<1x8x256xf32> to vector<8x256xf32>
      %631 = vector.extract_strided_slice %628 {offsets = [0, 0], sizes = [8, 256], strides = [1, 1]} : vector<32x256xf32> to vector<8x256xf32>
      %632 = arith.mulf %631, %630 : vector<8x256xf32>
      %633 = arith.addf %600, %632 : vector<8x256xf32>
      %634 = vector.extract_strided_slice %628 {offsets = [16, 0], sizes = [8, 256], strides = [1, 1]} : vector<32x256xf32> to vector<8x256xf32>
      %635 = arith.mulf %634, %630 : vector<8x256xf32>
      %636 = arith.addf %603, %635 : vector<8x256xf32>
      %c14_332 = arith.constant 14 : index
      %c0_333 = arith.constant 0 : index
      %c0_334 = arith.constant 0 : index
      %637 = vector.load %arg12[%c14_332, %c0_333, %c0_334] : memref<25x8x256xf32, #tpu.memory_space<vmem>>, vector<1x8x256xf32>
      %638 = vector.shape_cast %637 : vector<1x8x256xf32> to vector<8x256xf32>
      %639 = vector.extract_strided_slice %628 {offsets = [0, 0], sizes = [8, 256], strides = [1, 1]} : vector<32x256xf32> to vector<8x256xf32>
      %640 = arith.mulf %639, %638 : vector<8x256xf32>
      %641 = arith.addf %608, %640 : vector<8x256xf32>
      %642 = vector.extract_strided_slice %628 {offsets = [16, 0], sizes = [8, 256], strides = [1, 1]} : vector<32x256xf32> to vector<8x256xf32>
      %643 = arith.mulf %642, %638 : vector<8x256xf32>
      %644 = arith.addf %611, %643 : vector<8x256xf32>
      %c9_335 = arith.constant 9 : index
      %c0_336 = arith.constant 0 : index
      %c0_337 = arith.constant 0 : index
      %645 = vector.load %arg12[%c9_335, %c0_336, %c0_337] : memref<25x8x256xf32, #tpu.memory_space<vmem>>, vector<1x8x256xf32>
      %646 = vector.shape_cast %645 : vector<1x8x256xf32> to vector<8x256xf32>
      %647 = vector.extract_strided_slice %628 {offsets = [0, 0], sizes = [8, 256], strides = [1, 1]} : vector<32x256xf32> to vector<8x256xf32>
      %648 = arith.mulf %647, %646 : vector<8x256xf32>
      %649 = arith.addf %616, %648 : vector<8x256xf32>
      %650 = vector.extract_strided_slice %628 {offsets = [16, 0], sizes = [8, 256], strides = [1, 1]} : vector<32x256xf32> to vector<8x256xf32>
      %651 = arith.mulf %650, %646 : vector<8x256xf32>
      %652 = arith.addf %619, %651 : vector<8x256xf32>
      %c4_338 = arith.constant 4 : index
      %c0_339 = arith.constant 0 : index
      %c0_340 = arith.constant 0 : index
      %653 = vector.load %arg12[%c4_338, %c0_339, %c0_340] : memref<25x8x256xf32, #tpu.memory_space<vmem>>, vector<1x8x256xf32>
      %654 = vector.shape_cast %653 : vector<1x8x256xf32> to vector<8x256xf32>
      %655 = vector.extract_strided_slice %628 {offsets = [0, 0], sizes = [8, 256], strides = [1, 1]} : vector<32x256xf32> to vector<8x256xf32>
      %656 = arith.mulf %655, %654 : vector<8x256xf32>
      %657 = arith.addf %624, %656 : vector<8x256xf32>
      %658 = vector.extract_strided_slice %628 {offsets = [16, 0], sizes = [8, 256], strides = [1, 1]} : vector<32x256xf32> to vector<8x256xf32>
      %659 = arith.mulf %658, %654 : vector<8x256xf32>
      %660 = arith.addf %627, %659 : vector<8x256xf32>
      %c4_i32_341 = arith.constant 4 : i32
      %661 = arith.muli %arg14, %c4_i32_341 : i32
      %c4_i32_342 = arith.constant 4 : i32
      %662 = arith.addi %661, %c4_i32_342 : i32
      %663 = arith.index_cast %662 : i32 to index
      %c0_343 = arith.constant 0 : index
      %c0_344 = arith.constant 0 : index
      %664 = vector.load %arg11[%663, %c0_343, %c0_344] : memref<12x32x256xf32, #tpu.memory_space<vmem>>, vector<1x32x256xf32>
      %665 = vector.shape_cast %664 : vector<1x32x256xf32> to vector<32x256xf32>
      %c2_i32_345 = arith.constant 2 : i32
      %666 = tpu.dynamic_rotate %665 by %c2_i32_345 dim 0 : vector<32x256xf32>, i32 -> vector<32x256xf32>
      %c20_346 = arith.constant 20 : index
      %c0_347 = arith.constant 0 : index
      %c0_348 = arith.constant 0 : index
      %667 = vector.load %arg12[%c20_346, %c0_347, %c0_348] : memref<25x8x256xf32, #tpu.memory_space<vmem>>, vector<1x8x256xf32>
      %668 = vector.shape_cast %667 : vector<1x8x256xf32> to vector<8x256xf32>
      %669 = vector.extract_strided_slice %666 {offsets = [0, 0], sizes = [8, 256], strides = [1, 1]} : vector<32x256xf32> to vector<8x256xf32>
      %670 = arith.mulf %669, %668 : vector<8x256xf32>
      %671 = arith.addf %633, %670 : vector<8x256xf32>
      %672 = vector.extract_strided_slice %666 {offsets = [16, 0], sizes = [8, 256], strides = [1, 1]} : vector<32x256xf32> to vector<8x256xf32>
      %673 = arith.mulf %672, %668 : vector<8x256xf32>
      %674 = arith.addf %636, %673 : vector<8x256xf32>
      %c15_349 = arith.constant 15 : index
      %c0_350 = arith.constant 0 : index
      %c0_351 = arith.constant 0 : index
      %675 = vector.load %arg12[%c15_349, %c0_350, %c0_351] : memref<25x8x256xf32, #tpu.memory_space<vmem>>, vector<1x8x256xf32>
      %676 = vector.shape_cast %675 : vector<1x8x256xf32> to vector<8x256xf32>
      %677 = vector.extract_strided_slice %666 {offsets = [0, 0], sizes = [8, 256], strides = [1, 1]} : vector<32x256xf32> to vector<8x256xf32>
      %678 = arith.mulf %677, %676 : vector<8x256xf32>
      %679 = arith.addf %641, %678 : vector<8x256xf32>
      %680 = vector.extract_strided_slice %666 {offsets = [16, 0], sizes = [8, 256], strides = [1, 1]} : vector<32x256xf32> to vector<8x256xf32>
      %681 = arith.mulf %680, %676 : vector<8x256xf32>
      %682 = arith.addf %644, %681 : vector<8x256xf32>
      %c10_352 = arith.constant 10 : index
      %c0_353 = arith.constant 0 : index
      %c0_354 = arith.constant 0 : index
      %683 = vector.load %arg12[%c10_352, %c0_353, %c0_354] : memref<25x8x256xf32, #tpu.memory_space<vmem>>, vector<1x8x256xf32>
      %684 = vector.shape_cast %683 : vector<1x8x256xf32> to vector<8x256xf32>
      %685 = vector.extract_strided_slice %666 {offsets = [0, 0], sizes = [8, 256], strides = [1, 1]} : vector<32x256xf32> to vector<8x256xf32>
      %686 = arith.mulf %685, %684 : vector<8x256xf32>
      %687 = arith.addf %649, %686 : vector<8x256xf32>
      %688 = vector.extract_strided_slice %666 {offsets = [16, 0], sizes = [8, 256], strides = [1, 1]} : vector<32x256xf32> to vector<8x256xf32>
      %689 = arith.mulf %688, %684 : vector<8x256xf32>
      %690 = arith.addf %652, %689 : vector<8x256xf32>
      %c5_355 = arith.constant 5 : index
      %c0_356 = arith.constant 0 : index
      %c0_357 = arith.constant 0 : index
      %691 = vector.load %arg12[%c5_355, %c0_356, %c0_357] : memref<25x8x256xf32, #tpu.memory_space<vmem>>, vector<1x8x256xf32>
      %692 = vector.shape_cast %691 : vector<1x8x256xf32> to vector<8x256xf32>
      %693 = vector.extract_strided_slice %666 {offsets = [0, 0], sizes = [8, 256], strides = [1, 1]} : vector<32x256xf32> to vector<8x256xf32>
      %694 = arith.mulf %693, %692 : vector<8x256xf32>
      %695 = arith.addf %657, %694 : vector<8x256xf32>
      %696 = vector.extract_strided_slice %666 {offsets = [16, 0], sizes = [8, 256], strides = [1, 1]} : vector<32x256xf32> to vector<8x256xf32>
      %697 = arith.mulf %696, %692 : vector<8x256xf32>
      %698 = arith.addf %660, %697 : vector<8x256xf32>
      %c1_i32_358 = arith.constant 1 : i32
      %699 = tpu.dynamic_rotate %665 by %c1_i32_358 dim 0 : vector<32x256xf32>, i32 -> vector<32x256xf32>
      %c21_359 = arith.constant 21 : index
      %c0_360 = arith.constant 0 : index
      %c0_361 = arith.constant 0 : index
      %700 = vector.load %arg12[%c21_359, %c0_360, %c0_361] : memref<25x8x256xf32, #tpu.memory_space<vmem>>, vector<1x8x256xf32>
      %701 = vector.shape_cast %700 : vector<1x8x256xf32> to vector<8x256xf32>
      %702 = vector.extract_strided_slice %699 {offsets = [0, 0], sizes = [8, 256], strides = [1, 1]} : vector<32x256xf32> to vector<8x256xf32>
      %703 = arith.mulf %702, %701 : vector<8x256xf32>
      %704 = arith.addf %671, %703 : vector<8x256xf32>
      %705 = vector.extract_strided_slice %699 {offsets = [16, 0], sizes = [8, 256], strides = [1, 1]} : vector<32x256xf32> to vector<8x256xf32>
      %706 = arith.mulf %705, %701 : vector<8x256xf32>
      %707 = arith.addf %674, %706 : vector<8x256xf32>
      %c16_362 = arith.constant 16 : index
      %c0_363 = arith.constant 0 : index
      %c0_364 = arith.constant 0 : index
      %708 = vector.load %arg12[%c16_362, %c0_363, %c0_364] : memref<25x8x256xf32, #tpu.memory_space<vmem>>, vector<1x8x256xf32>
      %709 = vector.shape_cast %708 : vector<1x8x256xf32> to vector<8x256xf32>
      %710 = vector.extract_strided_slice %699 {offsets = [0, 0], sizes = [8, 256], strides = [1, 1]} : vector<32x256xf32> to vector<8x256xf32>
      %711 = arith.mulf %710, %709 : vector<8x256xf32>
      %712 = arith.addf %679, %711 : vector<8x256xf32>
      %713 = vector.extract_strided_slice %699 {offsets = [16, 0], sizes = [8, 256], strides = [1, 1]} : vector<32x256xf32> to vector<8x256xf32>
      %714 = arith.mulf %713, %709 : vector<8x256xf32>
      %715 = arith.addf %682, %714 : vector<8x256xf32>
      %c11_365 = arith.constant 11 : index
      %c0_366 = arith.constant 0 : index
      %c0_367 = arith.constant 0 : index
      %716 = vector.load %arg12[%c11_365, %c0_366, %c0_367] : memref<25x8x256xf32, #tpu.memory_space<vmem>>, vector<1x8x256xf32>
      %717 = vector.shape_cast %716 : vector<1x8x256xf32> to vector<8x256xf32>
      %718 = vector.extract_strided_slice %699 {offsets = [0, 0], sizes = [8, 256], strides = [1, 1]} : vector<32x256xf32> to vector<8x256xf32>
      %719 = arith.mulf %718, %717 : vector<8x256xf32>
      %720 = arith.addf %687, %719 : vector<8x256xf32>
      %721 = vector.extract_strided_slice %699 {offsets = [16, 0], sizes = [8, 256], strides = [1, 1]} : vector<32x256xf32> to vector<8x256xf32>
      %722 = arith.mulf %721, %717 : vector<8x256xf32>
      %723 = arith.addf %690, %722 : vector<8x256xf32>
      %c6_368 = arith.constant 6 : index
      %c0_369 = arith.constant 0 : index
      %c0_370 = arith.constant 0 : index
      %724 = vector.load %arg12[%c6_368, %c0_369, %c0_370] : memref<25x8x256xf32, #tpu.memory_space<vmem>>, vector<1x8x256xf32>
      %725 = vector.shape_cast %724 : vector<1x8x256xf32> to vector<8x256xf32>
      %726 = vector.extract_strided_slice %699 {offsets = [0, 0], sizes = [8, 256], strides = [1, 1]} : vector<32x256xf32> to vector<8x256xf32>
      %727 = arith.mulf %726, %725 : vector<8x256xf32>
      %728 = arith.addf %695, %727 : vector<8x256xf32>
      %729 = vector.extract_strided_slice %699 {offsets = [16, 0], sizes = [8, 256], strides = [1, 1]} : vector<32x256xf32> to vector<8x256xf32>
      %730 = arith.mulf %729, %725 : vector<8x256xf32>
      %731 = arith.addf %698, %730 : vector<8x256xf32>
      %c22_371 = arith.constant 22 : index
      %c0_372 = arith.constant 0 : index
      %c0_373 = arith.constant 0 : index
      %732 = vector.load %arg12[%c22_371, %c0_372, %c0_373] : memref<25x8x256xf32, #tpu.memory_space<vmem>>, vector<1x8x256xf32>
      %733 = vector.shape_cast %732 : vector<1x8x256xf32> to vector<8x256xf32>
      %734 = vector.extract_strided_slice %665 {offsets = [0, 0], sizes = [8, 256], strides = [1, 1]} : vector<32x256xf32> to vector<8x256xf32>
      %735 = arith.mulf %734, %733 : vector<8x256xf32>
      %736 = arith.addf %704, %735 : vector<8x256xf32>
      %737 = vector.extract_strided_slice %665 {offsets = [16, 0], sizes = [8, 256], strides = [1, 1]} : vector<32x256xf32> to vector<8x256xf32>
      %738 = arith.mulf %737, %733 : vector<8x256xf32>
      %739 = arith.addf %707, %738 : vector<8x256xf32>
      %c17_374 = arith.constant 17 : index
      %c0_375 = arith.constant 0 : index
      %c0_376 = arith.constant 0 : index
      %740 = vector.load %arg12[%c17_374, %c0_375, %c0_376] : memref<25x8x256xf32, #tpu.memory_space<vmem>>, vector<1x8x256xf32>
      %741 = vector.shape_cast %740 : vector<1x8x256xf32> to vector<8x256xf32>
      %742 = vector.extract_strided_slice %665 {offsets = [0, 0], sizes = [8, 256], strides = [1, 1]} : vector<32x256xf32> to vector<8x256xf32>
      %743 = arith.mulf %742, %741 : vector<8x256xf32>
      %744 = arith.addf %712, %743 : vector<8x256xf32>
      %745 = vector.extract_strided_slice %665 {offsets = [16, 0], sizes = [8, 256], strides = [1, 1]} : vector<32x256xf32> to vector<8x256xf32>
      %746 = arith.mulf %745, %741 : vector<8x256xf32>
      %747 = arith.addf %715, %746 : vector<8x256xf32>
      %c12_377 = arith.constant 12 : index
      %c0_378 = arith.constant 0 : index
      %c0_379 = arith.constant 0 : index
      %748 = vector.load %arg12[%c12_377, %c0_378, %c0_379] : memref<25x8x256xf32, #tpu.memory_space<vmem>>, vector<1x8x256xf32>
      %749 = vector.shape_cast %748 : vector<1x8x256xf32> to vector<8x256xf32>
      %750 = vector.extract_strided_slice %665 {offsets = [0, 0], sizes = [8, 256], strides = [1, 1]} : vector<32x256xf32> to vector<8x256xf32>
      %751 = arith.mulf %750, %749 : vector<8x256xf32>
      %752 = arith.addf %720, %751 : vector<8x256xf32>
      %753 = vector.extract_strided_slice %665 {offsets = [16, 0], sizes = [8, 256], strides = [1, 1]} : vector<32x256xf32> to vector<8x256xf32>
      %754 = arith.mulf %753, %749 : vector<8x256xf32>
      %755 = arith.addf %723, %754 : vector<8x256xf32>
      %c7_380 = arith.constant 7 : index
      %c0_381 = arith.constant 0 : index
      %c0_382 = arith.constant 0 : index
      %756 = vector.load %arg12[%c7_380, %c0_381, %c0_382] : memref<25x8x256xf32, #tpu.memory_space<vmem>>, vector<1x8x256xf32>
      %757 = vector.shape_cast %756 : vector<1x8x256xf32> to vector<8x256xf32>
      %758 = vector.extract_strided_slice %665 {offsets = [0, 0], sizes = [8, 256], strides = [1, 1]} : vector<32x256xf32> to vector<8x256xf32>
      %759 = arith.mulf %758, %757 : vector<8x256xf32>
      %760 = arith.addf %728, %759 : vector<8x256xf32>
      %761 = vector.extract_strided_slice %665 {offsets = [16, 0], sizes = [8, 256], strides = [1, 1]} : vector<32x256xf32> to vector<8x256xf32>
      %762 = arith.mulf %761, %757 : vector<8x256xf32>
      %763 = arith.addf %731, %762 : vector<8x256xf32>
      %c31_i32_383 = arith.constant 31 : i32
      %764 = tpu.dynamic_rotate %665 by %c31_i32_383 dim 0 : vector<32x256xf32>, i32 -> vector<32x256xf32>
      %c23_384 = arith.constant 23 : index
      %c0_385 = arith.constant 0 : index
      %c0_386 = arith.constant 0 : index
      %765 = vector.load %arg12[%c23_384, %c0_385, %c0_386] : memref<25x8x256xf32, #tpu.memory_space<vmem>>, vector<1x8x256xf32>
      %766 = vector.shape_cast %765 : vector<1x8x256xf32> to vector<8x256xf32>
      %767 = vector.extract_strided_slice %764 {offsets = [0, 0], sizes = [8, 256], strides = [1, 1]} : vector<32x256xf32> to vector<8x256xf32>
      %768 = arith.mulf %767, %766 : vector<8x256xf32>
      %769 = arith.addf %736, %768 : vector<8x256xf32>
      %770 = vector.extract_strided_slice %764 {offsets = [16, 0], sizes = [8, 256], strides = [1, 1]} : vector<32x256xf32> to vector<8x256xf32>
      %771 = arith.mulf %770, %766 : vector<8x256xf32>
      %772 = arith.addf %739, %771 : vector<8x256xf32>
      %c18_387 = arith.constant 18 : index
      %c0_388 = arith.constant 0 : index
      %c0_389 = arith.constant 0 : index
      %773 = vector.load %arg12[%c18_387, %c0_388, %c0_389] : memref<25x8x256xf32, #tpu.memory_space<vmem>>, vector<1x8x256xf32>
      %774 = vector.shape_cast %773 : vector<1x8x256xf32> to vector<8x256xf32>
      %775 = vector.extract_strided_slice %764 {offsets = [0, 0], sizes = [8, 256], strides = [1, 1]} : vector<32x256xf32> to vector<8x256xf32>
      %776 = arith.mulf %775, %774 : vector<8x256xf32>
      %777 = arith.addf %744, %776 : vector<8x256xf32>
      %778 = vector.extract_strided_slice %764 {offsets = [16, 0], sizes = [8, 256], strides = [1, 1]} : vector<32x256xf32> to vector<8x256xf32>
      %779 = arith.mulf %778, %774 : vector<8x256xf32>
      %780 = arith.addf %747, %779 : vector<8x256xf32>
      %c13_390 = arith.constant 13 : index
      %c0_391 = arith.constant 0 : index
      %c0_392 = arith.constant 0 : index
      %781 = vector.load %arg12[%c13_390, %c0_391, %c0_392] : memref<25x8x256xf32, #tpu.memory_space<vmem>>, vector<1x8x256xf32>
      %782 = vector.shape_cast %781 : vector<1x8x256xf32> to vector<8x256xf32>
      %783 = vector.extract_strided_slice %764 {offsets = [0, 0], sizes = [8, 256], strides = [1, 1]} : vector<32x256xf32> to vector<8x256xf32>
      %784 = arith.mulf %783, %782 : vector<8x256xf32>
      %785 = arith.addf %752, %784 : vector<8x256xf32>
      %786 = vector.extract_strided_slice %764 {offsets = [16, 0], sizes = [8, 256], strides = [1, 1]} : vector<32x256xf32> to vector<8x256xf32>
      %787 = arith.mulf %786, %782 : vector<8x256xf32>
      %788 = arith.addf %755, %787 : vector<8x256xf32>
      %c8_393 = arith.constant 8 : index
      %c0_394 = arith.constant 0 : index
      %c0_395 = arith.constant 0 : index
      %789 = vector.load %arg12[%c8_393, %c0_394, %c0_395] : memref<25x8x256xf32, #tpu.memory_space<vmem>>, vector<1x8x256xf32>
      %790 = vector.shape_cast %789 : vector<1x8x256xf32> to vector<8x256xf32>
      %791 = vector.extract_strided_slice %764 {offsets = [0, 0], sizes = [8, 256], strides = [1, 1]} : vector<32x256xf32> to vector<8x256xf32>
      %792 = arith.mulf %791, %790 : vector<8x256xf32>
      %793 = arith.addf %760, %792 : vector<8x256xf32>
      %794 = vector.extract_strided_slice %764 {offsets = [16, 0], sizes = [8, 256], strides = [1, 1]} : vector<32x256xf32> to vector<8x256xf32>
      %795 = arith.mulf %794, %790 : vector<8x256xf32>
      %796 = arith.addf %763, %795 : vector<8x256xf32>
      %c30_i32_396 = arith.constant 30 : i32
      %797 = tpu.dynamic_rotate %665 by %c30_i32_396 dim 0 : vector<32x256xf32>, i32 -> vector<32x256xf32>
      %c24_397 = arith.constant 24 : index
      %c0_398 = arith.constant 0 : index
      %c0_399 = arith.constant 0 : index
      %798 = vector.load %arg12[%c24_397, %c0_398, %c0_399] : memref<25x8x256xf32, #tpu.memory_space<vmem>>, vector<1x8x256xf32>
      %799 = vector.shape_cast %798 : vector<1x8x256xf32> to vector<8x256xf32>
      %800 = vector.extract_strided_slice %797 {offsets = [0, 0], sizes = [8, 256], strides = [1, 1]} : vector<32x256xf32> to vector<8x256xf32>
      %801 = arith.mulf %800, %799 : vector<8x256xf32>
      %802 = arith.addf %769, %801 : vector<8x256xf32>
      %803 = vector.extract_strided_slice %797 {offsets = [16, 0], sizes = [8, 256], strides = [1, 1]} : vector<32x256xf32> to vector<8x256xf32>
      %804 = arith.mulf %803, %799 : vector<8x256xf32>
      %805 = arith.addf %772, %804 : vector<8x256xf32>
      %c19_400 = arith.constant 19 : index
      %c0_401 = arith.constant 0 : index
      %c0_402 = arith.constant 0 : index
      %806 = vector.load %arg12[%c19_400, %c0_401, %c0_402] : memref<25x8x256xf32, #tpu.memory_space<vmem>>, vector<1x8x256xf32>
      %807 = vector.shape_cast %806 : vector<1x8x256xf32> to vector<8x256xf32>
      %808 = vector.extract_strided_slice %797 {offsets = [0, 0], sizes = [8, 256], strides = [1, 1]} : vector<32x256xf32> to vector<8x256xf32>
      %809 = arith.mulf %808, %807 : vector<8x256xf32>
      %810 = arith.addf %777, %809 : vector<8x256xf32>
      %811 = vector.extract_strided_slice %797 {offsets = [16, 0], sizes = [8, 256], strides = [1, 1]} : vector<32x256xf32> to vector<8x256xf32>
      %812 = arith.mulf %811, %807 : vector<8x256xf32>
      %813 = arith.addf %780, %812 : vector<8x256xf32>
      %c14_403 = arith.constant 14 : index
      %c0_404 = arith.constant 0 : index
      %c0_405 = arith.constant 0 : index
      %814 = vector.load %arg12[%c14_403, %c0_404, %c0_405] : memref<25x8x256xf32, #tpu.memory_space<vmem>>, vector<1x8x256xf32>
      %815 = vector.shape_cast %814 : vector<1x8x256xf32> to vector<8x256xf32>
      %816 = vector.extract_strided_slice %797 {offsets = [0, 0], sizes = [8, 256], strides = [1, 1]} : vector<32x256xf32> to vector<8x256xf32>
      %817 = arith.mulf %816, %815 : vector<8x256xf32>
      %818 = arith.addf %785, %817 : vector<8x256xf32>
      %819 = vector.extract_strided_slice %797 {offsets = [16, 0], sizes = [8, 256], strides = [1, 1]} : vector<32x256xf32> to vector<8x256xf32>
      %820 = arith.mulf %819, %815 : vector<8x256xf32>
      %821 = arith.addf %788, %820 : vector<8x256xf32>
      %c9_406 = arith.constant 9 : index
      %c0_407 = arith.constant 0 : index
      %c0_408 = arith.constant 0 : index
      %822 = vector.load %arg12[%c9_406, %c0_407, %c0_408] : memref<25x8x256xf32, #tpu.memory_space<vmem>>, vector<1x8x256xf32>
      %823 = vector.shape_cast %822 : vector<1x8x256xf32> to vector<8x256xf32>
      %824 = vector.extract_strided_slice %797 {offsets = [0, 0], sizes = [8, 256], strides = [1, 1]} : vector<32x256xf32> to vector<8x256xf32>
      %825 = arith.mulf %824, %823 : vector<8x256xf32>
      %826 = arith.addf %793, %825 : vector<8x256xf32>
      %827 = vector.extract_strided_slice %797 {offsets = [16, 0], sizes = [8, 256], strides = [1, 1]} : vector<32x256xf32> to vector<8x256xf32>
      %828 = arith.mulf %827, %823 : vector<8x256xf32>
      %829 = arith.addf %796, %828 : vector<8x256xf32>
      %c4_i32_409 = arith.constant 4 : i32
      %830 = arith.muli %arg14, %c4_i32_409 : i32
      %c5_i32 = arith.constant 5 : i32
      %831 = arith.addi %830, %c5_i32 : i32
      %832 = arith.index_cast %831 : i32 to index
      %c0_410 = arith.constant 0 : index
      %c0_411 = arith.constant 0 : index
      %833 = vector.load %arg11[%832, %c0_410, %c0_411] : memref<12x32x256xf32, #tpu.memory_space<vmem>>, vector<1x32x256xf32>
      %834 = vector.shape_cast %833 : vector<1x32x256xf32> to vector<32x256xf32>
      %c2_i32_412 = arith.constant 2 : i32
      %835 = tpu.dynamic_rotate %834 by %c2_i32_412 dim 0 : vector<32x256xf32>, i32 -> vector<32x256xf32>
      %c20_413 = arith.constant 20 : index
      %c0_414 = arith.constant 0 : index
      %c0_415 = arith.constant 0 : index
      %836 = vector.load %arg12[%c20_413, %c0_414, %c0_415] : memref<25x8x256xf32, #tpu.memory_space<vmem>>, vector<1x8x256xf32>
      %837 = vector.shape_cast %836 : vector<1x8x256xf32> to vector<8x256xf32>
      %838 = vector.extract_strided_slice %835 {offsets = [0, 0], sizes = [8, 256], strides = [1, 1]} : vector<32x256xf32> to vector<8x256xf32>
      %839 = arith.mulf %838, %837 : vector<8x256xf32>
      %840 = arith.addf %810, %839 : vector<8x256xf32>
      %841 = vector.extract_strided_slice %835 {offsets = [16, 0], sizes = [8, 256], strides = [1, 1]} : vector<32x256xf32> to vector<8x256xf32>
      %842 = arith.mulf %841, %837 : vector<8x256xf32>
      %843 = arith.addf %813, %842 : vector<8x256xf32>
      %c15_416 = arith.constant 15 : index
      %c0_417 = arith.constant 0 : index
      %c0_418 = arith.constant 0 : index
      %844 = vector.load %arg12[%c15_416, %c0_417, %c0_418] : memref<25x8x256xf32, #tpu.memory_space<vmem>>, vector<1x8x256xf32>
      %845 = vector.shape_cast %844 : vector<1x8x256xf32> to vector<8x256xf32>
      %846 = vector.extract_strided_slice %835 {offsets = [0, 0], sizes = [8, 256], strides = [1, 1]} : vector<32x256xf32> to vector<8x256xf32>
      %847 = arith.mulf %846, %845 : vector<8x256xf32>
      %848 = arith.addf %818, %847 : vector<8x256xf32>
      %849 = vector.extract_strided_slice %835 {offsets = [16, 0], sizes = [8, 256], strides = [1, 1]} : vector<32x256xf32> to vector<8x256xf32>
      %850 = arith.mulf %849, %845 : vector<8x256xf32>
      %851 = arith.addf %821, %850 : vector<8x256xf32>
      %c10_419 = arith.constant 10 : index
      %c0_420 = arith.constant 0 : index
      %c0_421 = arith.constant 0 : index
      %852 = vector.load %arg12[%c10_419, %c0_420, %c0_421] : memref<25x8x256xf32, #tpu.memory_space<vmem>>, vector<1x8x256xf32>
      %853 = vector.shape_cast %852 : vector<1x8x256xf32> to vector<8x256xf32>
      %854 = vector.extract_strided_slice %835 {offsets = [0, 0], sizes = [8, 256], strides = [1, 1]} : vector<32x256xf32> to vector<8x256xf32>
      %855 = arith.mulf %854, %853 : vector<8x256xf32>
      %856 = arith.addf %826, %855 : vector<8x256xf32>
      %857 = vector.extract_strided_slice %835 {offsets = [16, 0], sizes = [8, 256], strides = [1, 1]} : vector<32x256xf32> to vector<8x256xf32>
      %858 = arith.mulf %857, %853 : vector<8x256xf32>
      %859 = arith.addf %829, %858 : vector<8x256xf32>
      %c1_i32_422 = arith.constant 1 : i32
      %860 = tpu.dynamic_rotate %834 by %c1_i32_422 dim 0 : vector<32x256xf32>, i32 -> vector<32x256xf32>
      %c21_423 = arith.constant 21 : index
      %c0_424 = arith.constant 0 : index
      %c0_425 = arith.constant 0 : index
      %861 = vector.load %arg12[%c21_423, %c0_424, %c0_425] : memref<25x8x256xf32, #tpu.memory_space<vmem>>, vector<1x8x256xf32>
      %862 = vector.shape_cast %861 : vector<1x8x256xf32> to vector<8x256xf32>
      %863 = vector.extract_strided_slice %860 {offsets = [0, 0], sizes = [8, 256], strides = [1, 1]} : vector<32x256xf32> to vector<8x256xf32>
      %864 = arith.mulf %863, %862 : vector<8x256xf32>
      %865 = arith.addf %840, %864 : vector<8x256xf32>
      %866 = vector.extract_strided_slice %860 {offsets = [16, 0], sizes = [8, 256], strides = [1, 1]} : vector<32x256xf32> to vector<8x256xf32>
      %867 = arith.mulf %866, %862 : vector<8x256xf32>
      %868 = arith.addf %843, %867 : vector<8x256xf32>
      %c16_426 = arith.constant 16 : index
      %c0_427 = arith.constant 0 : index
      %c0_428 = arith.constant 0 : index
      %869 = vector.load %arg12[%c16_426, %c0_427, %c0_428] : memref<25x8x256xf32, #tpu.memory_space<vmem>>, vector<1x8x256xf32>
      %870 = vector.shape_cast %869 : vector<1x8x256xf32> to vector<8x256xf32>
      %871 = vector.extract_strided_slice %860 {offsets = [0, 0], sizes = [8, 256], strides = [1, 1]} : vector<32x256xf32> to vector<8x256xf32>
      %872 = arith.mulf %871, %870 : vector<8x256xf32>
      %873 = arith.addf %848, %872 : vector<8x256xf32>
      %874 = vector.extract_strided_slice %860 {offsets = [16, 0], sizes = [8, 256], strides = [1, 1]} : vector<32x256xf32> to vector<8x256xf32>
      %875 = arith.mulf %874, %870 : vector<8x256xf32>
      %876 = arith.addf %851, %875 : vector<8x256xf32>
      %c11_429 = arith.constant 11 : index
      %c0_430 = arith.constant 0 : index
      %c0_431 = arith.constant 0 : index
      %877 = vector.load %arg12[%c11_429, %c0_430, %c0_431] : memref<25x8x256xf32, #tpu.memory_space<vmem>>, vector<1x8x256xf32>
      %878 = vector.shape_cast %877 : vector<1x8x256xf32> to vector<8x256xf32>
      %879 = vector.extract_strided_slice %860 {offsets = [0, 0], sizes = [8, 256], strides = [1, 1]} : vector<32x256xf32> to vector<8x256xf32>
      %880 = arith.mulf %879, %878 : vector<8x256xf32>
      %881 = arith.addf %856, %880 : vector<8x256xf32>
      %882 = vector.extract_strided_slice %860 {offsets = [16, 0], sizes = [8, 256], strides = [1, 1]} : vector<32x256xf32> to vector<8x256xf32>
      %883 = arith.mulf %882, %878 : vector<8x256xf32>
      %884 = arith.addf %859, %883 : vector<8x256xf32>
      %c22_432 = arith.constant 22 : index
      %c0_433 = arith.constant 0 : index
      %c0_434 = arith.constant 0 : index
      %885 = vector.load %arg12[%c22_432, %c0_433, %c0_434] : memref<25x8x256xf32, #tpu.memory_space<vmem>>, vector<1x8x256xf32>
      %886 = vector.shape_cast %885 : vector<1x8x256xf32> to vector<8x256xf32>
      %887 = vector.extract_strided_slice %834 {offsets = [0, 0], sizes = [8, 256], strides = [1, 1]} : vector<32x256xf32> to vector<8x256xf32>
      %888 = arith.mulf %887, %886 : vector<8x256xf32>
      %889 = arith.addf %865, %888 : vector<8x256xf32>
      %890 = vector.extract_strided_slice %834 {offsets = [16, 0], sizes = [8, 256], strides = [1, 1]} : vector<32x256xf32> to vector<8x256xf32>
      %891 = arith.mulf %890, %886 : vector<8x256xf32>
      %892 = arith.addf %868, %891 : vector<8x256xf32>
      %c17_435 = arith.constant 17 : index
      %c0_436 = arith.constant 0 : index
      %c0_437 = arith.constant 0 : index
      %893 = vector.load %arg12[%c17_435, %c0_436, %c0_437] : memref<25x8x256xf32, #tpu.memory_space<vmem>>, vector<1x8x256xf32>
      %894 = vector.shape_cast %893 : vector<1x8x256xf32> to vector<8x256xf32>
      %895 = vector.extract_strided_slice %834 {offsets = [0, 0], sizes = [8, 256], strides = [1, 1]} : vector<32x256xf32> to vector<8x256xf32>
      %896 = arith.mulf %895, %894 : vector<8x256xf32>
      %897 = arith.addf %873, %896 : vector<8x256xf32>
      %898 = vector.extract_strided_slice %834 {offsets = [16, 0], sizes = [8, 256], strides = [1, 1]} : vector<32x256xf32> to vector<8x256xf32>
      %899 = arith.mulf %898, %894 : vector<8x256xf32>
      %900 = arith.addf %876, %899 : vector<8x256xf32>
      %c12_438 = arith.constant 12 : index
      %c0_439 = arith.constant 0 : index
      %c0_440 = arith.constant 0 : index
      %901 = vector.load %arg12[%c12_438, %c0_439, %c0_440] : memref<25x8x256xf32, #tpu.memory_space<vmem>>, vector<1x8x256xf32>
      %902 = vector.shape_cast %901 : vector<1x8x256xf32> to vector<8x256xf32>
      %903 = vector.extract_strided_slice %834 {offsets = [0, 0], sizes = [8, 256], strides = [1, 1]} : vector<32x256xf32> to vector<8x256xf32>
      %904 = arith.mulf %903, %902 : vector<8x256xf32>
      %905 = arith.addf %881, %904 : vector<8x256xf32>
      %906 = vector.extract_strided_slice %834 {offsets = [16, 0], sizes = [8, 256], strides = [1, 1]} : vector<32x256xf32> to vector<8x256xf32>
      %907 = arith.mulf %906, %902 : vector<8x256xf32>
      %908 = arith.addf %884, %907 : vector<8x256xf32>
      %c31_i32_441 = arith.constant 31 : i32
      %909 = tpu.dynamic_rotate %834 by %c31_i32_441 dim 0 : vector<32x256xf32>, i32 -> vector<32x256xf32>
      %c23_442 = arith.constant 23 : index
      %c0_443 = arith.constant 0 : index
      %c0_444 = arith.constant 0 : index
      %910 = vector.load %arg12[%c23_442, %c0_443, %c0_444] : memref<25x8x256xf32, #tpu.memory_space<vmem>>, vector<1x8x256xf32>
      %911 = vector.shape_cast %910 : vector<1x8x256xf32> to vector<8x256xf32>
      %912 = vector.extract_strided_slice %909 {offsets = [0, 0], sizes = [8, 256], strides = [1, 1]} : vector<32x256xf32> to vector<8x256xf32>
      %913 = arith.mulf %912, %911 : vector<8x256xf32>
      %914 = arith.addf %889, %913 : vector<8x256xf32>
      %915 = vector.extract_strided_slice %909 {offsets = [16, 0], sizes = [8, 256], strides = [1, 1]} : vector<32x256xf32> to vector<8x256xf32>
      %916 = arith.mulf %915, %911 : vector<8x256xf32>
      %917 = arith.addf %892, %916 : vector<8x256xf32>
      %c18_445 = arith.constant 18 : index
      %c0_446 = arith.constant 0 : index
      %c0_447 = arith.constant 0 : index
      %918 = vector.load %arg12[%c18_445, %c0_446, %c0_447] : memref<25x8x256xf32, #tpu.memory_space<vmem>>, vector<1x8x256xf32>
      %919 = vector.shape_cast %918 : vector<1x8x256xf32> to vector<8x256xf32>
      %920 = vector.extract_strided_slice %909 {offsets = [0, 0], sizes = [8, 256], strides = [1, 1]} : vector<32x256xf32> to vector<8x256xf32>
      %921 = arith.mulf %920, %919 : vector<8x256xf32>
      %922 = arith.addf %897, %921 : vector<8x256xf32>
      %923 = vector.extract_strided_slice %909 {offsets = [16, 0], sizes = [8, 256], strides = [1, 1]} : vector<32x256xf32> to vector<8x256xf32>
      %924 = arith.mulf %923, %919 : vector<8x256xf32>
      %925 = arith.addf %900, %924 : vector<8x256xf32>
      %c13_448 = arith.constant 13 : index
      %c0_449 = arith.constant 0 : index
      %c0_450 = arith.constant 0 : index
      %926 = vector.load %arg12[%c13_448, %c0_449, %c0_450] : memref<25x8x256xf32, #tpu.memory_space<vmem>>, vector<1x8x256xf32>
      %927 = vector.shape_cast %926 : vector<1x8x256xf32> to vector<8x256xf32>
      %928 = vector.extract_strided_slice %909 {offsets = [0, 0], sizes = [8, 256], strides = [1, 1]} : vector<32x256xf32> to vector<8x256xf32>
      %929 = arith.mulf %928, %927 : vector<8x256xf32>
      %930 = arith.addf %905, %929 : vector<8x256xf32>
      %931 = vector.extract_strided_slice %909 {offsets = [16, 0], sizes = [8, 256], strides = [1, 1]} : vector<32x256xf32> to vector<8x256xf32>
      %932 = arith.mulf %931, %927 : vector<8x256xf32>
      %933 = arith.addf %908, %932 : vector<8x256xf32>
      %c30_i32_451 = arith.constant 30 : i32
      %934 = tpu.dynamic_rotate %834 by %c30_i32_451 dim 0 : vector<32x256xf32>, i32 -> vector<32x256xf32>
      %c24_452 = arith.constant 24 : index
      %c0_453 = arith.constant 0 : index
      %c0_454 = arith.constant 0 : index
      %935 = vector.load %arg12[%c24_452, %c0_453, %c0_454] : memref<25x8x256xf32, #tpu.memory_space<vmem>>, vector<1x8x256xf32>
      %936 = vector.shape_cast %935 : vector<1x8x256xf32> to vector<8x256xf32>
      %937 = vector.extract_strided_slice %934 {offsets = [0, 0], sizes = [8, 256], strides = [1, 1]} : vector<32x256xf32> to vector<8x256xf32>
      %938 = arith.mulf %937, %936 : vector<8x256xf32>
      %939 = arith.addf %914, %938 : vector<8x256xf32>
      %940 = vector.extract_strided_slice %934 {offsets = [16, 0], sizes = [8, 256], strides = [1, 1]} : vector<32x256xf32> to vector<8x256xf32>
      %941 = arith.mulf %940, %936 : vector<8x256xf32>
      %942 = arith.addf %917, %941 : vector<8x256xf32>
      %c19_455 = arith.constant 19 : index
      %c0_456 = arith.constant 0 : index
      %c0_457 = arith.constant 0 : index
      %943 = vector.load %arg12[%c19_455, %c0_456, %c0_457] : memref<25x8x256xf32, #tpu.memory_space<vmem>>, vector<1x8x256xf32>
      %944 = vector.shape_cast %943 : vector<1x8x256xf32> to vector<8x256xf32>
      %945 = vector.extract_strided_slice %934 {offsets = [0, 0], sizes = [8, 256], strides = [1, 1]} : vector<32x256xf32> to vector<8x256xf32>
      %946 = arith.mulf %945, %944 : vector<8x256xf32>
      %947 = arith.addf %922, %946 : vector<8x256xf32>
      %948 = vector.extract_strided_slice %934 {offsets = [16, 0], sizes = [8, 256], strides = [1, 1]} : vector<32x256xf32> to vector<8x256xf32>
      %949 = arith.mulf %948, %944 : vector<8x256xf32>
      %950 = arith.addf %925, %949 : vector<8x256xf32>
      %c14_458 = arith.constant 14 : index
      %c0_459 = arith.constant 0 : index
      %c0_460 = arith.constant 0 : index
      %951 = vector.load %arg12[%c14_458, %c0_459, %c0_460] : memref<25x8x256xf32, #tpu.memory_space<vmem>>, vector<1x8x256xf32>
      %952 = vector.shape_cast %951 : vector<1x8x256xf32> to vector<8x256xf32>
      %953 = vector.extract_strided_slice %934 {offsets = [0, 0], sizes = [8, 256], strides = [1, 1]} : vector<32x256xf32> to vector<8x256xf32>
      %954 = arith.mulf %953, %952 : vector<8x256xf32>
      %955 = arith.addf %930, %954 : vector<8x256xf32>
      %956 = vector.extract_strided_slice %934 {offsets = [16, 0], sizes = [8, 256], strides = [1, 1]} : vector<32x256xf32> to vector<8x256xf32>
      %957 = arith.mulf %956, %952 : vector<8x256xf32>
      %958 = arith.addf %933, %957 : vector<8x256xf32>
      %c4_i32_461 = arith.constant 4 : i32
      %959 = arith.muli %arg14, %c4_i32_461 : i32
      %c6_i32 = arith.constant 6 : i32
      %960 = arith.addi %959, %c6_i32 : i32
      %961 = arith.index_cast %960 : i32 to index
      %c0_462 = arith.constant 0 : index
      %c0_463 = arith.constant 0 : index
      %962 = vector.load %arg11[%961, %c0_462, %c0_463] : memref<12x32x256xf32, #tpu.memory_space<vmem>>, vector<1x32x256xf32>
      %963 = vector.shape_cast %962 : vector<1x32x256xf32> to vector<32x256xf32>
      %c2_i32_464 = arith.constant 2 : i32
      %964 = tpu.dynamic_rotate %963 by %c2_i32_464 dim 0 : vector<32x256xf32>, i32 -> vector<32x256xf32>
      %c20_465 = arith.constant 20 : index
      %c0_466 = arith.constant 0 : index
      %c0_467 = arith.constant 0 : index
      %965 = vector.load %arg12[%c20_465, %c0_466, %c0_467] : memref<25x8x256xf32, #tpu.memory_space<vmem>>, vector<1x8x256xf32>
      %966 = vector.shape_cast %965 : vector<1x8x256xf32> to vector<8x256xf32>
      %967 = vector.extract_strided_slice %964 {offsets = [0, 0], sizes = [8, 256], strides = [1, 1]} : vector<32x256xf32> to vector<8x256xf32>
      %968 = arith.mulf %967, %966 : vector<8x256xf32>
      %969 = arith.addf %947, %968 : vector<8x256xf32>
      %970 = vector.extract_strided_slice %964 {offsets = [16, 0], sizes = [8, 256], strides = [1, 1]} : vector<32x256xf32> to vector<8x256xf32>
      %971 = arith.mulf %970, %966 : vector<8x256xf32>
      %972 = arith.addf %950, %971 : vector<8x256xf32>
      %c15_468 = arith.constant 15 : index
      %c0_469 = arith.constant 0 : index
      %c0_470 = arith.constant 0 : index
      %973 = vector.load %arg12[%c15_468, %c0_469, %c0_470] : memref<25x8x256xf32, #tpu.memory_space<vmem>>, vector<1x8x256xf32>
      %974 = vector.shape_cast %973 : vector<1x8x256xf32> to vector<8x256xf32>
      %975 = vector.extract_strided_slice %964 {offsets = [0, 0], sizes = [8, 256], strides = [1, 1]} : vector<32x256xf32> to vector<8x256xf32>
      %976 = arith.mulf %975, %974 : vector<8x256xf32>
      %977 = arith.addf %955, %976 : vector<8x256xf32>
      %978 = vector.extract_strided_slice %964 {offsets = [16, 0], sizes = [8, 256], strides = [1, 1]} : vector<32x256xf32> to vector<8x256xf32>
      %979 = arith.mulf %978, %974 : vector<8x256xf32>
      %980 = arith.addf %958, %979 : vector<8x256xf32>
      %c1_i32_471 = arith.constant 1 : i32
      %981 = tpu.dynamic_rotate %963 by %c1_i32_471 dim 0 : vector<32x256xf32>, i32 -> vector<32x256xf32>
      %c21_472 = arith.constant 21 : index
      %c0_473 = arith.constant 0 : index
      %c0_474 = arith.constant 0 : index
      %982 = vector.load %arg12[%c21_472, %c0_473, %c0_474] : memref<25x8x256xf32, #tpu.memory_space<vmem>>, vector<1x8x256xf32>
      %983 = vector.shape_cast %982 : vector<1x8x256xf32> to vector<8x256xf32>
      %984 = vector.extract_strided_slice %981 {offsets = [0, 0], sizes = [8, 256], strides = [1, 1]} : vector<32x256xf32> to vector<8x256xf32>
      %985 = arith.mulf %984, %983 : vector<8x256xf32>
      %986 = arith.addf %969, %985 : vector<8x256xf32>
      %987 = vector.extract_strided_slice %981 {offsets = [16, 0], sizes = [8, 256], strides = [1, 1]} : vector<32x256xf32> to vector<8x256xf32>
      %988 = arith.mulf %987, %983 : vector<8x256xf32>
      %989 = arith.addf %972, %988 : vector<8x256xf32>
      %c16_475 = arith.constant 16 : index
      %c0_476 = arith.constant 0 : index
      %c0_477 = arith.constant 0 : index
      %990 = vector.load %arg12[%c16_475, %c0_476, %c0_477] : memref<25x8x256xf32, #tpu.memory_space<vmem>>, vector<1x8x256xf32>
      %991 = vector.shape_cast %990 : vector<1x8x256xf32> to vector<8x256xf32>
      %992 = vector.extract_strided_slice %981 {offsets = [0, 0], sizes = [8, 256], strides = [1, 1]} : vector<32x256xf32> to vector<8x256xf32>
      %993 = arith.mulf %992, %991 : vector<8x256xf32>
      %994 = arith.addf %977, %993 : vector<8x256xf32>
      %995 = vector.extract_strided_slice %981 {offsets = [16, 0], sizes = [8, 256], strides = [1, 1]} : vector<32x256xf32> to vector<8x256xf32>
      %996 = arith.mulf %995, %991 : vector<8x256xf32>
      %997 = arith.addf %980, %996 : vector<8x256xf32>
      %c22_478 = arith.constant 22 : index
      %c0_479 = arith.constant 0 : index
      %c0_480 = arith.constant 0 : index
      %998 = vector.load %arg12[%c22_478, %c0_479, %c0_480] : memref<25x8x256xf32, #tpu.memory_space<vmem>>, vector<1x8x256xf32>
      %999 = vector.shape_cast %998 : vector<1x8x256xf32> to vector<8x256xf32>
      %1000 = vector.extract_strided_slice %963 {offsets = [0, 0], sizes = [8, 256], strides = [1, 1]} : vector<32x256xf32> to vector<8x256xf32>
      %1001 = arith.mulf %1000, %999 : vector<8x256xf32>
      %1002 = arith.addf %986, %1001 : vector<8x256xf32>
      %1003 = vector.extract_strided_slice %963 {offsets = [16, 0], sizes = [8, 256], strides = [1, 1]} : vector<32x256xf32> to vector<8x256xf32>
      %1004 = arith.mulf %1003, %999 : vector<8x256xf32>
      %1005 = arith.addf %989, %1004 : vector<8x256xf32>
      %c17_481 = arith.constant 17 : index
      %c0_482 = arith.constant 0 : index
      %c0_483 = arith.constant 0 : index
      %1006 = vector.load %arg12[%c17_481, %c0_482, %c0_483] : memref<25x8x256xf32, #tpu.memory_space<vmem>>, vector<1x8x256xf32>
      %1007 = vector.shape_cast %1006 : vector<1x8x256xf32> to vector<8x256xf32>
      %1008 = vector.extract_strided_slice %963 {offsets = [0, 0], sizes = [8, 256], strides = [1, 1]} : vector<32x256xf32> to vector<8x256xf32>
      %1009 = arith.mulf %1008, %1007 : vector<8x256xf32>
      %1010 = arith.addf %994, %1009 : vector<8x256xf32>
      %1011 = vector.extract_strided_slice %963 {offsets = [16, 0], sizes = [8, 256], strides = [1, 1]} : vector<32x256xf32> to vector<8x256xf32>
      %1012 = arith.mulf %1011, %1007 : vector<8x256xf32>
      %1013 = arith.addf %997, %1012 : vector<8x256xf32>
      %c31_i32_484 = arith.constant 31 : i32
      %1014 = tpu.dynamic_rotate %963 by %c31_i32_484 dim 0 : vector<32x256xf32>, i32 -> vector<32x256xf32>
      %c23_485 = arith.constant 23 : index
      %c0_486 = arith.constant 0 : index
      %c0_487 = arith.constant 0 : index
      %1015 = vector.load %arg12[%c23_485, %c0_486, %c0_487] : memref<25x8x256xf32, #tpu.memory_space<vmem>>, vector<1x8x256xf32>
      %1016 = vector.shape_cast %1015 : vector<1x8x256xf32> to vector<8x256xf32>
      %1017 = vector.extract_strided_slice %1014 {offsets = [0, 0], sizes = [8, 256], strides = [1, 1]} : vector<32x256xf32> to vector<8x256xf32>
      %1018 = arith.mulf %1017, %1016 : vector<8x256xf32>
      %1019 = arith.addf %1002, %1018 : vector<8x256xf32>
      %1020 = vector.extract_strided_slice %1014 {offsets = [16, 0], sizes = [8, 256], strides = [1, 1]} : vector<32x256xf32> to vector<8x256xf32>
      %1021 = arith.mulf %1020, %1016 : vector<8x256xf32>
      %1022 = arith.addf %1005, %1021 : vector<8x256xf32>
      %c18_488 = arith.constant 18 : index
      %c0_489 = arith.constant 0 : index
      %c0_490 = arith.constant 0 : index
      %1023 = vector.load %arg12[%c18_488, %c0_489, %c0_490] : memref<25x8x256xf32, #tpu.memory_space<vmem>>, vector<1x8x256xf32>
      %1024 = vector.shape_cast %1023 : vector<1x8x256xf32> to vector<8x256xf32>
      %1025 = vector.extract_strided_slice %1014 {offsets = [0, 0], sizes = [8, 256], strides = [1, 1]} : vector<32x256xf32> to vector<8x256xf32>
      %1026 = arith.mulf %1025, %1024 : vector<8x256xf32>
      %1027 = arith.addf %1010, %1026 : vector<8x256xf32>
      %1028 = vector.extract_strided_slice %1014 {offsets = [16, 0], sizes = [8, 256], strides = [1, 1]} : vector<32x256xf32> to vector<8x256xf32>
      %1029 = arith.mulf %1028, %1024 : vector<8x256xf32>
      %1030 = arith.addf %1013, %1029 : vector<8x256xf32>
      %c30_i32_491 = arith.constant 30 : i32
      %1031 = tpu.dynamic_rotate %963 by %c30_i32_491 dim 0 : vector<32x256xf32>, i32 -> vector<32x256xf32>
      %c24_492 = arith.constant 24 : index
      %c0_493 = arith.constant 0 : index
      %c0_494 = arith.constant 0 : index
      %1032 = vector.load %arg12[%c24_492, %c0_493, %c0_494] : memref<25x8x256xf32, #tpu.memory_space<vmem>>, vector<1x8x256xf32>
      %1033 = vector.shape_cast %1032 : vector<1x8x256xf32> to vector<8x256xf32>
      %1034 = vector.extract_strided_slice %1031 {offsets = [0, 0], sizes = [8, 256], strides = [1, 1]} : vector<32x256xf32> to vector<8x256xf32>
      %1035 = arith.mulf %1034, %1033 : vector<8x256xf32>
      %1036 = arith.addf %1019, %1035 : vector<8x256xf32>
      %1037 = vector.extract_strided_slice %1031 {offsets = [16, 0], sizes = [8, 256], strides = [1, 1]} : vector<32x256xf32> to vector<8x256xf32>
      %1038 = arith.mulf %1037, %1033 : vector<8x256xf32>
      %1039 = arith.addf %1022, %1038 : vector<8x256xf32>
      %c19_495 = arith.constant 19 : index
      %c0_496 = arith.constant 0 : index
      %c0_497 = arith.constant 0 : index
      %1040 = vector.load %arg12[%c19_495, %c0_496, %c0_497] : memref<25x8x256xf32, #tpu.memory_space<vmem>>, vector<1x8x256xf32>
      %1041 = vector.shape_cast %1040 : vector<1x8x256xf32> to vector<8x256xf32>
      %1042 = vector.extract_strided_slice %1031 {offsets = [0, 0], sizes = [8, 256], strides = [1, 1]} : vector<32x256xf32> to vector<8x256xf32>
      %1043 = arith.mulf %1042, %1041 : vector<8x256xf32>
      %1044 = arith.addf %1027, %1043 : vector<8x256xf32>
      %1045 = vector.extract_strided_slice %1031 {offsets = [16, 0], sizes = [8, 256], strides = [1, 1]} : vector<32x256xf32> to vector<8x256xf32>
      %1046 = arith.mulf %1045, %1041 : vector<8x256xf32>
      %1047 = arith.addf %1030, %1046 : vector<8x256xf32>
      %c4_i32_498 = arith.constant 4 : i32
      %1048 = arith.muli %arg14, %c4_i32_498 : i32
      %c7_i32 = arith.constant 7 : i32
      %1049 = arith.addi %1048, %c7_i32 : i32
      %1050 = arith.index_cast %1049 : i32 to index
      %c0_499 = arith.constant 0 : index
      %c0_500 = arith.constant 0 : index
      %1051 = vector.load %arg11[%1050, %c0_499, %c0_500] : memref<12x32x256xf32, #tpu.memory_space<vmem>>, vector<1x32x256xf32>
      %1052 = vector.shape_cast %1051 : vector<1x32x256xf32> to vector<32x256xf32>
      %c2_i32_501 = arith.constant 2 : i32
      %1053 = tpu.dynamic_rotate %1052 by %c2_i32_501 dim 0 : vector<32x256xf32>, i32 -> vector<32x256xf32>
      %c20_502 = arith.constant 20 : index
      %c0_503 = arith.constant 0 : index
      %c0_504 = arith.constant 0 : index
      %1054 = vector.load %arg12[%c20_502, %c0_503, %c0_504] : memref<25x8x256xf32, #tpu.memory_space<vmem>>, vector<1x8x256xf32>
      %1055 = vector.shape_cast %1054 : vector<1x8x256xf32> to vector<8x256xf32>
      %1056 = vector.extract_strided_slice %1053 {offsets = [0, 0], sizes = [8, 256], strides = [1, 1]} : vector<32x256xf32> to vector<8x256xf32>
      %1057 = arith.mulf %1056, %1055 : vector<8x256xf32>
      %1058 = arith.addf %1044, %1057 : vector<8x256xf32>
      %1059 = vector.extract_strided_slice %1053 {offsets = [16, 0], sizes = [8, 256], strides = [1, 1]} : vector<32x256xf32> to vector<8x256xf32>
      %1060 = arith.mulf %1059, %1055 : vector<8x256xf32>
      %1061 = arith.addf %1047, %1060 : vector<8x256xf32>
      %c1_i32_505 = arith.constant 1 : i32
      %1062 = tpu.dynamic_rotate %1052 by %c1_i32_505 dim 0 : vector<32x256xf32>, i32 -> vector<32x256xf32>
      %c21_506 = arith.constant 21 : index
      %c0_507 = arith.constant 0 : index
      %c0_508 = arith.constant 0 : index
      %1063 = vector.load %arg12[%c21_506, %c0_507, %c0_508] : memref<25x8x256xf32, #tpu.memory_space<vmem>>, vector<1x8x256xf32>
      %1064 = vector.shape_cast %1063 : vector<1x8x256xf32> to vector<8x256xf32>
      %1065 = vector.extract_strided_slice %1062 {offsets = [0, 0], sizes = [8, 256], strides = [1, 1]} : vector<32x256xf32> to vector<8x256xf32>
      %1066 = arith.mulf %1065, %1064 : vector<8x256xf32>
      %1067 = arith.addf %1058, %1066 : vector<8x256xf32>
      %1068 = vector.extract_strided_slice %1062 {offsets = [16, 0], sizes = [8, 256], strides = [1, 1]} : vector<32x256xf32> to vector<8x256xf32>
      %1069 = arith.mulf %1068, %1064 : vector<8x256xf32>
      %1070 = arith.addf %1061, %1069 : vector<8x256xf32>
      %c22_509 = arith.constant 22 : index
      %c0_510 = arith.constant 0 : index
      %c0_511 = arith.constant 0 : index
      %1071 = vector.load %arg12[%c22_509, %c0_510, %c0_511] : memref<25x8x256xf32, #tpu.memory_space<vmem>>, vector<1x8x256xf32>
      %1072 = vector.shape_cast %1071 : vector<1x8x256xf32> to vector<8x256xf32>
      %1073 = vector.extract_strided_slice %1052 {offsets = [0, 0], sizes = [8, 256], strides = [1, 1]} : vector<32x256xf32> to vector<8x256xf32>
      %1074 = arith.mulf %1073, %1072 : vector<8x256xf32>
      %1075 = arith.addf %1067, %1074 : vector<8x256xf32>
      %1076 = vector.extract_strided_slice %1052 {offsets = [16, 0], sizes = [8, 256], strides = [1, 1]} : vector<32x256xf32> to vector<8x256xf32>
      %1077 = arith.mulf %1076, %1072 : vector<8x256xf32>
      %1078 = arith.addf %1070, %1077 : vector<8x256xf32>
      %c31_i32_512 = arith.constant 31 : i32
      %1079 = tpu.dynamic_rotate %1052 by %c31_i32_512 dim 0 : vector<32x256xf32>, i32 -> vector<32x256xf32>
      %c23_513 = arith.constant 23 : index
      %c0_514 = arith.constant 0 : index
      %c0_515 = arith.constant 0 : index
      %1080 = vector.load %arg12[%c23_513, %c0_514, %c0_515] : memref<25x8x256xf32, #tpu.memory_space<vmem>>, vector<1x8x256xf32>
      %1081 = vector.shape_cast %1080 : vector<1x8x256xf32> to vector<8x256xf32>
      %1082 = vector.extract_strided_slice %1079 {offsets = [0, 0], sizes = [8, 256], strides = [1, 1]} : vector<32x256xf32> to vector<8x256xf32>
      %1083 = arith.mulf %1082, %1081 : vector<8x256xf32>
      %1084 = arith.addf %1075, %1083 : vector<8x256xf32>
      %1085 = vector.extract_strided_slice %1079 {offsets = [16, 0], sizes = [8, 256], strides = [1, 1]} : vector<32x256xf32> to vector<8x256xf32>
      %1086 = arith.mulf %1085, %1081 : vector<8x256xf32>
      %1087 = arith.addf %1078, %1086 : vector<8x256xf32>
      %c30_i32_516 = arith.constant 30 : i32
      %1088 = tpu.dynamic_rotate %1052 by %c30_i32_516 dim 0 : vector<32x256xf32>, i32 -> vector<32x256xf32>
      %c24_517 = arith.constant 24 : index
      %c0_518 = arith.constant 0 : index
      %c0_519 = arith.constant 0 : index
      %1089 = vector.load %arg12[%c24_517, %c0_518, %c0_519] : memref<25x8x256xf32, #tpu.memory_space<vmem>>, vector<1x8x256xf32>
      %1090 = vector.shape_cast %1089 : vector<1x8x256xf32> to vector<8x256xf32>
      %1091 = vector.extract_strided_slice %1088 {offsets = [0, 0], sizes = [8, 256], strides = [1, 1]} : vector<32x256xf32> to vector<8x256xf32>
      %1092 = arith.mulf %1091, %1090 : vector<8x256xf32>
      %1093 = arith.addf %1084, %1092 : vector<8x256xf32>
      %1094 = vector.extract_strided_slice %1088 {offsets = [16, 0], sizes = [8, 256], strides = [1, 1]} : vector<32x256xf32> to vector<8x256xf32>
      %1095 = arith.mulf %1094, %1090 : vector<8x256xf32>
      %1096 = arith.addf %1087, %1095 : vector<8x256xf32>
      %1097 = tpu.concatenate %802, %939, %1036, %1093 in 0 : vector<8x256xf32>, vector<8x256xf32>, vector<8x256xf32>, vector<8x256xf32> -> vector<32x256xf32>
      %c32_i32 = arith.constant 32 : i32
      %1098 = arith.muli %arg14, %c32_i32 : i32
      %c0_i32_520 = arith.constant 0 : i32
      %1099 = arith.addi %c0_i32_520, %1098 : i32
      %1100 = tpu.assume_multiple %1099, 32 : i32
      %1101 = arith.truncf %1097 : vector<32x256xf32> to vector<32x256xbf16>
      %1102 = arith.index_cast %1100 : i32 to index
      %c0_521 = arith.constant 0 : index
      %1103 = vector.load %arg13[%1102, %c0_521] : memref<128x256xbf16, #tpu.memory_space<vmem>>, vector<32x256xbf16>
      tpu.vector_store %arg13[%1102, %c0_521], %1101 {strides = array<i32>} : memref<128x256xbf16, #tpu.memory_space<vmem>>, vector<32x256xbf16>,
      %1104 = tpu.concatenate %805, %942, %1039, %1096 in 0 : vector<8x256xf32>, vector<8x256xf32>, vector<8x256xf32>, vector<8x256xf32> -> vector<32x256xf32>
      %c32_i32_522 = arith.constant 32 : i32
      %1105 = arith.muli %arg14, %c32_i32_522 : i32
      %c64_i32 = arith.constant 64 : i32
      %1106 = arith.addi %c64_i32, %1105 : i32
      %1107 = tpu.assume_multiple %1106, 32 : i32
      %1108 = arith.truncf %1104 : vector<32x256xf32> to vector<32x256xbf16>
      %1109 = arith.index_cast %1107 : i32 to index
      %c0_523 = arith.constant 0 : index
      %1110 = vector.load %arg13[%1109, %c0_523] : memref<128x256xbf16, #tpu.memory_space<vmem>>, vector<32x256xbf16>
      tpu.vector_store %arg13[%1109, %c0_523], %1108 {strides = array<i32>} : memref<128x256xbf16, #tpu.memory_space<vmem>>, vector<32x256xbf16>,
    }
    %c2_i32_128 = arith.constant 2 : i32
    %c0_129 = arith.constant 0 : index
    %c0_130 = arith.constant 0 : index
    %173 = vector.load %arg13[%c0_129, %c0_130] : memref<128x256xbf16, #tpu.memory_space<vmem>>, vector<128x256xbf16>
    %c0_131 = arith.constant 0 : index
    %c0_132 = arith.constant 0 : index
    %174 = vector.load %arg5[%c0_131, %c0_132] : memref<256x256xbf16, #tpu.memory_space<vmem>>, vector<256x256xbf16>
    %cst_133 = arith.constant dense<0.000000e+00> : vector<128x256xf32>
    %175 = tpu.matmul %173, %174, %cst_133 {dimension_numbers = #tpu.dot_dimension_numbers<[1], [0], [0], [1], [0, 0, 1, 1], [], []>} : vector<128x256xbf16>, vector<256x256xbf16>, vector<128x256xf32> -> vector<128x256xf32>
    %cst_134 = arith.constant dense<0.000000e+00> : vector<256xf32>
    %176 = vector.multi_reduction <add>, %175, %cst_134 [0] : vector<128x256xf32> to vector<256xf32>
    %177 = vector.shape_cast %176 : vector<256xf32> to vector<1x256xf32>
    %cst_135 = arith.constant 1.280000e+02 : f32
    %178 = vector.broadcast %cst_135 : f32 to vector<1x256xf32>
    %179 = arith.divf %177, %178 : vector<1x256xf32>
    %180 = vector.broadcast %179 : vector<1x256xf32> to vector<128x256xf32>
    %181 = arith.subf %175, %180 : vector<128x256xf32>
    %182 = arith.mulf %181, %181 : vector<128x256xf32>
    %cst_136 = arith.constant dense<0.000000e+00> : vector<256xf32>
    %183 = vector.multi_reduction <add>, %182, %cst_136 [0] : vector<128x256xf32> to vector<256xf32>
    %184 = vector.shape_cast %183 : vector<256xf32> to vector<1x256xf32>
    %cst_137 = arith.constant 1.280000e+02 : f32
    %185 = vector.broadcast %cst_137 : f32 to vector<1x256xf32>
    %186 = arith.divf %184, %185 : vector<1x256xf32>
    %c0_138 = arith.constant 0 : index
    %c0_139 = arith.constant 0 : index
    %187 = vector.load %arg6[%c0_138, %c0_139] : memref<1x256xf32, #tpu.memory_space<vmem>>, vector<1x256xf32>
    %cst_140 = arith.constant 9.99999974E-6 : f32
    %188 = vector.broadcast %cst_140 : f32 to vector<1x256xf32>
    %189 = arith.addf %186, %188 : vector<1x256xf32>
    %190 = math.rsqrt %189 : vector<1x256xf32>
    %191 = arith.mulf %187, %190 : vector<1x256xf32>
    %192 = vector.broadcast %191 : vector<1x256xf32> to vector<128x256xf32>
    %193 = arith.mulf %181, %192 : vector<128x256xf32>
    %c0_141 = arith.constant 0 : index
    %c0_142 = arith.constant 0 : index
    %194 = vector.load %arg7[%c0_141, %c0_142] : memref<1x256xf32, #tpu.memory_space<vmem>>, vector<1x256xf32>
    %195 = vector.broadcast %194 : vector<1x256xf32> to vector<128x256xf32>
    %196 = arith.addf %193, %195 : vector<128x256xf32>
    %cst_143 = arith.constant 0.000000e+00 : f32
    %197 = vector.broadcast %cst_143 : f32 to vector<128x256xf32>
    %198 = arith.maximumf %196, %197 : vector<128x256xf32>
    %199 = vector.extract_strided_slice %198 {offsets = [0, 0], sizes = [64, 256], strides = [1, 1]} : vector<128x256xf32> to vector<64x256xf32>
    %cst_144 = arith.constant dense<0.000000e+00> : vector<256xf32>
    %200 = vector.multi_reduction <add>, %199, %cst_144 [0] : vector<64x256xf32> to vector<256xf32>
    %201 = vector.shape_cast %200 : vector<256xf32> to vector<1x256xf32>
    %cst_145 = arith.constant 1.562500e-02 : f32
    %202 = vector.broadcast %cst_145 : f32 to vector<1x256xf32>
    %203 = arith.mulf %201, %202 : vector<1x256xf32>
    %204 = vector.extract_strided_slice %198 {offsets = [64, 0], sizes = [64, 256], strides = [1, 1]} : vector<128x256xf32> to vector<64x256xf32>
    %cst_146 = arith.constant dense<0.000000e+00> : vector<256xf32>
    %205 = vector.multi_reduction <add>, %204, %cst_146 [0] : vector<64x256xf32> to vector<256xf32>
    %206 = vector.shape_cast %205 : vector<256xf32> to vector<1x256xf32>
    %cst_147 = arith.constant 1.562500e-02 : f32
    %207 = vector.broadcast %cst_147 : f32 to vector<1x256xf32>
    %208 = arith.mulf %206, %207 : vector<1x256xf32>
    %209 = tpu.concatenate %203, %208 in 0 : vector<1x256xf32>, vector<1x256xf32> -> vector<2x256xf32>
    %210 = arith.truncf %209 : vector<2x256xf32> to vector<2x256xbf16>
    %c0_148 = arith.constant 0 : index
    %c0_149 = arith.constant 0 : index
    %211 = vector.load %arg8[%c0_148, %c0_149] : memref<256x128xbf16, #tpu.memory_space<vmem>>, vector<256x128xbf16>
    %cst_150 = arith.constant dense<0.000000e+00> : vector<2x128xf32>
    %212 = tpu.matmul %210, %211, %cst_150 {dimension_numbers = #tpu.dot_dimension_numbers<[1], [0], [0], [1], [0, 0, 1, 1], [], []>} : vector<2x256xbf16>, vector<256x128xbf16>, vector<2x128xf32> -> vector<2x128xf32>
    %c0_151 = arith.constant 0 : index
    %c0_152 = arith.constant 0 : index
    %213 = vector.load %arg9[%c0_151, %c0_152] : memref<1x128xf32, #tpu.memory_space<vmem>>, vector<1x128xf32>
    %214 = vector.broadcast %213 : vector<1x128xf32> to vector<2x128xf32>
    %215 = arith.addf %212, %214 : vector<2x128xf32>
    %c0_153 = arith.constant 0 : index
    %c0_154 = arith.constant 0 : index
    %216 = vector.load %arg10[%c0_153, %c0_154] : memref<2x128xf32, #tpu.memory_space<vmem>>, vector<2x128xf32>
    tpu.vector_store %arg10[%c0_153, %c0_154], %215 {strides = array<i32>} : memref<2x128xf32, #tpu.memory_space<vmem>>, vector<2x128xf32>,
    return
  }
  func.func @transform_0(%arg0: i32) -> (i32, i32) {
    %c0_i32 = arith.constant 0 : i32
    %c0_i32_0 = arith.constant 0 : i32
    %c0_i32_1 = arith.constant 0 : i32
    return %c0_i32, %c0_i32_0 : i32, i32
  }
  func.func @transform_1(%arg0: i32) -> (i32, i32) {
    %c0_i32 = arith.constant 0 : i32
    %c0_i32_0 = arith.constant 0 : i32
    %c0_i32_1 = arith.constant 0 : i32
    return %c0_i32, %c0_i32_0 : i32, i32
  }
  func.func @transform_2(%arg0: i32) -> (i32, i32) {
    %c0_i32 = arith.constant 0 : i32
    %c0_i32_0 = arith.constant 0 : i32
    %c0_i32_1 = arith.constant 0 : i32
    return %c0_i32, %c0_i32_0 : i32, i32
  }
  func.func @transform_3(%arg0: i32) -> (i32, i32) {
    %c0_i32 = arith.constant 0 : i32
    %c0_i32_0 = arith.constant 0 : i32
    %c0_i32_1 = arith.constant 0 : i32
    return %c0_i32, %c0_i32_0 : i32, i32
  }
  func.func @transform_4(%arg0: i32) -> (i32, i32) {
    %c0_i32 = arith.constant 0 : i32
    %c0_i32_0 = arith.constant 0 : i32
    %c0_i32_1 = arith.constant 0 : i32
    return %c0_i32, %c0_i32_0 : i32, i32
  }
  func.func @transform_5(%arg0: i32) -> (i32, i32) {
    %c0_i32 = arith.constant 0 : i32
    %c0_i32_0 = arith.constant 0 : i32
    %c0_i32_1 = arith.constant 0 : i32
    return %c0_i32, %c0_i32_0 : i32, i32
  }
  func.func @transform_6(%arg0: i32) -> (i32, i32) {
    %c0_i32 = arith.constant 0 : i32
    %c0_i32_0 = arith.constant 0 : i32
    %c0_i32_1 = arith.constant 0 : i32
    return %c0_i32, %c0_i32_0 : i32, i32
  }
  func.func @transform_7(%arg0: i32) -> (i32, i32) {
    %c0_i32 = arith.constant 0 : i32
    %c0_i32_0 = arith.constant 0 : i32
    %c0_i32_1 = arith.constant 0 : i32
    return %c0_i32, %c0_i32_0 : i32, i32
  }
  func.func @transform_8(%arg0: i32) -> (i32, i32) {
    %c0_i32 = arith.constant 0 : i32
    %c0_i32_0 = arith.constant 0 : i32
    %c0_i32_1 = arith.constant 0 : i32
    return %c0_i32, %c0_i32_0 : i32, i32
  }
  func.func @transform_9(%arg0: i32) -> (i32, i32) {
    %c0_i32 = arith.constant 0 : i32
    %c0_i32_0 = arith.constant 0 : i32
    %c0_i32_1 = arith.constant 0 : i32
    return %c0_i32, %c0_i32_0 : i32, i32
  }
}

</mosaic_0001>

<bundles_post_ra>
// kernel: tpu_custom_call.1
= control target key start
LH: loop header
LB: loop body
LE: loop exit
PB: predicated region body
PF: predicated region fallthrough
CT: control target
= control target key end

     0   :  { %14 = vsyncpa [#allocation6], 0  ;;  %s5536_s0 = inlined_call_operand.vmem [shape: bf16[128,32], index: 0, kind: input, shape index: {}]   ;;  %s5537_s1 = inlined_call_operand.hbm [shape: bf16[32,256], index: 1, kind: input, shape index: {}]   ;;  %s5538_s2 = inlined_call_operand.vmem [shape: f32[1,256], index: 2, kind: input, shape index: {}]   ;;  %s5539_s3 = inlined_call_operand.vmem [shape: f32[25,256], index: 3, kind: input, shape index: {}]   ;;  %s5540_s4 = inlined_call_operand.hbm [shape: bf16[256,256], index: 4, kind: input, shape index: {}]   ;;  %s5541_s5 = inlined_call_operand.vmem [shape: f32[1,256], index: 5, kind: input, shape index: {}]   ;;  %s5542_s6 = inlined_call_operand.vmem [shape: f32[1,256], index: 6, kind: input, shape index: {}]   ;;  %s5543_s7 = inlined_call_operand.hbm [shape: bf16[256,128], index: 7, kind: input, shape index: {}]   ;;  %s5544_s8 = inlined_call_operand.vmem [shape: f32[1,128], index: 8, kind: input, shape index: {}]   ;;  %s5545_s9 = inlined_call_operand.hbm [shape: f32[2,128], index: 9, kind: output, shape index: {}]  }
   0x1   :  { %15 = vsyncpa [#allocation9], 0 }
   0x2   :  { %16 = vsyncpa [#allocation7], 0  ;;  %s3561_s30 = smov [#allocation8]   ;;  %s3562_s11 = smov [#allocation5]  }
   0x3   :  { %s40_s10 = sshll.u32 %s3561_s30, 4  ;;  %s24_s12 = sshll.u32 %s3562_s11, 4  ;;  %s41_s10 = int_to_ptr.vmem [resolvable:$true] %s40_s10  ;;  %s3622_s12 = int_to_ptr.vmem [resolvable:$true] %s24_s12 }
   0x4   :  { %s3459_s15 = scalar_lea.hbm %s5540_s4, 4096 }
   0x5   :  { %p3460_p0 = scmp.ne.s32.totalorder %s5540_s4, %s3459_s15  ;;  %p3463_p1 = scmp.lt.u32.totalorder %s3459_s15, %s5540_s4 }
   0x7   :  { %p3465_p2 = pnand %p3463_p1, %p3460_p0 }
   0x9   :  { %3468 = shalt.err (!%p3465_p2)
}
   0xa   :  { %s3469_s20 = scalar_lea.vmem %s41_s10, 4096  ;;  %p3474_p4 = scmp.lt.s32.totalorder %s41_s10, %s41_s10 }
   0xb   :  { %p3470_p3 = scmp.ne.s32.totalorder %s41_s10, %s3469_s20  ;;  %p3475_p5 = scmp.lt.s32.totalorder %s3469_s20, %s3469_s20 }
   0xd   :  { %p3476_p6 = por %p3475_p5, %p3474_p4 }
   0xf   :  { %p3477_p7 = pnand %p3476_p6, %p3470_p3 }
  0x11   :  { %3480 = shalt.err (!%p3477_p7)
}
  0x12   :  { %s3563_s21 = smov 128   ;;  %s3564_s22 = smov 8  }
  0x13   :  { %46 = dma.hbm_to_vmem [thread:$0]  %s5540_s4, 4096, %s41_s10, [#allocation9], %s3563_s21, %s3563_s21, %s3564_s22  }
  0x14   :  { %s3481_s27 = scalar_lea.hbm %s5537_s1, 512 }
  0x15   :  { %p3482_p8 = scmp.ne.s32.totalorder %s5537_s1, %s3481_s27  ;;  %p3485_p9 = scmp.lt.u32.totalorder %s3481_s27, %s5537_s1 }
  0x17   :  { %p3487_p10 = pnand %p3485_p9, %p3482_p8 }
  0x19   :  { %3490 = shalt.err (!%p3487_p10)
}
  0x1a   :  { %s3491_s13 = scalar_lea.vmem %s3622_s12, 512  ;;  %p3496_p12 = scmp.lt.s32.totalorder %s3622_s12, %s3622_s12 }
  0x1b   :  { %p3492_p11 = scmp.ne.s32.totalorder %s3622_s12, %s3491_s13  ;;  %p3497_p13 = scmp.lt.s32.totalorder %s3491_s13, %s3491_s13 }
  0x1d   :  { %p3498_p0 = por %p3497_p13, %p3496_p12 }
  0x1f   :  { %p3499_p1 = pnand %p3498_p0, %p3492_p11 }
  0x21   :  { %3502 = shalt.err (!%p3499_p1)
}
  0x22   :  { %30 = dma.hbm_to_vmem [thread:$0]  %s5537_s1, 512, %s3622_s12, [#allocation6], %s3563_s21, %s3563_s21, %s3564_s22  }
  0x23   :  { %s3565_s14 = smov [#allocation10]   ;;  %s3503_s18 = scalar_lea.hbm %s5543_s7, 2048 }
  0x24   :  { %s56_s15 = sshll.u32 %s3565_s14, 4  ;;  %p3504_p2 = scmp.ne.s32.totalorder %s5543_s7, %s3503_s18  ;;  %s57_s15 = int_to_ptr.vmem [resolvable:$true] %s56_s15 }
  0x25   :  { %p3507_p3 = scmp.lt.u32.totalorder %s3503_s18, %s5543_s7 }
  0x27   :  { %p3509_p4 = pnand %p3507_p3, %p3504_p2 }
  0x29   :  { %3512 = shalt.err (!%p3509_p4)
}
  0x2a   :  { %s3513_s25 = scalar_lea.vmem %s57_s15, 2048  ;;  %p3518_p6 = scmp.lt.s32.totalorder %s57_s15, %s57_s15 }
  0x2b   :  { %p3514_p5 = scmp.ne.s32.totalorder %s57_s15, %s3513_s25  ;;  %p3519_p7 = scmp.lt.s32.totalorder %s3513_s25, %s3513_s25 }
  0x2d   :  { %p3520_p8 = por %p3519_p7, %p3518_p6 }
  0x2f   :  { %p3521_p9 = pnand %p3520_p8, %p3514_p5 }
  0x31   :  { %3524 = shalt.err (!%p3521_p9)
}
  0x32   :  { %s3566_s1 = smov 64   ;;  %s3567_s12 = smov 4  }
  0x33   :  { %62 = dma.hbm_to_vmem [thread:$0]  %s5543_s7, 2048, %s57_s15, [#allocation9], %s3566_s1, %s3566_s1, %s3567_s12  }
  0x34   :  { %3551 = dma.done.wait [#allocation6], 512  }
  0x35   :  { %3552 = vsyncadd [#allocation6], 4294966784 }
  0x36   :  { %3553 = dma.done.wait [#allocation9], 6144  }
  0x37   :  { %3554 = vsyncadd [#allocation9], 4294961152  ;;  %v3568_v0 = vmov 0.0   ;;  %v3569_v1 = vmov 0   ;;  %v3335_v2 = vld [vmem:[#allocation5 + $0x4] ss:$8 sps:$4 sm:$0xff]   ;;  %v97_v14 = vlaneseq }
  0x38   :  { %735 = vst [vmem:[#allocation2] sm:$0xff] %v3568_v0  ;;  %736 = vst [vmem:[#allocation2 + $0x8] sm:$0xff] %v3568_v0  ;;  %224 = vmatprep.mubr.bf16.mxu0 %v3569_v1  ;;  %v3337_v3 = vld [vmem:[#allocation5] ss:$8 sps:$4 sm:$0xff]   ;;  %192 = vmatprep.subr.bf16.mxu0 %v3335_v2  ;;  %v3338_v4 = vld [vmem:[#allocation5 + $0x14] ss:$8 sps:$4 sm:$0xff]  }
  0x39   :  { %737 = vst [vmem:[#allocation2 + $0x10] sm:$0xff] %v3568_v0  ;;  %738 = vst [vmem:[#allocation2 + $0x18] sm:$0xff] %v3568_v0  ;;  %193 = vmatpush1.bf16.msra.mxu0 %v3337_v3  ;;  %v3340_v5 = vld [vmem:[#allocation5 + $0x10] ss:$8 sps:$4 sm:$0xff]   ;;  %vm167_vm0 = vcmask 261120   ;;  %v3343_v8 = vld [vmem:[%s5536_s0 + $0x10] sm:$0xff]  }
  0x3a   :  { %739 = vst [vmem:[#allocation2 + $0x20] sm:$0xff] %v3568_v0  ;;  %740 = vst [vmem:[#allocation2 + $0x28] sm:$0xff] %v3568_v0  ;;  %194 = vmatprep.subr.bf16.mxu0 %v3338_v4  ;;  %v3341_v6 = vld [vmem:[%s5536_s0] sm:$0xff]   ;;  %v3342_v7 = vld [vmem:[%s5536_s0 + $0x8] sm:$0xff]   ;;  %v3761_v15 = vshrl.u32 %v97_v14, 7 }
  0x3b   :  { %741 = vst [vmem:[#allocation2 + $0x30] sm:$0xff] %v3568_v0  ;;  %742 = vst [vmem:[#allocation2 + $0x38] sm:$0xff] %v3568_v0  ;;  %v3344_v9 = vld [vmem:[%s5536_s0 + $0x18] sm:$0xff]   ;;  %v3345_v10 = vld [vmem:[%s5536_s0 + $0x20] sm:$0xff]  }
  0x3c   :  { %743 = vst [vmem:[#allocation2 + $0x40] sm:$0xff] %v3568_v0  ;;  %744 = vst [vmem:[#allocation2 + $0x48] sm:$0xff] %v3568_v0  ;;  %v3346_v11 = vld [vmem:[%s5536_s0 + $0x28] sm:$0xff]   ;;  %v3347_v12 = vld [vmem:[%s5536_s0 + $0x30] sm:$0xff]   ;;  %v3764_v16 = vsub.s32 0, %v3761_v15  ;;  %v3767_v17 = vsub.s32 1, %v3761_v15 }
  0x3d   :  { %745 = vst [vmem:[#allocation2 + $0x50] sm:$0xff] %v3568_v0  ;;  %746 = vst [vmem:[#allocation2 + $0x58] sm:$0xff] %v3568_v0  ;;  %195 = vmatpush1.bf16.msra.mxu0 %v3340_v5  ;;  %v3348_v13 = vld [vmem:[%s5536_s0 + $0x38] sm:$0xff]   ;;  %v337_v18 = vld [vmem:[%s5539_s3] ss:$8 sm:$0x3] }
  0x3e   :  { %747 = vst [vmem:[#allocation2 + $0x60] sm:$0xff] %v3568_v0  ;;  %748 = vst [vmem:[#allocation2 + $0x68] sm:$0xff] %v3568_v0  ;;  %v3132_v19 = vld [vmem:[%s5539_s3 + $0x1] ss:$8 sm:$0x3]  ;;  %v342_v20 = vrot.slane %v337_v18, %v3764_v16  ;;  %v346_v28 = vrot.slane %v337_v18, %v3767_v17 }
  0x3f   :  { %749 = vst [vmem:[#allocation2 + $0x70] sm:$0xff] %v3568_v0  ;;  %750 = vst [vmem:[#allocation2 + $0x78] sm:$0xff] %v3568_v0  ;;  %v357_v21 = vrot.slane %v3132_v19, %v3764_v16  ;;  %v3133_v22 = vld [vmem:[%s5539_s3 + $0x2] ss:$8 sm:$0x3]  ;;  %v361_v29 = vrot.slane %v3132_v19, %v3767_v17 }
  0x40   :  { %752 = vst [vmem:[#allocation2 + $0x280] sm:$0xff] %v3568_v0  ;;  %753 = vst [vmem:[#allocation2 + $0x288] sm:$0xff] %v3568_v0  ;;  %3124 = vmatmul.mubr.msk.bf16.vlgmr.msra.gmra.mrb[0].mxu0 %vm167_vm0, %v3341_v6  ;;  %v3134_v23 = vld [vmem:[%s5539_s3 + $0x3] ss:$8 sm:$0x3]  ;;  %v373_v24 = vrot.slane %v3133_v22, %v3764_v16  ;;  %v377_v34 = vrot.slane %v3133_v22, %v3767_v17 }
  0x41   :  { %754 = vst [vmem:[#allocation2 + $0x290] sm:$0xff] %v3568_v0  ;;  %755 = vst [vmem:[#allocation2 + $0x298] sm:$0xff] %v3568_v0  ;;  %234 = vmatprep.mubr.bf16.mxu0 %v3569_v1  ;;  %v389_v25 = vrot.slane %v3134_v23, %v3764_v16  ;;  %v3135_v26 = vld [vmem:[%s5539_s3 + $0x4] ss:$8 sm:$0x3]  ;;  %v393_v35 = vrot.slane %v3134_v23, %v3767_v17 }
  0x42   :  { %756 = vst [vmem:[#allocation2 + $0x2a0] sm:$0xff] %v3568_v0  ;;  %757 = vst [vmem:[#allocation2 + $0x2a8] sm:$0xff] %v3568_v0  ;;  %v3136_v27 = vld [vmem:[%s5539_s3 + $0x5] ss:$8 sm:$0x3]  ;;  %v405_v30 = vrot.slane %v3135_v26, %v3764_v16  ;;  %v409_v40 = vrot.slane %v3135_v26, %v3767_v17 }
  0x43   :  { %758 = vst [vmem:[#allocation2 + $0x2b0] sm:$0xff] %v3568_v0  ;;  %759 = vst [vmem:[#allocation2 + $0x2b8] sm:$0xff] %v3568_v0  ;;  %v421_v31 = vrot.slane %v3136_v27, %v3764_v16  ;;  %v3137_v32 = vld [vmem:[%s5539_s3 + $0x6] ss:$8 sm:$0x3]  ;;  %v425_v41 = vrot.slane %v3136_v27, %v3767_v17 }
  0x44   :  { %760 = vst [vmem:[#allocation2 + $0x2c0] sm:$0xff] %v3568_v0  ;;  %761 = vst [vmem:[#allocation2 + $0x2c8] sm:$0xff] %v3568_v0  ;;  %v3138_v33 = vld [vmem:[%s5539_s3 + $0x7] ss:$8 sm:$0x3]  ;;  %v437_v36 = vrot.slane %v3137_v32, %v3764_v16  ;;  %v441_v46 = vrot.slane %v3137_v32, %v3767_v17 }
  0x45   :  { %762 = vst [vmem:[#allocation2 + $0x2d0] sm:$0xff] %v3568_v0  ;;  %763 = vst [vmem:[#allocation2 + $0x2d8] sm:$0xff] %v3568_v0  ;;  %v453_v37 = vrot.slane %v3138_v33, %v3764_v16  ;;  %v3139_v38 = vld [vmem:[%s5539_s3 + $0x10] ss:$8 sm:$0x3]  ;;  %v457_v47 = vrot.slane %v3138_v33, %v3767_v17 }
  0x46   :  { %764 = vst [vmem:[#allocation2 + $0x2e0] sm:$0xff] %v3568_v0  ;;  %765 = vst [vmem:[#allocation2 + $0x2e8] sm:$0xff] %v3568_v0  ;;  %v3140_v39 = vld [vmem:[%s5539_s3 + $0x11] ss:$8 sm:$0x3]  ;;  %v469_v42 = vrot.slane %v3139_v38, %v3764_v16  ;;  %v473_v52 = vrot.slane %v3139_v38, %v3767_v17 }
  0x47   :  { %766 = vst [vmem:[#allocation2 + $0x2f0] sm:$0xff] %v3568_v0  ;;  %767 = vst [vmem:[#allocation2 + $0x2f8] sm:$0xff] %v3568_v0  ;;  %v485_v43 = vrot.slane %v3140_v39, %v3764_v16  ;;  %v3141_v44 = vld [vmem:[%s5539_s3 + $0x12] ss:$8 sm:$0x3]  ;;  %v489_v53 = vrot.slane %v3140_v39, %v3767_v17 }
  0x48   :  { %785 = vst [vmem:[#allocation2 + $0x90] sm:$0xff] %v3568_v0  ;;  %786 = vst [vmem:[#allocation2 + $0x98] sm:$0xff] %v3568_v0  ;;  %3125 = vmatmul.mubr.msk.bf16.gmra.mrb[4].mxu0 %vm167_vm0, %v3342_v7  ;;  %v3142_v45 = vld [vmem:[%s5539_s3 + $0x13] ss:$8 sm:$0x3]  ;;  %v501_v48 = vrot.slane %v3141_v44, %v3764_v16  ;;  %v505_v58 = vrot.slane %v3141_v44, %v3767_v17 }
  0x49   :  { %787 = vst [vmem:[#allocation2 + $0xd0] sm:$0xff] %v3568_v0  ;;  %788 = vst [vmem:[#allocation2 + $0xd8] sm:$0xff] %v3568_v0  ;;  %244 = vmatprep.mubr.bf16.mxu0 %v3569_v1  ;;  %v517_v49 = vrot.slane %v3142_v45, %v3764_v16  ;;  %v3143_v50 = vld [vmem:[%s5539_s3 + $0x14] ss:$8 sm:$0x3]  ;;  %v521_v59 = vrot.slane %v3142_v45, %v3767_v17 }
  0x4a   :  { %789 = vst [vmem:[#allocation2 + $0x110] sm:$0xff] %v3568_v0  ;;  %790 = vst [vmem:[#allocation2 + $0x118] sm:$0xff] %v3568_v0  ;;  %v3144_v51 = vld [vmem:[%s5539_s3 + $0x15] ss:$8 sm:$0x3]  ;;  %v533_v54 = vrot.slane %v3143_v50, %v3764_v16 }
  0x4b   :  { %791 = vst [vmem:[#allocation2 + $0x150] sm:$0xff] %v3568_v0  ;;  %792 = vst [vmem:[#allocation2 + $0x158] sm:$0xff] %v3568_v0  ;;  %v549_v55 = vrot.slane %v3144_v51, %v3764_v16  ;;  %v3145_v56 = vld [vmem:[%s5539_s3 + $0x16] ss:$8 sm:$0x3] }
  0x4c   :  { %793 = vst [vmem:[#allocation2 + $0x190] sm:$0xff] %v3568_v0  ;;  %794 = vst [vmem:[#allocation2 + $0x198] sm:$0xff] %v3568_v0  ;;  %v3146_v57 = vld [vmem:[%s5539_s3 + $0x17] ss:$8 sm:$0x3]  ;;  %v565_v60 = vrot.slane %v3145_v56, %v3764_v16  ;;  %v569_v6 = vrot.slane %v3145_v56, %v3767_v17 }
  0x4d   :  { %795 = vst [vmem:[#allocation2 + $0x1d0] sm:$0xff] %v3568_v0  ;;  %796 = vst [vmem:[#allocation2 + $0x1d8] sm:$0xff] %v3568_v0  ;;  %v581_v61 = vrot.slane %v3146_v57, %v3764_v16  ;;  %v3147_v62 = vld [vmem:[%s5539_s3 + $0x20] ss:$8 sm:$0x3]  ;;  %v585_v7 = vrot.slane %v3146_v57, %v3767_v17 }
  0x4e   :  { %797 = vst [vmem:[#allocation2 + $0x210] sm:$0xff] %v3568_v0  ;;  %798 = vst [vmem:[#allocation2 + $0x218] sm:$0xff] %v3568_v0  ;;  %v3148_v63 = vld [vmem:[%s5539_s3 + $0x21] ss:$8 sm:$0x3]  ;;  %v597_v2 = vrot.slane %v3147_v62, %v3764_v16 }
  0x4f   :  { %799 = vst [vmem:[#allocation2 + $0x250] sm:$0xff] %v3568_v0  ;;  %800 = vst [vmem:[#allocation2 + $0x258] sm:$0xff] %v3568_v0  ;;  %v613_v3 = vrot.slane %v3148_v63, %v3764_v16  ;;  %v3149_v4 = vld [vmem:[%s5539_s3 + $0x22] ss:$8 sm:$0x3] }
  0x50   :  { %817 = vst [vmem:[#allocation2 + $0xb0] sm:$0xff] %v3568_v0  ;;  %818 = vst [vmem:[#allocation2 + $0xb8] sm:$0xff] %v3568_v0  ;;  %3126 = vmatmul.mubr.msk.bf16.gmra.mrb[8].mxu0 %vm167_vm0, %v3343_v8  ;;  %v3150_v5 = vld [vmem:[%s5539_s3 + $0x23] ss:$8 sm:$0x3]  ;;  %v629_v8 = vrot.slane %v3149_v4, %v3764_v16 }
  0x51   :  { %819 = vst [vmem:[#allocation2 + $0xf0] sm:$0xff] %v3568_v0  ;;  %820 = vst [vmem:[#allocation2 + $0xf8] sm:$0xff] %v3568_v0  ;;  %254 = vmatprep.mubr.bf16.mxu0 %v3569_v1  ;;  %v3153_v19 = vld [vmem:[%s5539_s3 + $0x26] ss:$8 sm:$0x3]  ;;  %v649_v22 = vrot.slane %v3150_v5, %v3767_v17 }
  0x52   :  { %821 = vst [vmem:[#allocation2 + $0x130] sm:$0xff] %v3568_v0  ;;  %822 = vst [vmem:[#allocation2 + $0x138] sm:$0xff] %v3568_v0  ;;  %v693_v23 = vrot.slane %v3153_v19, %v3764_v16  ;;  %v95_v32 = vld [vmem:[%s5538_s2] sm:$0x3]  ;;  %s3935_s2 = smov 0  }
  0x53   :  { %823 = vst [vmem:[#allocation2 + $0x170] sm:$0xff] %v3568_v0  ;;  %824 = vst [vmem:[#allocation2 + $0x178] sm:$0xff] %v3568_v0  ;;  %v3898_v33 = vrot.slane %v95_v32, %v3764_v16 }
  0x54   :  { %825 = vst [vmem:[#allocation2 + $0x1b0] sm:$0xff] %v3568_v0  ;;  %826 = vst [vmem:[#allocation2 + $0x1b8] sm:$0xff] %v3568_v0 }
  0x55   :  { %827 = vst [vmem:[#allocation2 + $0x1f0] sm:$0xff] %v3568_v0  ;;  %828 = vst [vmem:[#allocation2 + $0x1f8] sm:$0xff] %v3568_v0 }
  0x56   :  { %829 = vst [vmem:[#allocation2 + $0x230] sm:$0xff] %v3568_v0  ;;  %830 = vst [vmem:[#allocation2 + $0x238] sm:$0xff] %v3568_v0 }
  0x57   :  { %831 = vst [vmem:[#allocation2 + $0x270] sm:$0xff] %v3568_v0  ;;  %832 = vst [vmem:[#allocation2 + $0x278] sm:$0xff] %v3568_v0  ;;  %v537_v0 = vrot.slane %v3143_v50, %v3767_v17 }
  0x58   :  { %3127 = vmatmul.mubr.msk.bf16.gmra.mrb[12].mxu0 %vm167_vm0, %v3344_v9  ;;  %5624 = vst [vmem:[#allocation15_spill] sm:$0xff] %v3764_v16  ;;  %5625 = vst [vmem:[#allocation16_spill] sm:$0xff] %v3767_v17  ;;  %v645_v9 = vrot.slane %v3150_v5, %v3764_v16 }
  0x59   :  { %264 = vmatprep.mubr.bf16.mxu0 %v3569_v1  ;;  %349 = vst [vmem:[#allocation3] sm:$0xff] %v342_v20  ;;  %365 = vst [vmem:[#allocation3 + $0x10] sm:$0xff] %v357_v21  ;;  %v3154_v20 = vld [vmem:[%s5539_s3 + $0x27] ss:$8 sm:$0x3]  ;;  %v633_v21 = vrot.slane %v3149_v4, %v3767_v17 }
  0x5a   :  { %381 = vst [vmem:[#allocation3 + $0x20] sm:$0xff] %v373_v24  ;;  %397 = vst [vmem:[#allocation3 + $0x30] sm:$0xff] %v389_v25  ;;  %v709_v24 = vrot.slane %v3154_v20, %v3764_v16  ;;  %v3155_v25 = vld [vmem:[%s5539_s3 + $0x30] ss:$8 sm:$0x3] }
  0x5b   :  { %350 = vst [vmem:[#allocation3 + $0x8] sm:$0xff] %v346_v28  ;;  %366 = vst [vmem:[#allocation3 + $0x18] sm:$0xff] %v361_v29  ;;  %v725_v28 = vrot.slane %v3155_v25, %v3764_v16  ;;  %v697_v29 = vrot.slane %v3153_v19, %v3767_v17 }
  0x5c   :  { %413 = vst [vmem:[#allocation3 + $0x40] sm:$0xff] %v405_v30  ;;  %429 = vst [vmem:[#allocation3 + $0x50] sm:$0xff] %v421_v31  ;;  %v713_v30 = vrot.slane %v3154_v20, %v3767_v17  ;;  %v729_v31 = vrot.slane %v3155_v25, %v3767_v17 }
  0x5d   :  { %382 = vst [vmem:[#allocation3 + $0x28] sm:$0xff] %v377_v34  ;;  %398 = vst [vmem:[#allocation3 + $0x38] sm:$0xff] %v393_v35  ;;  %v3901_v34 = vrot.slane %v95_v32, %v3767_v17 }
  0x5e   :  { %445 = vst [vmem:[#allocation3 + $0x60] sm:$0xff] %v437_v36  ;;  %461 = vst [vmem:[#allocation3 + $0x70] sm:$0xff] %v453_v37 }
  0x5f   :  { %414 = vst [vmem:[#allocation3 + $0x48] sm:$0xff] %v409_v40  ;;  %430 = vst [vmem:[#allocation3 + $0x58] sm:$0xff] %v425_v41 }
  0x60   :  { %3128 = vmatmul.mubr.msk.bf16.gmra.mrb[16].mxu0 %vm167_vm0, %v3345_v10  ;;  %477 = vst [vmem:[#allocation3 + $0x80] sm:$0xff] %v469_v42  ;;  %493 = vst [vmem:[#allocation3 + $0x90] sm:$0xff] %v485_v43  ;;  %v3151_v10 = vld [vmem:[%s5539_s3 + $0x24] ss:$8 sm:$0x3] }
  0x61   :  { %274 = vmatprep.mubr.bf16.mxu0 %v3569_v1  ;;  %446 = vst [vmem:[#allocation3 + $0x68] sm:$0xff] %v441_v46  ;;  %462 = vst [vmem:[#allocation3 + $0x78] sm:$0xff] %v457_v47  ;;  %v661_v14 = vrot.slane %v3151_v10, %v3764_v16  ;;  %v665_v26 = vrot.slane %v3151_v10, %v3767_v17 }
  0x62   :  { %509 = vst [vmem:[#allocation3 + $0xa0] sm:$0xff] %v501_v48  ;;  %525 = vst [vmem:[#allocation3 + $0xb0] sm:$0xff] %v517_v49 }
  0x63   :  { %478 = vst [vmem:[#allocation3 + $0x88] sm:$0xff] %v473_v52  ;;  %494 = vst [vmem:[#allocation3 + $0x98] sm:$0xff] %v489_v53 }
  0x64   :  { %541 = vst [vmem:[#allocation3 + $0xc0] sm:$0xff] %v533_v54  ;;  %557 = vst [vmem:[#allocation3 + $0xd0] sm:$0xff] %v549_v55 }
  0x65   :  { %510 = vst [vmem:[#allocation3 + $0xa8] sm:$0xff] %v505_v58  ;;  %526 = vst [vmem:[#allocation3 + $0xb8] sm:$0xff] %v521_v59 }
  0x66   :  { %573 = vst [vmem:[#allocation3 + $0xe0] sm:$0xff] %v565_v60  ;;  %589 = vst [vmem:[#allocation3 + $0xf0] sm:$0xff] %v581_v61 }
  0x67   :  { %542 = vst [vmem:[#allocation3 + $0xc8] sm:$0xff] %v537_v0  ;;  %605 = vst [vmem:[#allocation3 + $0x100] sm:$0xff] %v597_v2 }
  0x68   :  { %3129 = vmatmul.mubr.msk.bf16.gmra.mrb[20].mxu0 %vm167_vm0, %v3346_v11  ;;  %v3152_v11 = vld [vmem:[%s5539_s3 + $0x25] ss:$8 sm:$0x3]  ;;  %621 = vst [vmem:[#allocation3 + $0x110] sm:$0xff] %v613_v3  ;;  %574 = vst [vmem:[#allocation3 + $0xe8] sm:$0xff] %v569_v6 }
  0x69   :  { %284 = vmatprep.mubr.bf16.mxu0 %v3569_v1  ;;  %v677_v18 = vrot.slane %v3152_v11, %v3764_v16  ;;  %590 = vst [vmem:[#allocation3 + $0xf8] sm:$0xff] %v585_v7  ;;  %637 = vst [vmem:[#allocation3 + $0x120] sm:$0xff] %v629_v8  ;;  %v681_v27 = vrot.slane %v3152_v11, %v3767_v17 }
  0x6a   :  { %653 = vst [vmem:[#allocation3 + $0x130] sm:$0xff] %v645_v9  ;;  %669 = vst [vmem:[#allocation3 + $0x140] sm:$0xff] %v661_v14 }
  0x6b   :  { %685 = vst [vmem:[#allocation3 + $0x150] sm:$0xff] %v677_v18  ;;  %638 = vst [vmem:[#allocation3 + $0x128] sm:$0xff] %v633_v21 }
  0x6c   :  { %654 = vst [vmem:[#allocation3 + $0x138] sm:$0xff] %v649_v22  ;;  %701 = vst [vmem:[#allocation3 + $0x160] sm:$0xff] %v693_v23 }
  0x6d   :  { %717 = vst [vmem:[#allocation3 + $0x170] sm:$0xff] %v709_v24  ;;  %670 = vst [vmem:[#allocation3 + $0x148] sm:$0xff] %v665_v26 }
  0x6e   :  { %686 = vst [vmem:[#allocation3 + $0x158] sm:$0xff] %v681_v27  ;;  %733 = vst [vmem:[#allocation3 + $0x180] sm:$0xff] %v725_v28 }
  0x6f   :  { %702 = vst [vmem:[#allocation3 + $0x168] sm:$0xff] %v697_v29  ;;  %718 = vst [vmem:[#allocation3 + $0x178] sm:$0xff] %v713_v30 }
  0x70   :  { %3130 = vmatmul.mubr.msk.bf16.gmra.mrb[24].mxu0 %vm167_vm0, %v3347_v12  ;;  %v601_v12 = vrot.slane %v3147_v62, %v3767_v17  ;;  %734 = vst [vmem:[#allocation3 + $0x188] sm:$0xff] %v729_v31 }
  0x71   :  { %294 = vmatprep.mubr.bf16.mxu0 %v3569_v1  ;;  %v553_v1 = vrot.slane %v3144_v51, %v3767_v17 }
  0x72   :  { %606 = vst [vmem:[#allocation3 + $0x108] sm:$0xff] %v601_v12 }
  0x73   :  { %558 = vst [vmem:[#allocation3 + $0xd8] sm:$0xff] %v553_v1 }
  0x78   :  { %3131 = vmatmul.mubr.msk.bf16.gmra.mrb[28].mxu0 %vm167_vm0, %v3348_v13  ;;  %v617_v13 = vrot.slane %v3148_v63, %v3767_v17 }
  0x7a   :  { %622 = vst [vmem:[#allocation3 + $0x118] sm:$0xff] %v617_v13 }
 0x113   :  { %v226_v35 = vpop.f32.mrb[0].mxu0 }
 0x114   :  { %v227_v36 = vadd.f32 %v226_v35, %v3898_v33  ;;  %v228_v37 = vpop.f32.mrb[1].mxu0 }
 0x115   :  { %v229_v38 = vadd.f32 %v228_v37, %v3901_v34  ;;  %v230_v39 = vpop.f32.mrb[2].mxu0 }
 0x116   :  { %v305_v40 = vmax.f32 %v227_v36, 0.0  ;;  %v231_v41 = vadd.f32 %v230_v39, %v3898_v33  ;;  %v232_v42 = vpop.f32.mrb[3].mxu0 }
 0x117   :  { %v306_v43 = vmax.f32 %v229_v38, 0.0  ;;  %v233_v44 = vadd.f32 %v232_v42, %v3901_v34 }
 0x118   :  { %769 = vst [vmem:[#allocation2 + $0x80] sm:$0xff] %v305_v40  ;;  %v307_v45 = vmax.f32 %v231_v41, 0.0 }
 0x119   :  { %770 = vst [vmem:[#allocation2 + $0x88] sm:$0xff] %v306_v43  ;;  %v308_v46 = vmax.f32 %v233_v44, 0.0 }
 0x11a   :  { %771 = vst [vmem:[#allocation2 + $0xc0] sm:$0xff] %v307_v45 }
 0x11b   :  { %772 = vst [vmem:[#allocation2 + $0xc8] sm:$0xff] %v308_v46  ;;  %v236_v47 = vpop.f32.mrb[4].mxu0 }
 0x11c   :  { %v237_v48 = vadd.f32 %v236_v47, %v3898_v33  ;;  %v238_v49 = vpop.f32.mrb[5].mxu0 }
 0x11d   :  { %v239_v50 = vadd.f32 %v238_v49, %v3901_v34  ;;  %v240_v51 = vpop.f32.mrb[6].mxu0 }
 0x11e   :  { %v309_v52 = vmax.f32 %v237_v48, 0.0  ;;  %v241_v53 = vadd.f32 %v240_v51, %v3898_v33  ;;  %v242_v54 = vpop.f32.mrb[7].mxu0 }
 0x11f   :  { %v310_v55 = vmax.f32 %v239_v50, 0.0  ;;  %v243_v56 = vadd.f32 %v242_v54, %v3901_v34 }
 0x120   :  { %773 = vst [vmem:[#allocation2 + $0x100] sm:$0xff] %v309_v52  ;;  %v311_v57 = vmax.f32 %v241_v53, 0.0 }
 0x121   :  { %774 = vst [vmem:[#allocation2 + $0x108] sm:$0xff] %v310_v55  ;;  %v312_v58 = vmax.f32 %v243_v56, 0.0 }
 0x122   :  { %775 = vst [vmem:[#allocation2 + $0x140] sm:$0xff] %v311_v57 }
 0x123   :  { %776 = vst [vmem:[#allocation2 + $0x148] sm:$0xff] %v312_v58  ;;  %v246_v59 = vpop.f32.mrb[8].mxu0 }
 0x124   :  { %v247_v60 = vadd.f32 %v246_v59, %v3898_v33  ;;  %v248_v61 = vpop.f32.mrb[9].mxu0 }
 0x125   :  { %v249_v62 = vadd.f32 %v248_v61, %v3901_v34  ;;  %v250_v63 = vpop.f32.mrb[10].mxu0 }
 0x126   :  { %v313_v0 = vmax.f32 %v247_v60, 0.0  ;;  %v251_v1 = vadd.f32 %v250_v63, %v3898_v33  ;;  %v252_v2 = vpop.f32.mrb[11].mxu0 }
 0x127   :  { %v314_v3 = vmax.f32 %v249_v62, 0.0  ;;  %v253_v4 = vadd.f32 %v252_v2, %v3901_v34 }
 0x128   :  { %777 = vst [vmem:[#allocation2 + $0x180] sm:$0xff] %v313_v0  ;;  %v315_v5 = vmax.f32 %v251_v1, 0.0 }
 0x129   :  { %778 = vst [vmem:[#allocation2 + $0x188] sm:$0xff] %v314_v3  ;;  %v316_v6 = vmax.f32 %v253_v4, 0.0 }
 0x12a   :  { %779 = vst [vmem:[#allocation2 + $0x1c0] sm:$0xff] %v315_v5 }
 0x12b   :  { %780 = vst [vmem:[#allocation2 + $0x1c8] sm:$0xff] %v316_v6  ;;  %v256_v7 = vpop.f32.mrb[12].mxu0 }
 0x12c   :  { %v257_v8 = vadd.f32 %v256_v7, %v3898_v33  ;;  %v258_v9 = vpop.f32.mrb[13].mxu0 }
 0x12d   :  { %v259_v10 = vadd.f32 %v258_v9, %v3901_v34  ;;  %v260_v11 = vpop.f32.mrb[14].mxu0 }
 0x12e   :  { %v317_v12 = vmax.f32 %v257_v8, 0.0  ;;  %v261_v13 = vadd.f32 %v260_v11, %v3898_v33  ;;  %v262_v14 = vpop.f32.mrb[15].mxu0 }
 0x12f   :  { %v318_v18 = vmax.f32 %v259_v10, 0.0  ;;  %v263_v19 = vadd.f32 %v262_v14, %v3901_v34 }
 0x130   :  { %781 = vst [vmem:[#allocation2 + $0x200] sm:$0xff] %v317_v12  ;;  %v319_v20 = vmax.f32 %v261_v13, 0.0 }
 0x131   :  { %782 = vst [vmem:[#allocation2 + $0x208] sm:$0xff] %v318_v18  ;;  %v320_v21 = vmax.f32 %v263_v19, 0.0 }
 0x132   :  { %783 = vst [vmem:[#allocation2 + $0x240] sm:$0xff] %v319_v20 }
 0x133   :  { %784 = vst [vmem:[#allocation2 + $0x248] sm:$0xff] %v320_v21  ;;  %v266_v22 = vpop.f32.mrb[16].mxu0 }
 0x134   :  { %v267_v23 = vadd.f32 %v266_v22, %v3898_v33  ;;  %v268_v24 = vpop.f32.mrb[17].mxu0 }
 0x135   :  { %v269_v25 = vadd.f32 %v268_v24, %v3901_v34  ;;  %v270_v26 = vpop.f32.mrb[18].mxu0 }
 0x136   :  { %v321_v27 = vmax.f32 %v267_v23, 0.0  ;;  %v271_v28 = vadd.f32 %v270_v26, %v3898_v33  ;;  %v272_v29 = vpop.f32.mrb[19].mxu0 }
 0x137   :  { %v322_v30 = vmax.f32 %v269_v25, 0.0  ;;  %v273_v31 = vadd.f32 %v272_v29, %v3901_v34 }
 0x138   :  { %801 = vst [vmem:[#allocation2 + $0xa0] sm:$0xff] %v321_v27  ;;  %v323_v32 = vmax.f32 %v271_v28, 0.0 }
 0x139   :  { %802 = vst [vmem:[#allocation2 + $0xa8] sm:$0xff] %v322_v30  ;;  %v324_v35 = vmax.f32 %v273_v31, 0.0 }
 0x13a   :  { %803 = vst [vmem:[#allocation2 + $0xe0] sm:$0xff] %v323_v32 }
 0x13b   :  { %804 = vst [vmem:[#allocation2 + $0xe8] sm:$0xff] %v324_v35  ;;  %v276_v36 = vpop.f32.mrb[20].mxu0 }
 0x13c   :  { %v277_v37 = vadd.f32 %v276_v36, %v3898_v33  ;;  %v278_v38 = vpop.f32.mrb[21].mxu0 }
 0x13d   :  { %v279_v39 = vadd.f32 %v278_v38, %v3901_v34  ;;  %v280_v40 = vpop.f32.mrb[22].mxu0 }
 0x13e   :  { %v325_v41 = vmax.f32 %v277_v37, 0.0  ;;  %v281_v42 = vadd.f32 %v280_v40, %v3898_v33  ;;  %v282_v43 = vpop.f32.mrb[23].mxu0 }
 0x13f   :  { %v326_v44 = vmax.f32 %v279_v39, 0.0  ;;  %v283_v45 = vadd.f32 %v282_v43, %v3901_v34 }
 0x140   :  { %805 = vst [vmem:[#allocation2 + $0x120] sm:$0xff] %v325_v41  ;;  %v327_v46 = vmax.f32 %v281_v42, 0.0 }
 0x141   :  { %806 = vst [vmem:[#allocation2 + $0x128] sm:$0xff] %v326_v44  ;;  %v328_v47 = vmax.f32 %v283_v45, 0.0 }
 0x142   :  { %807 = vst [vmem:[#allocation2 + $0x160] sm:$0xff] %v327_v46 }
 0x143   :  { %808 = vst [vmem:[#allocation2 + $0x168] sm:$0xff] %v328_v47  ;;  %v286_v48 = vpop.f32.mrb[24].mxu0 }
 0x144   :  { %v287_v49 = vadd.f32 %v286_v48, %v3898_v33  ;;  %v288_v50 = vpop.f32.mrb[25].mxu0 }
 0x145   :  { %v289_v51 = vadd.f32 %v288_v50, %v3901_v34  ;;  %v290_v52 = vpop.f32.mrb[26].mxu0 }
 0x146   :  { %v329_v53 = vmax.f32 %v287_v49, 0.0  ;;  %v291_v54 = vadd.f32 %v290_v52, %v3898_v33  ;;  %v292_v55 = vpop.f32.mrb[27].mxu0 }
 0x147   :  { %v330_v56 = vmax.f32 %v289_v51, 0.0  ;;  %v293_v57 = vadd.f32 %v292_v55, %v3901_v34 }
 0x148   :  { %809 = vst [vmem:[#allocation2 + $0x1a0] sm:$0xff] %v329_v53  ;;  %v331_v58 = vmax.f32 %v291_v54, 0.0 }
 0x149   :  { %810 = vst [vmem:[#allocation2 + $0x1a8] sm:$0xff] %v330_v56  ;;  %v332_v59 = vmax.f32 %v293_v57, 0.0 }
 0x14a   :  { %811 = vst [vmem:[#allocation2 + $0x1e0] sm:$0xff] %v331_v58 }
 0x14b   :  { %812 = vst [vmem:[#allocation2 + $0x1e8] sm:$0xff] %v332_v59  ;;  %v296_v60 = vpop.f32.mrb[28].mxu0 }
 0x14c   :  { %v297_v61 = vadd.f32 %v296_v60, %v3898_v33  ;;  %v298_v62 = vpop.f32.mrb[29].mxu0 }
 0x14d   :  { %v299_v63 = vadd.f32 %v298_v62, %v3901_v34  ;;  %v300_v0 = vpop.f32.mrb[30].mxu0 }
 0x14e   :  { %v333_v1 = vmax.f32 %v297_v61, 0.0  ;;  %v301_v2 = vadd.f32 %v300_v0, %v3898_v33  ;;  %v302_v3 = vpop.f32.mrb[31].mxu0 }
 0x14f   :  { %v334_v4 = vmax.f32 %v299_v63, 0.0  ;;  %v303_v5 = vadd.f32 %v302_v3, %v3901_v34 }
 0x150   :  { %813 = vst [vmem:[#allocation2 + $0x220] sm:$0xff] %v333_v1  ;;  %v335_v6 = vmax.f32 %v301_v2, 0.0 }
 0x151   :  { %814 = vst [vmem:[#allocation2 + $0x228] sm:$0xff] %v334_v4  ;;  %v336_v7 = vmax.f32 %v303_v5, 0.0 }
 0x152   :  { %815 = vst [vmem:[#allocation2 + $0x260] sm:$0xff] %v335_v6 }
 0x153   :  { %816 = vst [vmem:[#allocation2 + $0x268] sm:$0xff] %v336_v7 }
 0x154 LB: > { %s3284_s23 = sshll.u32 %s3559_s2, 8  ;;  %v3941_v33 = vld [vmem:[#allocation3 + $0x20] sm:$0xff]  ;;  %vm861_vm1 = vcmp.lt.s32.totalorder %v3761_v15, 2  ;;  %v3957_v11 = vld [vmem:[#allocation3 + $0x8] sm:$0xff]  ;;  %vm884_vm2 = vcmp.lt.s32.totalorder %v3761_v15, 1  ;;  %vm917_vm3 = vcmp.lt.s32.totalorder %v3761_v15, 7  ;;  %s3559_s2 = sphi %s3935_s2, %s838_s2  }
 0x155   : > { %s3943_s24 = scalar_lea.vmem [#allocation2], %s3284_s23  ;;  %v3955_v10 = vld [vmem:[#allocation3] sm:$0xff]  ;;  %v3995_v38 = vld [vmem:[#allocation3 + $0x28] sm:$0xff]  ;;  %v4003_v43 = vld [vmem:[#allocation3 + $0x10] sm:$0xff]  ;;  %vm940_vm4 = vcmp.lt.s32.totalorder %v3761_v15, 6  ;;  %s3229_s25 = sshll.u32 %s3559_s2, 5 }
 0x156   : > { %v4009_v48 = vld [vmem:[#allocation3 + $0x18] sm:$0xff]  ;;  %v4036_v5 = vld [vmem:[#allocation3 + $0x30] sm:$0xff]  ;;  %v4293_v16 = vld [vmem:[#allocation3 + $0xc8] sm:$0xff]  ;;  %s5158_s0 = sadd.s32 64, %s3229_s25  ;;  %s2184_s12 = scalar_lea.vmem [#allocation4], %s3229_s25 }
 0x157   : > { %5637 = vst [vmem:[#allocation28_spill] sm:$0xff] %v4293_v16  ;;  %s2194_s1 = sshra.s32 %s5158_s0, 4  ;;  %s838_s2 = sadd.s32 1, %s3559_s2  }
 0x158   : > { %s3293_s21 = sshll.u32 %s2194_s1, 4  ;;  %p835_p10 = scmp.ge.s32.totalorder %s838_s2, 2  }
 0x159   : > { %s2198_s22 = scalar_lea.vmem [#allocation4], %s3293_s21  ;;  %vm2876_vm5 = vcmask (%p835_p10), 1040384   ;;  %s3571_s29 = smov (%p835_p10), [#allocation11]  }
 0x15a   : > { %v3946_v34 = vld [vmem:[%s3943_s24] sm:$0xff]  ;;  %v3949_v8 = vld [vmem:[%s3943_s24 + $0x8] sm:$0xff]  ;;  %v3952_v9 = vld [vmem:[%s3943_s24 + $0x10] sm:$0xff]  ;;  %s3063_s30 = sshll.u32 (%p835_p10), %s3571_s29, 4  ;;  %s3064_s30 = int_to_ptr.vmem [resolvable:$true] %s3063_s30 }
 0x15b   : > { %v3961_v12 = vld [vmem:[%s3943_s24 + $0x18] sm:$0xff]  ;;  %v3964_v13 = vld [vmem:[%s3943_s24 + $0x20] sm:$0xff]  ;;  %v3967_v14 = vld [vmem:[%s3943_s24 + $0x28] sm:$0xff]  ;;  %v851_v18 = vrot.slane %v3946_v34, 6  ;;  %v852_v19 = vrot.slane %v3949_v8, 6  ;;  %v853_v20 = vrot.slane %v3952_v9, 6  ;;  %v901_v21 = vmul.f32 %v3941_v33, %v3946_v34  ;;  %p3530_p12 = scmp.lt.s32.totalorder (%p835_p10), %s3064_s30, %s3064_s30 }
 0x15c   : > { %v3975_v22 = vld [vmem:[%s3943_s24 + $0x30] sm:$0xff]  ;;  %v3978_v23 = vld [vmem:[%s3943_s24 + $0x38] sm:$0xff]  ;;  %v854_v24 = vrot.slane %v3961_v12, 6  ;;  %v855_v25 = vrot.slane %v3964_v13, 6  ;;  %v856_v26 = vrot.slane %v3967_v14, 6  ;;  %v876_v27 = vrot.slane %v3946_v34, 7 }
 0x15d   : > { %v857_v28 = vrot.slane %v3975_v22, 6  ;;  %v858_v29 = vrot.slane %v3978_v23, 6  ;;  %v877_v30 = vrot.slane %v3949_v8, 7  ;;  %v878_v31 = vrot.slane %v3952_v9, 7  ;;  %s3525_s11 = scalar_lea.vmem (%p835_p10), %s3064_s30, 32 }
 0x15e   : > { %v862_v32 = vsel %vm861_vm1, %v853_v20, %v855_v25  ;;  %v863_v35 = vsel %vm861_vm1, %v854_v24, %v856_v26  ;;  %v879_v36 = vrot.slane %v3961_v12, 7  ;;  %v880_v37 = vrot.slane %v3964_v13, 7  ;;  %v4040_v20 = vld [vmem:[#allocation3 + $0x38] sm:$0xff]  ;;  %p3526_p11 = scmp.ne.s32.totalorder (%p835_p10), %s3064_s30, %s3525_s11  ;;  %p3531_p13 = scmp.lt.s32.totalorder (%p835_p10), %s3525_s11, %s3525_s11 }
 0x15f   : > { %v864_v39 = vsel %vm861_vm1, %v857_v28, %v851_v18  ;;  %v865_v40 = vsel %vm861_vm1, %v858_v29, %v852_v19  ;;  %v872_v41 = vmul.f32 %v3955_v10, %v862_v32  ;;  %v873_v42 = vmul.f32 %v3957_v11, %v863_v35 }
 0x160   : > { %v868_v44 = vmul.f32 %v3955_v10, %v864_v39  ;;  %v869_v45 = vmul.f32 %v3957_v11, %v865_v40  ;;  %v881_v46 = vrot.slane %v3967_v14, 7  ;;  %v882_v47 = vrot.slane %v3975_v22, 7  ;;  %p3532_p0 = por (%p835_p10), %p3531_p13, %p3530_p12 }
 0x161   : > { %v883_v49 = vrot.slane %v3978_v23, 7  ;;  %v885_v50 = vsel %vm884_vm2, %v878_v31, %v880_v37  ;;  %v902_v51 = vmul.f32 %v3995_v38, %v3949_v8  ;;  %v905_v52 = vmul.f32 %v3941_v33, %v3964_v13 }
 0x162   : > { %v886_v53 = vsel %vm884_vm2, %v879_v36, %v881_v46  ;;  %v887_v54 = vsel %vm884_vm2, %v882_v47, %v876_v27  ;;  %v895_v55 = vmul.f32 %v4003_v43, %v885_v50  ;;  %v906_v56 = vmul.f32 %v3995_v38, %v3967_v14  ;;  %v4068_v50 = vld [vmem:[#allocation3 + $0x48] sm:$0xff]  ;;  %p3533_p1 = pnand (%p835_p10), %p3532_p0, %p3526_p11 }
 0x163   : > { %v888_v57 = vsel %vm884_vm2, %v883_v49, %v877_v30  ;;  %v891_v58 = vmul.f32 %v4003_v43, %v887_v54  ;;  %v896_v59 = vmul.f32 %v4009_v48, %v886_v53  ;;  %v909_v60 = vrot.slane %v3946_v34, 1  ;;  %v4066_v49 = vld [vmem:[#allocation3 + $0x40] sm:$0xff]  ;;  %5627 = vst [vmem:[#allocation18_spill] sm:$0xff] %v4068_v50  ;;  %v4074_v53 = vld [vmem:[%s3943_s24 + $0x50] sm:$0xff]  ;;  %v4077_v54 = vld [vmem:[%s3943_s24 + $0x58] sm:$0xff] }
 0x164   : > { %v892_v61 = vmul.f32 %v4009_v48, %v888_v57  ;;  %v897_v62 = vadd.f32 %v895_v55, %v872_v41  ;;  %v910_v63 = vrot.slane %v3949_v8, 1  ;;  %v911_v0 = vrot.slane %v3952_v9, 1  ;;  %5626 = vst [vmem:[#allocation17_spill] sm:$0xff] %v4066_v49  ;;  %v4084_v55 = vld [vmem:[%s3943_s24 + $0x60] sm:$0xff] }
 0x165   : > { %v893_v1 = vadd.f32 %v891_v58, %v868_v44  ;;  %v898_v2 = vadd.f32 %v896_v59, %v873_v42  ;;  %v912_v3 = vrot.slane %v3961_v12, 1  ;;  %v913_v4 = vrot.slane %v3964_v13, 1  ;;  %v4059_v42 = vld [vmem:[%s3943_s24 + $0x40] sm:$0xff]  ;;  %v4062_v44 = vld [vmem:[%s3943_s24 + $0x48] sm:$0xff] }
 0x166   : > { %v894_v6 = vadd.f32 %v892_v61, %v869_v45  ;;  %v907_v7 = vadd.f32 %v905_v52, %v897_v62  ;;  %v914_v18 = vrot.slane %v3967_v14, 1  ;;  %v915_v19 = vrot.slane %v3975_v22, 1  ;;  %v4101_v61 = vld [vmem:[%s3943_s24 + $0x78] sm:$0xff] }
 0x167   : > { %v903_v24 = vadd.f32 %v901_v21, %v893_v1  ;;  %v908_v25 = vadd.f32 %v906_v56, %v898_v2  ;;  %v916_v26 = vrot.slane %v3978_v23, 1  ;;  %v920_v27 = vsel %vm917_vm3, %v909_v60, %v911_v0  ;;  %v4087_v56 = vld [vmem:[%s3943_s24 + $0x68] sm:$0xff]  ;;  %v4098_v60 = vld [vmem:[%s3943_s24 + $0x70] sm:$0xff] }
 0x168   : > { %v904_v28 = vadd.f32 %v902_v51, %v894_v6  ;;  %v918_v29 = vsel %vm917_vm3, %v913_v4, %v915_v19  ;;  %v921_v30 = vsel %vm917_vm3, %v910_v63, %v912_v3  ;;  %v924_v31 = vmul.f32 %v4036_v5, %v920_v27  ;;  %v4109_v4 = vld [vmem:[#allocation3 + $0x50] sm:$0xff]  ;;  %v4111_v6 = vld [vmem:[#allocation3 + $0x58] sm:$0xff] }
 0x169   : > { %v919_v21 = vsel %vm917_vm3, %v914_v18, %v916_v26  ;;  %v925_v32 = vmul.f32 %v4040_v20, %v921_v30  ;;  %v928_v35 = vmul.f32 %v4036_v5, %v918_v29  ;;  %v932_v36 = vrot.slane %v3946_v34, 2  ;;  %5628 = vst [vmem:[#allocation19_spill] sm:$0xff] %v4109_v4  ;;  %5629 = vst [vmem:[#allocation20_spill] sm:$0xff] %v4111_v6 }
 0x16a   : > { %v926_v37 = vadd.f32 %v924_v31, %v903_v24  ;;  %v929_v39 = vmul.f32 %v4040_v20, %v919_v21  ;;  %v933_v40 = vrot.slane %v3949_v8, 2  ;;  %v934_v41 = vrot.slane %v3952_v9, 2 }
 0x16b   : > { %v927_v45 = vadd.f32 %v925_v32, %v904_v28  ;;  %v930_v46 = vadd.f32 %v928_v35, %v907_v7  ;;  %v935_v47 = vrot.slane %v3961_v12, 2  ;;  %v936_v34 = vrot.slane %v3964_v13, 2 }
 0x16c   : > { %v931_v51 = vadd.f32 %v929_v39, %v908_v25  ;;  %v937_v8 = vrot.slane %v3967_v14, 2  ;;  %v938_v9 = vrot.slane %v3975_v22, 2  ;;  %v939_v52 = vrot.slane %v3978_v23, 2 }
 0x16d   : > { %v943_v12 = vsel %vm940_vm4, %v932_v36, %v934_v41  ;;  %v944_v13 = vsel %vm940_vm4, %v933_v40, %v935_v47  ;;  %v967_v14 = vrot.slane %v4059_v42, 6  ;;  %v968_v22 = vrot.slane %v4062_v44, 6  ;;  %v4133_v47 = vld [vmem:[#allocation3 + $0x78] sm:$0xff] }
 0x16e   : > { %v941_v23 = vsel %vm940_vm4, %v936_v34, %v938_v9  ;;  %v942_v57 = vsel %vm940_vm4, %v937_v8, %v939_v52  ;;  %v947_v58 = vmul.f32 %v4066_v49, %v943_v12  ;;  %v948_v59 = vmul.f32 %v4068_v50, %v944_v13 }
 0x16f   : > { %v951_v62 = vmul.f32 %v4066_v49, %v941_v23  ;;  %v952_v63 = vmul.f32 %v4068_v50, %v942_v57  ;;  %v969_v0 = vrot.slane %v4074_v53, 6  ;;  %v970_v1 = vrot.slane %v4077_v54, 6  ;;  %v4145_v23 = vld [vmem:[#allocation3 + $0x68] sm:$0xff] }
 0x170   : > { %v971_v2 = vrot.slane %v4084_v55, 6  ;;  %v972_v3 = vrot.slane %v4087_v56, 6  ;;  %v973_v19 = vrot.slane %v4098_v60, 6  ;;  %v974_v24 = vrot.slane %v4101_v61, 6  ;;  %5631 = vst [vmem:[#allocation22_spill] sm:$0xff] %v4145_v23 }
 0x171   : > { %v953_v7 = vadd.f32 %v951_v62, %v930_v46  ;;  %v954_v18 = vadd.f32 %v952_v63, %v931_v51  ;;  %v949_v25 = vadd.f32 %v947_v58, %v926_v37  ;;  %v950_v26 = vadd.f32 %v948_v59, %v927_v45  ;;  %v4131_v46 = vld [vmem:[#allocation3 + $0x70] sm:$0xff] }
 0x172   : > { %v975_v27 = vsel %vm861_vm1, %v969_v0, %v971_v2  ;;  %v976_v28 = vsel %vm861_vm1, %v970_v1, %v972_v3  ;;  %v977_v29 = vsel %vm861_vm1, %v973_v19, %v967_v14  ;;  %v978_v30 = vsel %vm861_vm1, %v974_v24, %v968_v22  ;;  %v4143_v22 = vld [vmem:[#allocation3 + $0x60] sm:$0xff] }
 0x173   : > { %v985_v31 = vmul.f32 %v4109_v4, %v975_v27  ;;  %v986_v21 = vmul.f32 %v4111_v6, %v976_v28  ;;  %v981_v32 = vmul.f32 %v4109_v4, %v977_v29  ;;  %v982_v35 = vmul.f32 %v4111_v6, %v978_v30  ;;  %5630 = vst [vmem:[#allocation21_spill] sm:$0xff] %v4143_v22 }
 0x174   : > { %v997_v36 = vrot.slane %v4059_v42, 7  ;;  %v998_v37 = vrot.slane %v4062_v44, 7  ;;  %v989_v41 = vmul.f32 %v977_v29, %v3955_v10  ;;  %v990_v45 = vmul.f32 %v978_v30, %v3957_v11 }
 0x175   : > { %v987_v39 = vadd.f32 %v985_v31, %v953_v7  ;;  %v988_v40 = vadd.f32 %v986_v21, %v954_v18  ;;  %v993_v34 = vmul.f32 %v975_v27, %v3955_v10  ;;  %v994_v51 = vmul.f32 %v976_v28, %v3957_v11 }
 0x176   : > { %v999_v8 = vrot.slane %v4074_v53, 7  ;;  %v1000_v9 = vrot.slane %v4077_v54, 7  ;;  %v1001_v52 = vrot.slane %v4084_v55, 7  ;;  %v1002_v12 = vrot.slane %v4087_v56, 7 }
 0x177   : > { %v1003_v13 = vrot.slane %v4098_v60, 7  ;;  %v1004_v14 = vrot.slane %v4101_v61, 7  ;;  %v983_v57 = vadd.f32 %v981_v32, %v949_v25  ;;  %v984_v58 = vadd.f32 %v982_v35, %v950_v26 }
 0x178   : > { %v1029_v59 = vmul.f32 %v4059_v42, %v4131_v46  ;;  %v1030_v62 = vmul.f32 %v4062_v44, %v4133_v47  ;;  %v1005_v63 = vsel %vm884_vm2, %v999_v8, %v1001_v52  ;;  %v1006_v0 = vsel %vm884_vm2, %v1000_v9, %v1002_v12 }
 0x179   : > { %v1007_v1 = vsel %vm884_vm2, %v1003_v13, %v997_v36  ;;  %v1008_v2 = vsel %vm884_vm2, %v1004_v14, %v998_v37  ;;  %v1015_v18 = vmul.f32 %v4143_v22, %v1005_v63  ;;  %v1016_v19 = vmul.f32 %v4145_v23, %v1006_v0 }
 0x17a   : > { %v1011_v3 = vmul.f32 %v4143_v22, %v1007_v1  ;;  %v1012_v7 = vmul.f32 %v4145_v23, %v1008_v2  ;;  %v1019_v24 = vmul.f32 %v1007_v1, %v4003_v43  ;;  %v1020_v25 = vmul.f32 %v1008_v2, %v4009_v48 }
 0x17b   : > { %v1023_v26 = vmul.f32 %v1005_v63, %v4003_v43  ;;  %v1024_v27 = vmul.f32 %v1006_v0, %v4009_v48  ;;  %v1033_v30 = vmul.f32 %v4084_v55, %v4131_v46  ;;  %v1034_v31 = vmul.f32 %v4087_v56, %v4133_v47  ;;  %v4185_v63 = vld [vmem:[#allocation3 + $0x88] sm:$0xff] }
 0x17c   : > { %v1013_v28 = vadd.f32 %v1011_v3, %v983_v57  ;;  %v1014_v29 = vadd.f32 %v1012_v7, %v984_v58  ;;  %v1017_v21 = vadd.f32 %v1015_v18, %v987_v39  ;;  %v1018_v32 = vadd.f32 %v1016_v19, %v988_v40 }
 0x17d   : > { %v1021_v35 = vadd.f32 %v1019_v24, %v989_v41  ;;  %v1022_v36 = vadd.f32 %v1020_v25, %v990_v45  ;;  %v1025_v37 = vadd.f32 %v1023_v26, %v993_v34  ;;  %v1026_v8 = vadd.f32 %v1024_v27, %v994_v51 }
 0x17e   : > { %v1031_v9 = vadd.f32 %v1029_v59, %v1013_v28  ;;  %v1032_v52 = vadd.f32 %v1030_v62, %v1014_v29  ;;  %v1037_v12 = vmul.f32 %v4059_v42, %v3941_v33  ;;  %v1038_v13 = vmul.f32 %v4062_v44, %v3995_v38  ;;  %v4183_v62 = vld [vmem:[#allocation3 + $0x80] sm:$0xff] }
 0x17f   : > { %v1041_v14 = vmul.f32 %v4084_v55, %v3941_v33  ;;  %v1042_v57 = vmul.f32 %v4087_v56, %v3995_v38  ;;  %v1045_v39 = vrot.slane %v4059_v42, 1  ;;  %v1046_v40 = vrot.slane %v4062_v44, 1 }
 0x180   : > { %v1047_v41 = vrot.slane %v4074_v53, 1  ;;  %v1048_v45 = vrot.slane %v4077_v54, 1  ;;  %v1035_v34 = vadd.f32 %v1033_v30, %v1017_v21  ;;  %v1036_v51 = vadd.f32 %v1034_v31, %v1018_v32 }
 0x181   : > { %v1039_v58 = vadd.f32 %v1037_v12, %v1021_v35  ;;  %v1040_v59 = vadd.f32 %v1038_v13, %v1022_v36  ;;  %v1049_v0 = vrot.slane %v4084_v55, 1  ;;  %v1050_v1 = vrot.slane %v4087_v56, 1 }
 0x182   : > { %v1051_v2 = vrot.slane %v4098_v60, 1  ;;  %v1052_v3 = vrot.slane %v4101_v61, 1  ;;  %v1043_v7 = vadd.f32 %v1041_v14, %v1025_v37  ;;  %v1044_v18 = vadd.f32 %v1042_v57, %v1026_v8 }
 0x183   : > { %v1055_v19 = vsel %vm917_vm3, %v1045_v39, %v1047_v41  ;;  %v1056_v24 = vsel %vm917_vm3, %v1046_v40, %v1048_v45  ;;  %v1075_v36 = vrot.slane %v4059_v42, 2  ;;  %v1076_v37 = vrot.slane %v4062_v44, 2  ;;  %v4211_v45 = vld [vmem:[#allocation3 + $0x90] sm:$0xff] }
 0x184   : > { %v1053_v25 = vsel %vm917_vm3, %v1049_v0, %v1051_v2  ;;  %v1054_v26 = vsel %vm917_vm3, %v1050_v1, %v1052_v3  ;;  %v1059_v27 = vmul.f32 %v4183_v62, %v1055_v19  ;;  %v1060_v28 = vmul.f32 %v4185_v63, %v1056_v24  ;;  %5632 = vst [vmem:[#allocation23_spill] sm:$0xff] %v4211_v45  ;;  %v4213_v0 = vld [vmem:[#allocation3 + $0x98] sm:$0xff] }
 0x185   : > { %v1063_v29 = vmul.f32 %v4183_v62, %v1053_v25  ;;  %v1064_v30 = vmul.f32 %v4185_v63, %v1054_v26  ;;  %v1067_v31 = vmul.f32 %v1055_v19, %v4036_v5  ;;  %v1068_v21 = vmul.f32 %v1056_v24, %v4040_v20  ;;  %5633 = vst [vmem:[#allocation24_spill] sm:$0xff] %v4213_v0  ;;  %v4243_v19 = vld [vmem:[%s3943_s24 + $0x98] sm:$0xff]  ;;  %v4246_v24 = vld [vmem:[%s3943_s24 + $0xa0] sm:$0xff] }
 0x186   : > { %v1071_v32 = vmul.f32 %v1053_v25, %v4036_v5  ;;  %v1072_v35 = vmul.f32 %v1054_v26, %v4040_v20  ;;  %v1061_v8 = vadd.f32 %v1059_v27, %v1031_v9  ;;  %v1062_v12 = vadd.f32 %v1060_v28, %v1032_v52  ;;  %v4251_v27 = vld [vmem:[%s3943_s24 + $0xa8] sm:$0xff]  ;;  %v4254_v28 = vld [vmem:[%s3943_s24 + $0xb0] sm:$0xff] }
 0x187   : > { %v1065_v13 = vadd.f32 %v1063_v29, %v1035_v34  ;;  %v1066_v14 = vadd.f32 %v1064_v30, %v1036_v51  ;;  %v1069_v57 = vadd.f32 %v1067_v31, %v1039_v58  ;;  %v1070_v39 = vadd.f32 %v1068_v21, %v1040_v59  ;;  %v4224_v58 = vld [vmem:[%s3943_s24 + $0x80] sm:$0xff]  ;;  %v4257_v29 = vld [vmem:[%s3943_s24 + $0xb8] sm:$0xff] }
 0x188   : > { %v1077_v40 = vrot.slane %v4074_v53, 2  ;;  %v1078_v41 = vrot.slane %v4077_v54, 2  ;;  %v1079_v42 = vrot.slane %v4084_v55, 2  ;;  %v1080_v44 = vrot.slane %v4087_v56, 2  ;;  %v4227_v55 = vld [vmem:[%s3943_s24 + $0x88] sm:$0xff] }
 0x189   : > { %v1081_v9 = vrot.slane %v4098_v60, 2  ;;  %v1082_v52 = vrot.slane %v4101_v61, 2  ;;  %v1073_v34 = vadd.f32 %v1071_v32, %v1043_v7  ;;  %v1074_v51 = vadd.f32 %v1072_v35, %v1044_v18  ;;  %v4240_v18 = vld [vmem:[%s3943_s24 + $0x90] sm:$0xff] }
 0x18a   : > { %v1085_v53 = vsel %vm940_vm4, %v1075_v36, %v1077_v40  ;;  %v1086_v54 = vsel %vm940_vm4, %v1076_v37, %v1078_v41  ;;  %v1117_v30 = vrot.slane %v4224_v58, 6  ;;  %v1118_v31 = vrot.slane %v4227_v55, 6 }
 0x18b   : > { %v1083_v56 = vsel %vm940_vm4, %v1079_v42, %v1081_v9  ;;  %v1084_v60 = vsel %vm940_vm4, %v1080_v44, %v1082_v52  ;;  %v1089_v61 = vmul.f32 %v4211_v45, %v1085_v53  ;;  %v1090_v59 = vmul.f32 %v4213_v0, %v1086_v54 }
 0x18c   : > { %v1093_v1 = vmul.f32 %v4211_v45, %v1083_v56  ;;  %v1094_v2 = vmul.f32 %v4213_v0, %v1084_v60  ;;  %v1097_v3 = vmul.f32 %v1085_v53, %v4066_v49  ;;  %v1098_v7 = vmul.f32 %v1086_v54, %v4068_v50  ;;  %v4267_v54 = vld [vmem:[#allocation3 + $0xa0] sm:$0xff] }
 0x18d   : > { %v1101_v25 = vmul.f32 %v1083_v56, %v4066_v49  ;;  %v1102_v26 = vmul.f32 %v1084_v60, %v4068_v50  ;;  %v1091_v21 = vadd.f32 %v1089_v61, %v1061_v8  ;;  %v1092_v32 = vadd.f32 %v1090_v59, %v1062_v12  ;;  %5634 = vst [vmem:[#allocation25_spill] sm:$0xff] %v4267_v54  ;;  %v4269_v8 = vld [vmem:[#allocation3 + $0xa8] sm:$0xff] }
 0x18e   : > { %v1095_v35 = vadd.f32 %v1093_v1, %v1065_v13  ;;  %v1096_v36 = vadd.f32 %v1094_v2, %v1066_v14  ;;  %v1099_v37 = vadd.f32 %v1097_v3, %v1069_v57  ;;  %v1100_v40 = vadd.f32 %v1098_v7, %v1070_v39  ;;  %5635 = vst [vmem:[#allocation26_spill] sm:$0xff] %v4269_v8 }
 0x18f   : > { %v1119_v41 = vrot.slane %v4240_v18, 6  ;;  %v1120_v42 = vrot.slane %v4243_v19, 6  ;;  %v1121_v44 = vrot.slane %v4246_v24, 6  ;;  %v1122_v9 = vrot.slane %v4251_v27, 6 }
 0x190   : > { %v1123_v52 = vrot.slane %v4254_v28, 6  ;;  %v1124_v53 = vrot.slane %v4257_v29, 6  ;;  %v1103_v12 = vadd.f32 %v1101_v25, %v1073_v34  ;;  %v1104_v13 = vadd.f32 %v1102_v26, %v1074_v51 }
 0x191   : > { %v1155_v14 = vrot.slane %v4224_v58, 7  ;;  %v1156_v57 = vrot.slane %v4227_v55, 7  ;;  %v1125_v39 = vsel %vm861_vm1, %v1119_v41, %v1121_v44  ;;  %v1126_v56 = vsel %vm861_vm1, %v1120_v42, %v1122_v9 }
 0x192   : > { %v1127_v60 = vsel %vm861_vm1, %v1123_v52, %v1117_v30  ;;  %v1128_v61 = vsel %vm861_vm1, %v1124_v53, %v1118_v31  ;;  %v1135_v51 = vmul.f32 %v4267_v54, %v1125_v39  ;;  %v1136_v1 = vmul.f32 %v4269_v8, %v1126_v56  ;;  %v4291_v53 = vld [vmem:[#allocation3 + $0xc0] sm:$0xff] }
 0x193   : > { %v1131_v59 = vmul.f32 %v4267_v54, %v1127_v60  ;;  %v1132_v34 = vmul.f32 %v4269_v8, %v1128_v61  ;;  %v1139_v2 = vmul.f32 %v1127_v60, %v4109_v4  ;;  %v1140_v3 = vmul.f32 %v1128_v61, %v4111_v6  ;;  %5636 = vst [vmem:[#allocation27_spill] sm:$0xff] %v4291_v53 }
 0x194   : > { %v1143_v7 = vmul.f32 %v1125_v39, %v4109_v4  ;;  %v1144_v25 = vmul.f32 %v1126_v56, %v4111_v6  ;;  %v1157_v31 = vrot.slane %v4240_v18, 7  ;;  %v1158_v41 = vrot.slane %v4243_v19, 7 }
 0x195   : > { %v1133_v26 = vadd.f32 %v1131_v59, %v1091_v21  ;;  %v1134_v30 = vadd.f32 %v1132_v34, %v1092_v32  ;;  %v1137_v42 = vadd.f32 %v1135_v51, %v1095_v35  ;;  %v1138_v44 = vadd.f32 %v1136_v1, %v1096_v36  ;;  %v4301_v36 = vld [vmem:[#allocation3 + $0xb0] sm:$0xff] }
 0x196   : > { %v1141_v9 = vadd.f32 %v1139_v2, %v1099_v37  ;;  %v1142_v52 = vadd.f32 %v1140_v3, %v1100_v40  ;;  %v1145_v17 = vadd.f32 %v1143_v7, %v1103_v12  ;;  %v1146_v8 = vadd.f32 %v1144_v25, %v1104_v13  ;;  %5638 = vst [vmem:[#allocation29_spill] sm:$0xff] %v4301_v36  ;;  %v4303_v37 = vld [vmem:[#allocation3 + $0xb8] sm:$0xff] }
 0x197   : > { %v1147_v4 = vmul.f32 %v1127_v60, %v3955_v10  ;;  %v1148_v6 = vmul.f32 %v1128_v61, %v3957_v11  ;;  %v1159_v21 = vrot.slane %v4246_v24, 7  ;;  %v1160_v32 = vrot.slane %v4251_v27, 7  ;;  %5639 = vst [vmem:[#allocation30_spill] sm:$0xff] %v4303_v37 }
 0x198   : > { %v1161_v59 = vrot.slane %v4254_v28, 7  ;;  %v1162_v35 = vrot.slane %v4257_v29, 7  ;;  %v1195_v40 = vmul.f32 %v4224_v58, %v4291_v53  ;;  %v1196_v12 = vmul.f32 %v4227_v55, %v4293_v16 }
 0x199   : > { %v1199_v13 = vmul.f32 %v4246_v24, %v4291_v53  ;;  %v1200_v60 = vmul.f32 %v4251_v27, %v4293_v16  ;;  %v1163_v61 = vsel %vm884_vm2, %v1157_v31, %v1159_v21  ;;  %v1164_v34 = vsel %vm884_vm2, %v1158_v41, %v1160_v32 }
 0x19a   : > { %v1165_v51 = vsel %vm884_vm2, %v1161_v59, %v1155_v14  ;;  %v1166_v1 = vsel %vm884_vm2, %v1162_v35, %v1156_v57  ;;  %v1173_v7 = vmul.f32 %v4301_v36, %v1163_v61  ;;  %v1174_v25 = vmul.f32 %v4303_v37, %v1164_v34 }
 0x19b   : > { %v1169_v2 = vmul.f32 %v4301_v36, %v1165_v51  ;;  %v1170_v3 = vmul.f32 %v4303_v37, %v1166_v1  ;;  %v1177_v16 = vmul.f32 %v1165_v51, %v4143_v22  ;;  %v1178_v31 = vmul.f32 %v1166_v1, %v4145_v23 }
 0x19c   : > { %v1181_v41 = vmul.f32 %v1163_v61, %v4143_v22  ;;  %v1182_v21 = vmul.f32 %v1164_v34, %v4145_v23  ;;  %v1175_v59 = vadd.f32 %v1173_v7, %v1137_v42  ;;  %v1176_v57 = vadd.f32 %v1174_v25, %v1138_v44 }
 0x19d   : > { %v1171_v14 = vadd.f32 %v1169_v2, %v1133_v26  ;;  %v1172_v32 = vadd.f32 %v1170_v3, %v1134_v30  ;;  %v1151_v35 = vmul.f32 %v1125_v39, %v3955_v10  ;;  %v1152_v53 = vmul.f32 %v1126_v56, %v3957_v11 }
 0x19e   : > { %v1179_v54 = vadd.f32 %v1177_v16, %v1141_v9  ;;  %v1180_v36 = vadd.f32 %v1178_v31, %v1142_v52  ;;  %v1185_v37 = vmul.f32 %v1165_v51, %v4003_v43  ;;  %v1186_v50 = vmul.f32 %v1166_v1, %v4009_v48 }
 0x19f   : > { %v1189_v49 = vmul.f32 %v1163_v61, %v4003_v43  ;;  %v1190_v22 = vmul.f32 %v1164_v34, %v4009_v48  ;;  %v1183_v0 = vadd.f32 %v1181_v41, %v1145_v17  ;;  %v1184_v23 = vadd.f32 %v1182_v21, %v1146_v8 }
 0x1a0   : > { %v1197_v26 = vadd.f32 %v1195_v40, %v1171_v14  ;;  %v1198_v30 = vadd.f32 %v1196_v12, %v1172_v32  ;;  %v1187_v42 = vadd.f32 %v1185_v37, %v1147_v4  ;;  %v1188_v44 = vadd.f32 %v1186_v50, %v1148_v6 }
 0x1a1   : > { %v1201_v2 = vadd.f32 %v1199_v13, %v1175_v59  ;;  %v1202_v39 = vadd.f32 %v1200_v60, %v1176_v57  ;;  %v1203_v16 = vmul.f32 %v4224_v58, %v4131_v46  ;;  %v1204_v56 = vmul.f32 %v4227_v55, %v4133_v47 }
 0x1a2   : > { %v1207_v9 = vmul.f32 %v4246_v24, %v4131_v46  ;;  %v1208_v52 = vmul.f32 %v4251_v27, %v4133_v47  ;;  %v1191_v17 = vadd.f32 %v1189_v49, %v1151_v35  ;;  %v1192_v8 = vadd.f32 %v1190_v22, %v1152_v53 }
 0x1a3   : > { %v1211_v4 = vmul.f32 %v4224_v58, %v3941_v33  ;;  %v1212_v50 = vmul.f32 %v4227_v55, %v3995_v38  ;;  %v1205_v6 = vadd.f32 %v1203_v16, %v1179_v54  ;;  %v1206_v37 = vadd.f32 %v1204_v56, %v1180_v36  ;;  %v4355_v54 = vld [vmem:[#allocation3 + $0xd0] sm:$0xff]  ;;  %v4357_v36 = vld [vmem:[#allocation3 + $0xd8] sm:$0xff] }
 0x1a4   : > { %v1215_v40 = vmul.f32 %v4246_v24, %v3941_v33  ;;  %v1216_v12 = vmul.f32 %v4251_v27, %v3995_v38  ;;  %v1209_v13 = vadd.f32 %v1207_v9, %v1183_v0  ;;  %v1210_v60 = vadd.f32 %v1208_v52, %v1184_v23  ;;  %5640 = vst [vmem:[#allocation31_spill] sm:$0xff] %v4357_v36 }
 0x1a5   : > { %v1213_v61 = vadd.f32 %v1211_v4, %v1187_v42  ;;  %v1214_v34 = vadd.f32 %v1212_v50, %v1188_v44  ;;  %v1219_v49 = vrot.slane %v4224_v58, 1  ;;  %v1220_v22 = vrot.slane %v4227_v55, 1 }
 0x1a6   : > { %v1221_v53 = vrot.slane %v4240_v18, 1  ;;  %v1222_v51 = vrot.slane %v4243_v19, 1  ;;  %v1223_v33 = vrot.slane %v4246_v24, 1  ;;  %v1224_v38 = vrot.slane %v4251_v27, 1 }
 0x1a7   : > { %v1225_v23 = vrot.slane %v4254_v28, 1  ;;  %v1226_v0 = vrot.slane %v4257_v29, 1  ;;  %v1217_v1 = vadd.f32 %v1215_v40, %v1191_v17  ;;  %v1218_v3 = vadd.f32 %v1216_v12, %v1192_v8 }
 0x1a8   : > { %v1229_v7 = vsel %vm917_vm3, %v1219_v49, %v1221_v53  ;;  %v1230_v25 = vsel %vm917_vm3, %v1220_v22, %v1222_v51  ;;  %v1257_v16 = vrot.slane %v4224_v58, 2  ;;  %v1258_v56 = vrot.slane %v4227_v55, 2 }
 0x1a9   : > { %v1227_v31 = vsel %vm917_vm3, %v1223_v33, %v1225_v23  ;;  %v1228_v41 = vsel %vm917_vm3, %v1224_v38, %v1226_v0  ;;  %v1233_v21 = vmul.f32 %v4355_v54, %v1229_v7  ;;  %v1234_v14 = vmul.f32 %v4357_v36, %v1230_v25  ;;  %v5643_v0 = vld [vmem:[#allocation24_spill] sm:$0xff] }
 0x1aa   : > { %v1237_v32 = vmul.f32 %v4355_v54, %v1227_v31  ;;  %v1238_v59 = vmul.f32 %v4357_v36, %v1228_v41  ;;  %v1241_v57 = vmul.f32 %v1229_v7, %v4183_v62  ;;  %v1242_v35 = vmul.f32 %v1230_v25, %v4185_v63 }
 0x1ab   : > { %v1245_v42 = vmul.f32 %v1227_v31, %v4183_v62  ;;  %v1246_v44 = vmul.f32 %v1228_v41, %v4185_v63  ;;  %v1235_v9 = vadd.f32 %v1233_v21, %v1197_v26  ;;  %v1236_v52 = vadd.f32 %v1234_v14, %v1198_v30 }
 0x1ac   : > { %v1239_v17 = vadd.f32 %v1237_v32, %v1201_v2  ;;  %v1240_v8 = vadd.f32 %v1238_v59, %v1202_v39  ;;  %v1243_v4 = vadd.f32 %v1241_v57, %v1205_v6  ;;  %v1244_v50 = vadd.f32 %v1242_v35, %v1206_v37  ;;  %v4389_v39 = vld [vmem:[#allocation3 + $0xe0] sm:$0xff]  ;;  %v4391_v6 = vld [vmem:[#allocation3 + $0xe8] sm:$0xff] }
 0x1ad   : > { %v1249_v40 = vmul.f32 %v1229_v7, %v4036_v5  ;;  %v1250_v12 = vmul.f32 %v1230_v25, %v4040_v20  ;;  %v1253_v49 = vmul.f32 %v1227_v31, %v4036_v5  ;;  %v1254_v22 = vmul.f32 %v1228_v41, %v4040_v20  ;;  %5641 = vst [vmem:[#allocation32_spill] sm:$0xff] %v4389_v39  ;;  %v4418_v25 = vld [vmem:[%s3943_s24 + $0xd0] sm:$0xff]  ;;  %v4421_v31 = vld [vmem:[%s3943_s24 + $0xd8] sm:$0xff]  ;;  %v4426_v35 = vld [vmem:[%s3943_s24 + $0xe0] sm:$0xff] }
 0x1ae   : > { %v1259_v53 = vrot.slane %v4240_v18, 2  ;;  %v1260_v58 = vrot.slane %v4243_v19, 2  ;;  %v1247_v55 = vadd.f32 %v1245_v42, %v1209_v13  ;;  %v1248_v26 = vadd.f32 %v1246_v44, %v1210_v60  ;;  %5642 = vst [vmem:[#allocation33_spill] sm:$0xff] %v4391_v6  ;;  %v4403_v60 = vld [vmem:[%s3943_s24 + $0xc8] sm:$0xff] }
 0x1af   : > { %v1261_v30 = vrot.slane %v4246_v24, 2  ;;  %v1262_v2 = vrot.slane %v4251_v27, 2  ;;  %v1251_v37 = vadd.f32 %v1249_v40, %v1213_v61  ;;  %v1252_v5 = vadd.f32 %v1250_v12, %v1214_v34  ;;  %v4400_v27 = vld [vmem:[%s3943_s24 + $0xc0] sm:$0xff]  ;;  %v4429_v42 = vld [vmem:[%s3943_s24 + $0xe8] sm:$0xff] }
 0x1b0   : > { %v1263_v20 = vrot.slane %v4254_v28, 2  ;;  %v1264_v18 = vrot.slane %v4257_v29, 2  ;;  %v1255_v51 = vadd.f32 %v1253_v49, %v1217_v1  ;;  %v1256_v19 = vadd.f32 %v1254_v22, %v1218_v3  ;;  %v5645_v12 = vld [vmem:[#allocation18_spill] sm:$0xff] }
 0x1b1   : > { %v1267_v13 = vsel %vm940_vm4, %v1257_v16, %v1259_v53  ;;  %v1268_v24 = vsel %vm940_vm4, %v1258_v56, %v1260_v58  ;;  %v1307_v41 = vrot.slane %v4400_v27, 6  ;;  %v1308_v21 = vrot.slane %v4403_v60, 6  ;;  %v5644_v56 = vld [vmem:[#allocation17_spill] sm:$0xff]  ;;  %v4434_v22 = vld [vmem:[%s3943_s24 + $0xf0] sm:$0xff]  ;;  %v4437_v53 = vld [vmem:[%s3943_s24 + $0xf8] sm:$0xff] }
 0x1b2   : > { %v1265_v61 = vsel %vm940_vm4, %v1261_v30, %v1263_v20  ;;  %v1266_v28 = vsel %vm940_vm4, %v1262_v2, %v1264_v18  ;;  %v1271_v29 = vmul.f32 %v4389_v39, %v1267_v13  ;;  %v1272_v34 = vmul.f32 %v4391_v6, %v1268_v24  ;;  %v4445_v2 = vld [vmem:[#allocation3 + $0xf0] sm:$0xff]  ;;  %v4447_v20 = vld [vmem:[#allocation3 + $0xf8] sm:$0xff] }
 0x1b3   : > { %v1275_v33 = vmul.f32 %v4389_v39, %v1265_v61  ;;  %v1276_v38 = vmul.f32 %v4391_v6, %v1266_v28  ;;  %v1279_v23 = vmul.f32 %v1267_v13, %v4211_v45  ;;  %v1280_v1 = vmul.f32 %v1268_v24, %v5643_v0  ;;  %5646 = vst [vmem:[#allocation17_spill] sm:$0xff] %v4445_v2 }
 0x1b4   : > { %v1283_v3 = vmul.f32 %v1265_v61, %v4211_v45  ;;  %v1284_v7 = vmul.f32 %v1266_v28, %v5643_v0  ;;  %v1273_v14 = vadd.f32 %v1271_v29, %v1235_v9  ;;  %v1274_v32 = vadd.f32 %v1272_v34, %v1236_v52  ;;  %5647 = vst [vmem:[#allocation18_spill] sm:$0xff] %v4447_v20 }
 0x1b5   : > { %v1277_v59 = vadd.f32 %v1275_v33, %v1239_v17  ;;  %v1278_v57 = vadd.f32 %v1276_v38, %v1240_v8  ;;  %v1281_v44 = vadd.f32 %v1279_v23, %v1243_v4  ;;  %v1282_v16 = vadd.f32 %v1280_v1, %v1244_v50  ;;  %v5649_v1 = vld [vmem:[#allocation26_spill] sm:$0xff] }
 0x1b6   : > { %v1287_v40 = vmul.f32 %v1267_v13, %v5644_v56  ;;  %v1288_v49 = vmul.f32 %v1268_v24, %v5645_v12  ;;  %v1291_v58 = vmul.f32 %v1265_v61, %v5644_v56  ;;  %v1292_v9 = vmul.f32 %v1266_v28, %v5645_v12 }
 0x1b7   : > { %v1309_v52 = vrot.slane %v4418_v25, 6  ;;  %v1310_v17 = vrot.slane %v4421_v31, 6  ;;  %v1285_v8 = vadd.f32 %v1283_v3, %v1247_v55  ;;  %v1286_v30 = vadd.f32 %v1284_v7, %v1248_v26 }
 0x1b8   : > { %v1311_v4 = vrot.slane %v4426_v35, 6  ;;  %v1312_v50 = vrot.slane %v4429_v42, 6  ;;  %v1289_v18 = vadd.f32 %v1287_v40, %v1251_v37  ;;  %v1290_v13 = vadd.f32 %v1288_v49, %v1252_v5 }
 0x1b9   : > { %v1313_v24 = vrot.slane %v4434_v22, 6  ;;  %v1314_v61 = vrot.slane %v4437_v53, 6  ;;  %v1293_v28 = vadd.f32 %v1291_v58, %v1255_v51  ;;  %v1294_v29 = vadd.f32 %v1292_v9, %v1256_v19  ;;  %v5648_v19 = vld [vmem:[#allocation25_spill] sm:$0xff] }
 0x1ba   : > { %v1315_v55 = vsel %vm861_vm1, %v1309_v52, %v1311_v4  ;;  %v1316_v26 = vsel %vm861_vm1, %v1310_v17, %v1312_v50  ;;  %v5650_v17 = vld [vmem:[#allocation19_spill] sm:$0xff]  ;;  %v5651_v50 = vld [vmem:[#allocation20_spill] sm:$0xff] }
 0x1bb   : > { %v1317_v34 = vsel %vm861_vm1, %v1313_v24, %v1307_v41  ;;  %v1318_v33 = vsel %vm861_vm1, %v1314_v61, %v1308_v21  ;;  %v1325_v37 = vmul.f32 %v4445_v2, %v1315_v55  ;;  %v1326_v5 = vmul.f32 %v4447_v20, %v1316_v26 }
 0x1bc   : > { %v1321_v38 = vmul.f32 %v4445_v2, %v1317_v34  ;;  %v1322_v51 = vmul.f32 %v4447_v20, %v1318_v33  ;;  %v1329_v23 = vmul.f32 %v1317_v34, %v5648_v19  ;;  %v1330_v3 = vmul.f32 %v1318_v33, %v5649_v1 }
 0x1bd   : > { %v1333_v7 = vmul.f32 %v1315_v55, %v5648_v19  ;;  %v1334_v56 = vmul.f32 %v1316_v26, %v5649_v1  ;;  %v1353_v41 = vrot.slane %v4400_v27, 7  ;;  %v1354_v21 = vrot.slane %v4403_v60, 7 }
 0x1be   : > { %v1323_v40 = vadd.f32 %v1321_v38, %v1273_v14  ;;  %v1324_v12 = vadd.f32 %v1322_v51, %v1274_v32  ;;  %v1327_v49 = vadd.f32 %v1325_v37, %v1277_v59  ;;  %v1328_v58 = vadd.f32 %v1326_v5, %v1278_v57  ;;  %v4475_v32 = vld [vmem:[#allocation3 + $0x110] sm:$0xff]  ;;  %v4477_v59 = vld [vmem:[#allocation3 + $0x118] sm:$0xff]  ;;  %v4489_v37 = vld [vmem:[#allocation3 + $0x108] sm:$0xff] }
 0x1bf   : > { %v1331_v9 = vadd.f32 %v1329_v23, %v1281_v44  ;;  %v1332_v52 = vadd.f32 %v1330_v3, %v1282_v16  ;;  %v1337_v4 = vmul.f32 %v1317_v34, %v5650_v17  ;;  %v1338_v24 = vmul.f32 %v1318_v33, %v5651_v50  ;;  %5652 = vst [vmem:[#allocation19_spill] sm:$0xff] %v4475_v32  ;;  %v5656_v3 = vld [vmem:[#allocation29_spill] sm:$0xff] }
 0x1c0   : > { %v1335_v61 = vadd.f32 %v1333_v7, %v1285_v8  ;;  %v1336_v20 = vadd.f32 %v1334_v56, %v1286_v30  ;;  %v1341_v19 = vmul.f32 %v1315_v55, %v5650_v17  ;;  %v1342_v1 = vmul.f32 %v1316_v26, %v5651_v50  ;;  %5653 = vst [vmem:[#allocation20_spill] sm:$0xff] %v4477_v59  ;;  %v5657_v56 = vld [vmem:[#allocation30_spill] sm:$0xff] }
 0x1c1   : > { %v1339_v2 = vadd.f32 %v1337_v4, %v1289_v18  ;;  %v1340_v0 = vadd.f32 %v1338_v24, %v1290_v13  ;;  %v1345_v45 = vmul.f32 %v1317_v34, %v3955_v10  ;;  %v1346_v14 = vmul.f32 %v1318_v33, %v3957_v11  ;;  %v4487_v33 = vld [vmem:[#allocation3 + $0x100] sm:$0xff]  ;;  %5655 = vst [vmem:[#allocation35_spill] sm:$0xff] %v4489_v37 }
 0x1c2   : > { %v1349_v57 = vmul.f32 %v1315_v55, %v3955_v10  ;;  %v1350_v44 = vmul.f32 %v1316_v26, %v3957_v11  ;;  %v1355_v16 = vrot.slane %v4418_v25, 7  ;;  %v1356_v8 = vrot.slane %v4421_v31, 7  ;;  %5654 = vst [vmem:[#allocation34_spill] sm:$0xff] %v4487_v33 }
 0x1c3   : > { %v1357_v30 = vrot.slane %v4426_v35, 7  ;;  %v1358_v18 = vrot.slane %v4429_v42, 7  ;;  %v1359_v13 = vrot.slane %v4434_v22, 7  ;;  %v1360_v34 = vrot.slane %v4437_v53, 7 }
 0x1c4   : > { %v1343_v5 = vadd.f32 %v1341_v19, %v1293_v28  ;;  %v1344_v10 = vadd.f32 %v1342_v1, %v1294_v29  ;;  %v1401_v11 = vmul.f32 %v4400_v27, %v4475_v32  ;;  %v1402_v55 = vmul.f32 %v4403_v60, %v4477_v59 }
 0x1c5   : > { %v1361_v26 = vsel %vm884_vm2, %v1355_v16, %v1357_v30  ;;  %v1362_v38 = vsel %vm884_vm2, %v1356_v8, %v1358_v18  ;;  %v1363_v51 = vsel %vm884_vm2, %v1359_v13, %v1353_v41  ;;  %v1364_v23 = vsel %vm884_vm2, %v1360_v34, %v1354_v21  ;;  %v5658_v34 = vld [vmem:[#allocation21_spill] sm:$0xff] }
 0x1c6   : > { %v1367_v28 = vmul.f32 %v4487_v33, %v1363_v51  ;;  %v1368_v29 = vmul.f32 %v4489_v37, %v1364_v23  ;;  %v1371_v19 = vmul.f32 %v4487_v33, %v1361_v26  ;;  %v1372_v1 = vmul.f32 %v4489_v37, %v1362_v38  ;;  %v5659_v33 = vld [vmem:[#allocation22_spill] sm:$0xff] }
 0x1c7   : > { %v1375_v7 = vmul.f32 %v1363_v51, %v5656_v3  ;;  %v1376_v17 = vmul.f32 %v1364_v23, %v5657_v56  ;;  %v1405_v4 = vmul.f32 %v4426_v35, %v4475_v32  ;;  %v1406_v41 = vmul.f32 %v4429_v42, %v4477_v59 }
 0x1c8   : > { %v1369_v50 = vadd.f32 %v1367_v28, %v1323_v40  ;;  %v1370_v21 = vadd.f32 %v1368_v29, %v1324_v12  ;;  %v1379_v24 = vmul.f32 %v1361_v26, %v5656_v3  ;;  %v1380_v16 = vmul.f32 %v1362_v38, %v5657_v56  ;;  %v5660_v3 = vld [vmem:[#allocation27_spill] sm:$0xff] }
 0x1c9   : > { %v1373_v8 = vadd.f32 %v1371_v19, %v1327_v49  ;;  %v1374_v30 = vadd.f32 %v1372_v1, %v1328_v58  ;;  %v1377_v18 = vadd.f32 %v1375_v7, %v1331_v9  ;;  %v1378_v13 = vadd.f32 %v1376_v17, %v1332_v52 }
 0x1ca   : > { %v1383_v37 = vmul.f32 %v1363_v51, %v5658_v34  ;;  %v1384_v6 = vmul.f32 %v1364_v23, %v5659_v33  ;;  %v1387_v39 = vmul.f32 %v1361_v26, %v5658_v34  ;;  %v1388_v32 = vmul.f32 %v1362_v38, %v5659_v33 }
 0x1cb   : > { %v1391_v59 = vmul.f32 %v1363_v51, %v4003_v43  ;;  %v1392_v40 = vmul.f32 %v1364_v23, %v4009_v48  ;;  %v1395_v12 = vmul.f32 %v1361_v26, %v4003_v43  ;;  %v1396_v28 = vmul.f32 %v1362_v38, %v4009_v48  ;;  %v5661_v23 = vld [vmem:[#allocation28_spill] sm:$0xff] }
 0x1cc   : > { %v1381_v49 = vadd.f32 %v1379_v24, %v1335_v61  ;;  %v1382_v58 = vadd.f32 %v1380_v16, %v1336_v20  ;;  %v1385_v9 = vadd.f32 %v1383_v37, %v1339_v2  ;;  %v1386_v52 = vadd.f32 %v1384_v6, %v1340_v0 }
 0x1cd   : > { %v1389_v29 = vadd.f32 %v1387_v39, %v1343_v5  ;;  %v1390_v19 = vadd.f32 %v1388_v32, %v1344_v10  ;;  %v1393_v1 = vadd.f32 %v1391_v59, %v1345_v45  ;;  %v1394_v7 = vadd.f32 %v1392_v40, %v1346_v14  ;;  %v3349_v5 = vld [vmem:[#allocation3 + $0x20] sm:$0xff] }
 0x1ce   : > { %v1397_v17 = vadd.f32 %v1395_v12, %v1349_v57  ;;  %v1398_v34 = vadd.f32 %v1396_v28, %v1350_v44  ;;  %v1403_v56 = vadd.f32 %v1401_v11, %v1369_v50  ;;  %v1404_v33 = vadd.f32 %v1402_v55, %v1370_v21  ;;  %v3350_v11 = vld [vmem:[#allocation3 + $0x28] sm:$0xff] }
 0x1cf   : > { %v1409_v51 = vmul.f32 %v4400_v27, %v5660_v3  ;;  %v1410_v43 = vmul.f32 %v4403_v60, %v5661_v23  ;;  %v1413_v48 = vmul.f32 %v4426_v35, %v5660_v3  ;;  %v1414_v6 = vmul.f32 %v4429_v42, %v5661_v23 }
 0x1d0   : > { %v1407_v39 = vadd.f32 %v1405_v4, %v1373_v8  ;;  %v1408_v0 = vadd.f32 %v1406_v41, %v1374_v30  ;;  %v1417_v45 = vmul.f32 %v4400_v27, %v4131_v46  ;;  %v1418_v2 = vmul.f32 %v4403_v60, %v4133_v47  ;;  %v4547_v8 = vld [vmem:[#allocation3 + $0x120] sm:$0xff]  ;;  %v4549_v30 = vld [vmem:[#allocation3 + $0x128] sm:$0xff] }
 0x1d1   : > { %v1411_v20 = vadd.f32 %v1409_v51, %v1377_v18  ;;  %v1412_v61 = vadd.f32 %v1410_v43, %v1378_v13  ;;  %v1421_v14 = vmul.f32 %v4426_v35, %v4131_v46  ;;  %v1422_v32 = vmul.f32 %v4429_v42, %v4133_v47 }
 0x1d2   : > { %v1415_v59 = vadd.f32 %v1413_v48, %v1381_v49  ;;  %v1416_v57 = vadd.f32 %v1414_v6, %v1382_v58  ;;  %v1419_v44 = vadd.f32 %v1417_v45, %v1385_v9  ;;  %v1420_v37 = vadd.f32 %v1418_v2, %v1386_v52 }
 0x1d3   : > { %v1425_v10 = vmul.f32 %v3349_v5, %v4400_v27  ;;  %v1426_v55 = vmul.f32 %v3350_v11, %v4403_v60  ;;  %v1429_v26 = vmul.f32 %v3349_v5, %v4426_v35  ;;  %v1430_v38 = vmul.f32 %v3350_v11, %v4429_v42 }
 0x1d4   : > { %v1433_v4 = vrot.slane %v4400_v27, 1  ;;  %v1434_v46 = vrot.slane %v4403_v60, 1  ;;  %v1435_v47 = vrot.slane %v4418_v25, 1  ;;  %v1436_v41 = vrot.slane %v4421_v31, 1 }
 0x1d5   : > { %v1423_v50 = vadd.f32 %v1421_v14, %v1389_v29  ;;  %v1424_v21 = vadd.f32 %v1422_v32, %v1390_v19  ;;  %v1427_v24 = vadd.f32 %v1425_v10, %v1393_v1  ;;  %v1428_v16 = vadd.f32 %v1426_v55, %v1394_v7 }
 0x1d6   : > { %v1437_v18 = vrot.slane %v4426_v35, 1  ;;  %v1438_v13 = vrot.slane %v4429_v42, 1  ;;  %v1439_v40 = vrot.slane %v4434_v22, 1  ;;  %v1440_v12 = vrot.slane %v4437_v53, 1 }
 0x1d7   : > { %v1431_v28 = vadd.f32 %v1429_v26, %v1397_v17  ;;  %v1432_v49 = vadd.f32 %v1430_v38, %v1398_v34  ;;  %v1443_v58 = vsel %vm917_vm3, %v1433_v4, %v1435_v47  ;;  %v1444_v9 = vsel %vm917_vm3, %v1434_v46, %v1436_v41  ;;  %v3351_v46 = vld [vmem:[#allocation3 + $0x30] sm:$0xff]  ;;  %v3352_v41 = vld [vmem:[#allocation3 + $0x38] sm:$0xff] }
 0x1d8   : > { %v1441_v52 = vsel %vm917_vm3, %v1437_v18, %v1439_v40  ;;  %v1442_v29 = vsel %vm917_vm3, %v1438_v13, %v1440_v12  ;;  %v1447_v19 = vmul.f32 %v4547_v8, %v1443_v58  ;;  %v1448_v1 = vmul.f32 %v4549_v30, %v1444_v9  ;;  %v4579_v12 = vld [vmem:[#allocation3 + $0x130] sm:$0xff] }
 0x1d9   : > { %v1451_v7 = vmul.f32 %v4547_v8, %v1441_v52  ;;  %v1452_v17 = vmul.f32 %v4549_v30, %v1442_v29  ;;  %v1455_v34 = vmul.f32 %v1443_v58, %v4355_v54  ;;  %v1456_v51 = vmul.f32 %v1444_v9, %v4357_v36  ;;  %5662 = vst [vmem:[#allocation21_spill] sm:$0xff] %v4579_v12 }
 0x1da   : > { %v1459_v43 = vmul.f32 %v1441_v52, %v4355_v54  ;;  %v1460_v48 = vmul.f32 %v1442_v29, %v4357_v36  ;;  %v1479_v6 = vrot.slane %v4400_v27, 2  ;;  %v1480_v45 = vrot.slane %v4403_v60, 2  ;;  %v5682_v36 = vld [vmem:[#allocation19_spill] sm:$0xff] }
 0x1db   : > { %v1449_v2 = vadd.f32 %v1447_v19, %v1403_v56  ;;  %v1450_v14 = vadd.f32 %v1448_v1, %v1404_v33  ;;  %v1453_v32 = vadd.f32 %v1451_v7, %v1407_v39  ;;  %v1454_v5 = vadd.f32 %v1452_v17, %v1408_v0 }
 0x1dc   : > { %v1457_v10 = vadd.f32 %v1455_v34, %v1411_v20  ;;  %v1458_v11 = vadd.f32 %v1456_v51, %v1412_v61  ;;  %v1463_v55 = vmul.f32 %v1443_v58, %v4183_v62  ;;  %v1464_v26 = vmul.f32 %v1444_v9, %v4185_v63 }
 0x1dd   : > { %v1467_v38 = vmul.f32 %v1441_v52, %v4183_v62  ;;  %v1468_v4 = vmul.f32 %v1442_v29, %v4185_v63  ;;  %v1471_v47 = vmul.f32 %v3351_v46, %v1443_v58  ;;  %v1472_v27 = vmul.f32 %v3352_v41, %v1444_v9  ;;  %v4581_v58 = vld [vmem:[#allocation3 + $0x138] sm:$0xff] }
 0x1de   : > { %v1461_v18 = vadd.f32 %v1459_v43, %v1415_v59  ;;  %v1462_v60 = vadd.f32 %v1460_v48, %v1416_v57  ;;  %v1475_v56 = vmul.f32 %v3351_v46, %v1441_v52  ;;  %v1476_v33 = vmul.f32 %v3352_v41, %v1442_v29  ;;  %5663 = vst [vmem:[#allocation22_spill] sm:$0xff] %v4581_v58  ;;  %v5664_v9 = vld [vmem:[#allocation32_spill] sm:$0xff]  ;;  %v5665_v29 = vld [vmem:[#allocation33_spill] sm:$0xff] }
 0x1df   : > { %v1465_v39 = vadd.f32 %v1463_v55, %v1419_v44  ;;  %v1466_v0 = vadd.f32 %v1464_v26, %v1420_v37  ;;  %v1469_v20 = vadd.f32 %v1467_v38, %v1423_v50  ;;  %v1470_v61 = vadd.f32 %v1468_v4, %v1424_v21  ;;  %v5666_v26 = vld [vmem:[#allocation23_spill] sm:$0xff]  ;;  %v5667_v4 = vld [vmem:[#allocation24_spill] sm:$0xff] }
 0x1e0   : > { %v1473_v13 = vadd.f32 %v1471_v47, %v1427_v24  ;;  %v1474_v40 = vadd.f32 %v1472_v27, %v1428_v16  ;;  %v1481_v62 = vrot.slane %v4418_v25, 2  ;;  %v1482_v63 = vrot.slane %v4421_v31, 2  ;;  %v4592_v31 = vld [vmem:[%s3943_s24 + $0x100] sm:$0xff]  ;;  %v4595_v16 = vld [vmem:[%s3943_s24 + $0x108] sm:$0xff] }
 0x1e1   : > { %v1483_v59 = vrot.slane %v4426_v35, 2  ;;  %v1484_v57 = vrot.slane %v4429_v42, 2  ;;  %v1485_v44 = vrot.slane %v4434_v22, 2  ;;  %v1486_v37 = vrot.slane %v4437_v53, 2  ;;  %v3353_v27 = vld [vmem:[#allocation3 + $0x40] sm:$0xff] }
 0x1e2   : > { %v1477_v50 = vadd.f32 %v1475_v56, %v1431_v28  ;;  %v1478_v21 = vadd.f32 %v1476_v33, %v1432_v49  ;;  %v1489_v24 = vsel %vm940_vm4, %v1479_v6, %v1481_v62  ;;  %v1490_v25 = vsel %vm940_vm4, %v1480_v45, %v1482_v63 }
 0x1e3   : > { %v1487_v35 = vsel %vm940_vm4, %v1483_v59, %v1485_v44  ;;  %v1488_v42 = vsel %vm940_vm4, %v1484_v57, %v1486_v37  ;;  %v1493_v22 = vmul.f32 %v4579_v12, %v1489_v24  ;;  %v1494_v53 = vmul.f32 %v4581_v58, %v1490_v25  ;;  %v4625_v59 = vld [vmem:[%s3943_s24 + $0x128] sm:$0xff]  ;;  %v4628_v57 = vld [vmem:[%s3943_s24 + $0x130] sm:$0xff]  ;;  %v4631_v44 = vld [vmem:[%s3943_s24 + $0x138] sm:$0xff] }
 0x1e4   : > { %v1497_v28 = vmul.f32 %v4579_v12, %v1487_v35  ;;  %v1498_v49 = vmul.f32 %v4581_v58, %v1488_v42  ;;  %v1501_v52 = vmul.f32 %v1489_v24, %v5664_v9  ;;  %v1502_v19 = vmul.f32 %v1490_v25, %v5665_v29 }
 0x1e5   : > { %v1505_v1 = vmul.f32 %v1487_v35, %v5664_v9  ;;  %v1506_v7 = vmul.f32 %v1488_v42, %v5665_v29  ;;  %v1537_v17 = vrot.slane %v4592_v31, 6  ;;  %v1538_v34 = vrot.slane %v4595_v16, 6  ;;  %v3355_v9 = vld [vmem:[#allocation3 + $0x50] sm:$0xff] }
 0x1e6   : > { %v1495_v51 = vadd.f32 %v1493_v22, %v1449_v2  ;;  %v1496_v43 = vadd.f32 %v1494_v53, %v1450_v14  ;;  %v1499_v48 = vadd.f32 %v1497_v28, %v1453_v32  ;;  %v1500_v6 = vadd.f32 %v1498_v49, %v1454_v5  ;;  %v3354_v2 = vld [vmem:[#allocation3 + $0x48] sm:$0xff]  ;;  %v4616_v14 = vld [vmem:[%s3943_s24 + $0x110] sm:$0xff]  ;;  %v4619_v32 = vld [vmem:[%s3943_s24 + $0x118] sm:$0xff] }
 0x1e7   : > { %v1503_v45 = vadd.f32 %v1501_v52, %v1457_v10  ;;  %v1504_v55 = vadd.f32 %v1502_v19, %v1458_v11  ;;  %v1509_v38 = vmul.f32 %v1489_v24, %v5666_v26  ;;  %v1510_v46 = vmul.f32 %v1490_v25, %v5667_v4  ;;  %v4622_v5 = vld [vmem:[%s3943_s24 + $0x120] sm:$0xff] }
 0x1e8   : > { %v1513_v47 = vmul.f32 %v1487_v35, %v5666_v26  ;;  %v1514_v41 = vmul.f32 %v1488_v42, %v5667_v4  ;;  %v1517_v56 = vmul.f32 %v3353_v27, %v1489_v24  ;;  %v1518_v33 = vmul.f32 %v3354_v2, %v1490_v25  ;;  %v4639_v19 = vld [vmem:[#allocation3 + $0x140] sm:$0xff] }
 0x1e9   : > { %v1507_v10 = vadd.f32 %v1505_v1, %v1461_v18  ;;  %v1508_v11 = vadd.f32 %v1506_v7, %v1462_v60  ;;  %v1521_v62 = vmul.f32 %v3353_v27, %v1487_v35  ;;  %v1522_v63 = vmul.f32 %v3354_v2, %v1488_v42  ;;  %5668 = vst [vmem:[#allocation27_spill] sm:$0xff] %v4639_v19 }
 0x1ea   : > { %v1511_v37 = vadd.f32 %v1509_v38, %v1465_v39  ;;  %v1512_v24 = vadd.f32 %v1510_v46, %v1466_v0  ;;  %v1515_v22 = vadd.f32 %v1513_v47, %v1469_v20  ;;  %v1516_v25 = vadd.f32 %v1514_v41, %v1470_v61  ;;  %v4641_v39 = vld [vmem:[#allocation3 + $0x148] sm:$0xff] }
 0x1eb   : > { %v1519_v53 = vadd.f32 %v1517_v56, %v1473_v13  ;;  %v1520_v28 = vadd.f32 %v1518_v33, %v1474_v40  ;;  %v1539_v49 = vrot.slane %v4616_v14, 6  ;;  %v1540_v52 = vrot.slane %v4619_v32, 6  ;;  %5669 = vst [vmem:[#allocation28_spill] sm:$0xff] %v4641_v39  ;;  %v5670_v46 = vld [vmem:[#allocation17_spill] sm:$0xff]  ;;  %v5671_v41 = vld [vmem:[#allocation18_spill] sm:$0xff] }
 0x1ec   : > { %v1541_v18 = vrot.slane %v4622_v5, 6  ;;  %v1542_v60 = vrot.slane %v4625_v59, 6  ;;  %v1543_v35 = vrot.slane %v4628_v57, 6  ;;  %v1544_v42 = vrot.slane %v4631_v44, 6 }
 0x1ed   : > { %v1523_v0 = vadd.f32 %v1521_v62, %v1477_v50  ;;  %v1524_v20 = vadd.f32 %v1522_v63, %v1478_v21  ;;  %v1583_v61 = vrot.slane %v4592_v31, 7  ;;  %v1584_v13 = vrot.slane %v4595_v16, 7 }
 0x1ee   : > { %v1545_v40 = vsel %vm861_vm1, %v1539_v49, %v1541_v18  ;;  %v1546_v1 = vsel %vm861_vm1, %v1540_v52, %v1542_v60  ;;  %v1547_v7 = vsel %vm861_vm1, %v1543_v35, %v1537_v17  ;;  %v1548_v26 = vsel %vm861_vm1, %v1544_v42, %v1538_v34  ;;  %v5672_v60 = vld [vmem:[#allocation25_spill] sm:$0xff]  ;;  %v5673_v42 = vld [vmem:[#allocation26_spill] sm:$0xff] }
 0x1ef   : > { %v1551_v38 = vmul.f32 %v4639_v19, %v1547_v7  ;;  %v1552_v50 = vmul.f32 %v4641_v39, %v1548_v26  ;;  %v1555_v21 = vmul.f32 %v4639_v19, %v1545_v40  ;;  %v1556_v4 = vmul.f32 %v4641_v39, %v1546_v1 }
 0x1f0   : > { %v1559_v47 = vmul.f32 %v1547_v7, %v5670_v46  ;;  %v1560_v27 = vmul.f32 %v1548_v26, %v5671_v41  ;;  %v1585_v56 = vrot.slane %v4616_v14, 7  ;;  %v1586_v2 = vrot.slane %v4619_v32, 7 }
 0x1f1   : > { %v1553_v17 = vadd.f32 %v1551_v38, %v1495_v51  ;;  %v1554_v33 = vadd.f32 %v1552_v50, %v1496_v43  ;;  %v1563_v34 = vmul.f32 %v1545_v40, %v5670_v46  ;;  %v1564_v62 = vmul.f32 %v1546_v1, %v5671_v41  ;;  %v3356_v51 = vld [vmem:[#allocation3 + $0x58] sm:$0xff] }
 0x1f2   : > { %v1557_v63 = vadd.f32 %v1555_v21, %v1499_v48  ;;  %v1558_v49 = vadd.f32 %v1556_v4, %v1500_v6  ;;  %v1561_v52 = vadd.f32 %v1559_v47, %v1503_v45  ;;  %v1562_v18 = vadd.f32 %v1560_v27, %v1504_v55  ;;  %v4667_v45 = vld [vmem:[#allocation3 + $0x160] sm:$0xff]  ;;  %v4669_v55 = vld [vmem:[#allocation3 + $0x168] sm:$0xff] }
 0x1f3   : > { %v1567_v35 = vmul.f32 %v1547_v7, %v5672_v60  ;;  %v1568_v39 = vmul.f32 %v1548_v26, %v5673_v42  ;;  %v1571_v19 = vmul.f32 %v1545_v40, %v5672_v60  ;;  %v1572_v29 = vmul.f32 %v1546_v1, %v5673_v42  ;;  %5674 = vst [vmem:[#allocation23_spill] sm:$0xff] %v4667_v45 }
 0x1f4   : > { %v1575_v58 = vmul.f32 %v3355_v9, %v1547_v7  ;;  %v1576_v43 = vmul.f32 %v3356_v51, %v1548_v26  ;;  %v1579_v38 = vmul.f32 %v3355_v9, %v1545_v40  ;;  %v1580_v50 = vmul.f32 %v3356_v51, %v1546_v1  ;;  %5675 = vst [vmem:[#allocation24_spill] sm:$0xff] %v4669_v55  ;;  %v5678_v40 = vld [vmem:[#allocation34_spill] sm:$0xff] }
 0x1f5   : > { %v1565_v46 = vadd.f32 %v1563_v34, %v1507_v10  ;;  %v1566_v41 = vadd.f32 %v1564_v62, %v1508_v11  ;;  %v1569_v48 = vadd.f32 %v1567_v35, %v1511_v37  ;;  %v1570_v6 = vadd.f32 %v1568_v39, %v1512_v24  ;;  %v4675_v10 = vld [vmem:[#allocation3 + $0x150] sm:$0xff]  ;;  %v4677_v11 = vld [vmem:[#allocation3 + $0x158] sm:$0xff] }
 0x1f6   : > { %v1573_v21 = vadd.f32 %v1571_v19, %v1515_v22  ;;  %v1574_v4 = vadd.f32 %v1572_v29, %v1516_v25  ;;  %v1577_v47 = vadd.f32 %v1575_v58, %v1519_v53  ;;  %v1578_v27 = vadd.f32 %v1576_v43, %v1520_v28  ;;  %5676 = vst [vmem:[#allocation25_spill] sm:$0xff] %v4675_v10 }
 0x1f7   : > { %v1587_v60 = vrot.slane %v4622_v5, 7  ;;  %v1588_v7 = vrot.slane %v4625_v59, 7  ;;  %v1589_v26 = vrot.slane %v4628_v57, 7  ;;  %v1590_v9 = vrot.slane %v4631_v44, 7  ;;  %5677 = vst [vmem:[#allocation26_spill] sm:$0xff] %v4677_v11 }
 0x1f8   : > { %v1581_v37 = vadd.f32 %v1579_v38, %v1523_v0  ;;  %v1582_v24 = vadd.f32 %v1580_v50, %v1524_v20  ;;  %v1631_v22 = vmul.f32 %v4592_v31, %v4667_v45  ;;  %v1632_v58 = vmul.f32 %v4595_v16, %v4669_v55 }
 0x1f9   : > { %v1591_v29 = vsel %vm884_vm2, %v1585_v56, %v1587_v60  ;;  %v1592_v25 = vsel %vm884_vm2, %v1586_v2, %v1588_v7  ;;  %v1593_v53 = vsel %vm884_vm2, %v1589_v26, %v1583_v61  ;;  %v1594_v28 = vsel %vm884_vm2, %v1590_v9, %v1584_v13  ;;  %v5679_v56 = vld [vmem:[#allocation35_spill] sm:$0xff]  ;;  %v5680_v60 = vld [vmem:[#allocation29_spill] sm:$0xff]  ;;  %v5681_v26 = vld [vmem:[#allocation30_spill] sm:$0xff] }
 0x1fa   : > { %v1597_v19 = vmul.f32 %v4675_v10, %v1593_v53  ;;  %v1598_v39 = vmul.f32 %v4677_v11, %v1594_v28  ;;  %v1601_v0 = vmul.f32 %v4675_v10, %v1591_v29  ;;  %v1602_v20 = vmul.f32 %v4677_v11, %v1592_v25  ;;  %v3357_v10 = vld [vmem:[#allocation3 + $0x60] sm:$0xff] }
 0x1fb   : > { %v1605_v1 = vmul.f32 %v1593_v53, %v5678_v40  ;;  %v1606_v34 = vmul.f32 %v1594_v28, %v5679_v56  ;;  %v1635_v2 = vmul.f32 %v4622_v5, %v4667_v45  ;;  %v1636_v61 = vmul.f32 %v4625_v59, %v4669_v55 }
 0x1fc   : > { %v1599_v62 = vadd.f32 %v1597_v19, %v1553_v17  ;;  %v1600_v13 = vadd.f32 %v1598_v39, %v1554_v33  ;;  %v1609_v35 = vmul.f32 %v1591_v29, %v5678_v40  ;;  %v1610_v42 = vmul.f32 %v1592_v25, %v5679_v56  ;;  %v3358_v17 = vld [vmem:[#allocation3 + $0x68] sm:$0xff] }
 0x1fd   : > { %v1603_v51 = vadd.f32 %v1601_v0, %v1557_v63  ;;  %v1604_v43 = vadd.f32 %v1602_v20, %v1558_v49  ;;  %v1607_v38 = vadd.f32 %v1605_v1, %v1561_v52  ;;  %v1608_v50 = vadd.f32 %v1606_v34, %v1562_v18 }
 0x1fe   : > { %v1613_v7 = vmul.f32 %v1593_v53, %v5680_v60  ;;  %v1614_v9 = vmul.f32 %v1594_v28, %v5681_v26  ;;  %v1617_v11 = vmul.f32 %v1591_v29, %v5680_v60  ;;  %v1618_v45 = vmul.f32 %v1592_v25, %v5681_v26 }
 0x1ff   : > { %v1621_v55 = vmul.f32 %v3357_v10, %v1593_v53  ;;  %v1622_v33 = vmul.f32 %v3358_v17, %v1594_v28  ;;  %v1625_v19 = vmul.f32 %v3357_v10, %v1591_v29  ;;  %v1626_v39 = vmul.f32 %v3358_v17, %v1592_v25  ;;  %v5683_v53 = vld [vmem:[#allocation20_spill] sm:$0xff] }
 0x200   : > { %v1611_v40 = vadd.f32 %v1609_v35, %v1565_v46  ;;  %v1612_v56 = vadd.f32 %v1610_v42, %v1566_v41  ;;  %v1615_v63 = vadd.f32 %v1613_v7, %v1569_v48  ;;  %v1616_v49 = vadd.f32 %v1614_v9, %v1570_v6  ;;  %v3360_v29 = vld [vmem:[#allocation3 + $0x78] sm:$0xff] }
 0x201   : > { %v1619_v52 = vadd.f32 %v1617_v11, %v1573_v21  ;;  %v1620_v18 = vadd.f32 %v1618_v45, %v1574_v4  ;;  %v1623_v0 = vadd.f32 %v1621_v55, %v1577_v47  ;;  %v1624_v20 = vadd.f32 %v1622_v33, %v1578_v27 }
 0x202   : > { %v1627_v1 = vadd.f32 %v1625_v19, %v1581_v37  ;;  %v1628_v34 = vadd.f32 %v1626_v39, %v1582_v24  ;;  %v1633_v12 = vadd.f32 %v1631_v22, %v1599_v62  ;;  %v1634_v60 = vadd.f32 %v1632_v58, %v1600_v13  ;;  %v3359_v22 = vld [vmem:[#allocation3 + $0x70] sm:$0xff] }
 0x203   : > { %v1639_v26 = vmul.f32 %v4592_v31, %v5682_v36  ;;  %v1640_v28 = vmul.f32 %v4595_v16, %v5683_v53  ;;  %v1643_v46 = vmul.f32 %v4622_v5, %v5682_v36  ;;  %v1644_v41 = vmul.f32 %v4625_v59, %v5683_v53 }
 0x204   : > { %v1637_v48 = vadd.f32 %v1635_v2, %v1603_v51  ;;  %v1638_v6 = vadd.f32 %v1636_v61, %v1604_v43  ;;  %v1647_v45 = vmul.f32 %v4592_v31, %v5660_v3  ;;  %v1648_v55 = vmul.f32 %v4595_v16, %v5661_v23  ;;  %v4731_v51 = vld [vmem:[#allocation3 + $0x170] sm:$0xff]  ;;  %v4733_v43 = vld [vmem:[#allocation3 + $0x178] sm:$0xff] }
 0x205   : > { %v1641_v21 = vadd.f32 %v1639_v26, %v1607_v38  ;;  %v1642_v4 = vadd.f32 %v1640_v28, %v1608_v50  ;;  %v1651_v47 = vmul.f32 %v4622_v5, %v5660_v3  ;;  %v1652_v27 = vmul.f32 %v4625_v59, %v5661_v23 }
 0x206   : > { %v1645_v10 = vadd.f32 %v1643_v46, %v1611_v40  ;;  %v1646_v11 = vadd.f32 %v1644_v41, %v1612_v56  ;;  %v1649_v37 = vadd.f32 %v1647_v45, %v1615_v63  ;;  %v1650_v24 = vadd.f32 %v1648_v55, %v1616_v49 }
 0x207   : > { %v1655_v58 = vmul.f32 %v3359_v22, %v4592_v31  ;;  %v1656_v25 = vmul.f32 %v3360_v29, %v4595_v16  ;;  %v1659_v2 = vmul.f32 %v3359_v22, %v4622_v5  ;;  %v1660_v61 = vmul.f32 %v3360_v29, %v4625_v59 }
 0x208   : > { %v1663_v62 = vrot.slane %v4592_v31, 1  ;;  %v1664_v3 = vrot.slane %v4595_v16, 1  ;;  %v1665_v23 = vrot.slane %v4616_v14, 1  ;;  %v1666_v40 = vrot.slane %v4619_v32, 1 }
 0x209   : > { %v1653_v56 = vadd.f32 %v1651_v47, %v1619_v52  ;;  %v1654_v13 = vadd.f32 %v1652_v27, %v1620_v18  ;;  %v1657_v35 = vadd.f32 %v1655_v58, %v1623_v0  ;;  %v1658_v42 = vadd.f32 %v1656_v25, %v1624_v20  ;;  %v5684_v25 = vld [vmem:[#allocation31_spill] sm:$0xff] }
 0x20a   : > { %v1667_v38 = vrot.slane %v4622_v5, 1  ;;  %v1668_v50 = vrot.slane %v4625_v59, 1  ;;  %v1669_v7 = vrot.slane %v4628_v57, 1  ;;  %v1670_v9 = vrot.slane %v4631_v44, 1 }
 0x20b   : > { %v1661_v17 = vadd.f32 %v1659_v2, %v1627_v1  ;;  %v1662_v33 = vadd.f32 %v1660_v61, %v1628_v34  ;;  %v1673_v19 = vsel %vm917_vm3, %v1663_v62, %v1665_v23  ;;  %v1674_v39 = vsel %vm917_vm3, %v1664_v3, %v1666_v40  ;;  %v3361_v3 = vld [vmem:[#allocation3 + $0x80] sm:$0xff]  ;;  %v3362_v40 = vld [vmem:[#allocation3 + $0x88] sm:$0xff] }
 0x20c   : > { %v1671_v63 = vsel %vm917_vm3, %v1667_v38, %v1669_v7  ;;  %v1672_v49 = vsel %vm917_vm3, %v1668_v50, %v1670_v9  ;;  %v1677_v52 = vmul.f32 %v4731_v51, %v1673_v19  ;;  %v1678_v18 = vmul.f32 %v4733_v43, %v1674_v39 }
 0x20d   : > { %v1681_v0 = vmul.f32 %v4731_v51, %v1671_v63  ;;  %v1682_v20 = vmul.f32 %v4733_v43, %v1672_v49  ;;  %v1685_v1 = vmul.f32 %v1673_v19, %v4547_v8  ;;  %v1686_v34 = vmul.f32 %v1674_v39, %v4549_v30 }
 0x20e   : > { %v1689_v26 = vmul.f32 %v1671_v63, %v4547_v8  ;;  %v1690_v28 = vmul.f32 %v1672_v49, %v4549_v30  ;;  %v1709_v46 = vrot.slane %v4592_v31, 2  ;;  %v1710_v41 = vrot.slane %v4595_v16, 2 }
 0x20f   : > { %v1679_v45 = vadd.f32 %v1677_v52, %v1633_v12  ;;  %v1680_v55 = vadd.f32 %v1678_v18, %v1634_v60  ;;  %v1683_v47 = vadd.f32 %v1681_v0, %v1637_v48  ;;  %v1684_v27 = vadd.f32 %v1682_v20, %v1638_v6  ;;  %v4763_v52 = vld [vmem:[#allocation3 + $0x180] sm:$0xff] }
 0x210   : > { %v1687_v22 = vadd.f32 %v1685_v1, %v1641_v21  ;;  %v1688_v58 = vadd.f32 %v1686_v34, %v1642_v4  ;;  %v1693_v29 = vmul.f32 %v1673_v19, %v4355_v54  ;;  %v1694_v2 = vmul.f32 %v1674_v39, %v5684_v25 }
 0x211   : > { %v1697_v61 = vmul.f32 %v1671_v63, %v4355_v54  ;;  %v1698_v62 = vmul.f32 %v1672_v49, %v5684_v25  ;;  %v1701_v23 = vmul.f32 %v3361_v3, %v1673_v19  ;;  %v1702_v31 = vmul.f32 %v3362_v40, %v1674_v39  ;;  %v4765_v19 = vld [vmem:[#allocation3 + $0x188] sm:$0xff] }
 0x212   : > { %v1691_v38 = vadd.f32 %v1689_v26, %v1645_v10  ;;  %v1692_v16 = vadd.f32 %v1690_v28, %v1646_v11  ;;  %v1705_v12 = vmul.f32 %v3361_v3, %v1671_v63  ;;  %v1706_v60 = vmul.f32 %v3362_v40, %v1672_v49  ;;  %v5685_v39 = vld [vmem:[#allocation21_spill] sm:$0xff]  ;;  %v5686_v49 = vld [vmem:[#allocation22_spill] sm:$0xff] }
 0x213   : > { %v1695_v48 = vadd.f32 %v1693_v29, %v1649_v37  ;;  %v1696_v6 = vadd.f32 %v1694_v2, %v1650_v24  ;;  %v1699_v21 = vadd.f32 %v1697_v61, %v1653_v56  ;;  %v1700_v4 = vadd.f32 %v1698_v62, %v1654_v13  ;;  %v5691_v2 = vld [vmem:[#allocation32_spill] sm:$0xff]  ;;  %v5692_v62 = vld [vmem:[#allocation33_spill] sm:$0xff]  ;;  %v3363_v40 = vld [vmem:[#allocation3 + $0x90] sm:$0xff] }
 0x214   : > { %v1703_v50 = vadd.f32 %v1701_v23, %v1657_v35  ;;  %v1704_v7 = vadd.f32 %v1702_v31, %v1658_v42  ;;  %v1711_v54 = vrot.slane %v4616_v14, 2  ;;  %v1712_v9 = vrot.slane %v4619_v32, 2  ;;  %v4776_v32 = vld [vmem:[%s3943_s24 + $0x140] sm:$0xff]  ;;  %v4779_v42 = vld [vmem:[%s3943_s24 + $0x148] sm:$0xff]  ;;  %v3364_v31 = vld [vmem:[#allocation3 + $0x98] sm:$0xff] }
 0x215   : > { %v1713_v10 = vrot.slane %v4622_v5, 2  ;;  %v1714_v11 = vrot.slane %v4625_v59, 2  ;;  %v1715_v37 = vrot.slane %v4628_v57, 2  ;;  %v1716_v24 = vrot.slane %v4631_v44, 2 }
 0x216   : > { %v1707_v56 = vadd.f32 %v1705_v12, %v1661_v17  ;;  %v1708_v13 = vadd.f32 %v1706_v60, %v1662_v33  ;;  %v1719_v35 = vsel %vm940_vm4, %v1709_v46, %v1711_v54  ;;  %v1720_v14 = vsel %vm940_vm4, %v1710_v41, %v1712_v9  ;;  %v4808_v12 = vld [vmem:[%s3943_s24 + $0x150] sm:$0xff] }
 0x217   : > { %v1717_v5 = vsel %vm940_vm4, %v1713_v10, %v1715_v37  ;;  %v1718_v59 = vsel %vm940_vm4, %v1714_v11, %v1716_v24  ;;  %v1723_v57 = vmul.f32 %v4763_v52, %v1719_v35  ;;  %v1724_v44 = vmul.f32 %v4765_v19, %v1720_v14  ;;  %v4817_v10 = vld [vmem:[%s3943_s24 + $0x160] sm:$0xff]  ;;  %v4820_v11 = vld [vmem:[%s3943_s24 + $0x168] sm:$0xff]  ;;  %v4823_v37 = vld [vmem:[%s3943_s24 + $0x178] sm:$0xff] }
 0x218   : > { %v1727_v17 = vmul.f32 %v4763_v52, %v1717_v5  ;;  %v1728_v33 = vmul.f32 %v4765_v19, %v1718_v59  ;;  %v1731_v63 = vmul.f32 %v1719_v35, %v5685_v39  ;;  %v1732_v18 = vmul.f32 %v1720_v14, %v5686_v49 }
 0x219   : > { %v1735_v0 = vmul.f32 %v1717_v5, %v5685_v39  ;;  %v1736_v20 = vmul.f32 %v1718_v59, %v5686_v49  ;;  %v1767_v1 = vrot.slane %v4776_v32, 6  ;;  %v1768_v34 = vrot.slane %v4779_v42, 6 }
 0x21a   : > { %v4795_v26 = vadd.f32 %v1723_v57, %v1679_v45  ;;  %v4797_v28 = vadd.f32 %v1724_v44, %v1680_v55  ;;  %v4799_v46 = vadd.f32 %v1727_v17, %v1683_v47  ;;  %v4801_v41 = vadd.f32 %v1728_v33, %v1684_v27  ;;  %v4811_v27 = vld [vmem:[%s3943_s24 + $0x158] sm:$0xff] }
 0x21b   : > { %v1733_v29 = vadd.f32 %v1731_v63, %v1687_v22  ;;  %v1734_v25 = vadd.f32 %v1732_v18, %v1688_v58  ;;  %v1739_v61 = vmul.f32 %v1719_v35, %v5691_v2  ;;  %v1740_v3 = vmul.f32 %v1720_v14, %v5692_v62  ;;  %v4814_v22 = vld [vmem:[%s3943_s24 + $0x170] sm:$0xff] }
 0x21c   : > { %5687 = vst [vmem:[#allocation29_spill] sm:$0xff] %v4795_v26  ;;  %5688 = vst [vmem:[#allocation30_spill] sm:$0xff] %v4797_v28  ;;  %v1743_v23 = vmul.f32 %v1717_v5, %v5691_v2  ;;  %v1744_v45 = vmul.f32 %v1718_v59, %v5692_v62  ;;  %v1747_v55 = vmul.f32 %v3363_v40, %v1719_v35  ;;  %v1769_v33 = vrot.slane %v4808_v12, 6 }
 0x21d   : > { %5689 = vst [vmem:[#allocation19_spill] sm:$0xff] %v4799_v46  ;;  %5690 = vst [vmem:[#allocation20_spill] sm:$0xff] %v4801_v41  ;;  %v1748_v47 = vmul.f32 %v3364_v31, %v1720_v14  ;;  %v1737_v58 = vadd.f32 %v1735_v0, %v1691_v38  ;;  %v1738_v60 = vadd.f32 %v1736_v20, %v1692_v16  ;;  %v1770_v63 = vrot.slane %v4811_v27, 6  ;;  %v5693_v20 = vld [vmem:[#allocation27_spill] sm:$0xff] }
 0x21e   : > { %v1751_v54 = vmul.f32 %v3363_v40, %v1717_v5  ;;  %v1752_v9 = vmul.f32 %v3364_v31, %v1718_v59  ;;  %v1741_v24 = vadd.f32 %v1739_v61, %v1695_v48  ;;  %v1742_v35 = vadd.f32 %v1740_v3, %v1696_v6  ;;  %v5695_v3 = vld [vmem:[#allocation17_spill] sm:$0xff] }
 0x21f   : > { %v1745_v57 = vadd.f32 %v1743_v23, %v1699_v21  ;;  %v1746_v14 = vadd.f32 %v1744_v45, %v1700_v4  ;;  %v1749_v44 = vadd.f32 %v1747_v55, %v1703_v50  ;;  %v1750_v17 = vadd.f32 %v1748_v47, %v1704_v7  ;;  %v5696_v45 = vld [vmem:[#allocation18_spill] sm:$0xff] }
 0x220   : > { %v1771_v38 = vrot.slane %v4817_v10, 6  ;;  %v1772_v16 = vrot.slane %v4820_v11, 6  ;;  %v1773_v5 = vrot.slane %v4814_v22, 6  ;;  %v1774_v59 = vrot.slane %v4823_v37, 6 }
 0x221   : > { %v1753_v18 = vadd.f32 %v1751_v54, %v1707_v56  ;;  %v1754_v0 = vadd.f32 %v1752_v9, %v1708_v13  ;;  %v1803_v48 = vrot.slane %v4776_v32, 7  ;;  %v1804_v6 = vrot.slane %v4779_v42, 7  ;;  %v5694_v56 = vld [vmem:[#allocation28_spill] sm:$0xff] }
 0x222   : > { %v1775_v21 = vsel %vm861_vm1, %v1769_v33, %v1771_v38  ;;  %v1776_v4 = vsel %vm861_vm1, %v1770_v63, %v1772_v16  ;;  %v1777_v50 = vsel %vm861_vm1, %v1773_v5, %v1767_v1  ;;  %v1778_v7 = vsel %vm861_vm1, %v1774_v59, %v1768_v34  ;;  %v3365_v16 = vld [vmem:[#allocation3 + $0xa0] sm:$0xff]  ;;  %v3366_v59 = vld [vmem:[#allocation3 + $0xa8] sm:$0xff] }
 0x223   : > { %v1779_v2 = vmul.f32 %v1777_v50, %v5693_v20  ;;  %v1780_v13 = vmul.f32 %v1778_v7, %v5694_v56  ;;  %v1783_v61 = vmul.f32 %v1775_v21, %v5693_v20  ;;  %v1784_v62 = vmul.f32 %v1776_v4, %v5694_v56 }
 0x224   : > { %v1787_v23 = vmul.f32 %v1777_v50, %v5695_v3  ;;  %v1788_v40 = vmul.f32 %v1778_v7, %v5696_v45  ;;  %v1805_v55 = vrot.slane %v4808_v12, 7  ;;  %v1806_v31 = vrot.slane %v4811_v27, 7 }
 0x225   : > { %v1781_v1 = vadd.f32 %v1779_v2, %v1733_v29  ;;  %v1782_v47 = vadd.f32 %v1780_v13, %v1734_v25  ;;  %v1791_v34 = vmul.f32 %v1775_v21, %v5695_v3  ;;  %v1792_v54 = vmul.f32 %v1776_v4, %v5696_v45  ;;  %v5700_v3 = vld [vmem:[#allocation35_spill] sm:$0xff] }
 0x226   : > { %v1785_v9 = vadd.f32 %v1783_v61, %v1737_v58  ;;  %v1786_v33 = vadd.f32 %v1784_v62, %v1738_v60  ;;  %v1789_v63 = vadd.f32 %v1787_v23, %v1741_v24  ;;  %v1790_v38 = vadd.f32 %v1788_v40, %v1742_v35  ;;  %v5698_v61 = vld [vmem:[#allocation26_spill] sm:$0xff] }
 0x227   : > { %v1795_v5 = vmul.f32 %v3365_v16, %v1777_v50  ;;  %v1796_v41 = vmul.f32 %v3366_v59, %v1778_v7  ;;  %v1799_v46 = vmul.f32 %v3365_v16, %v1775_v21  ;;  %v1800_v28 = vmul.f32 %v3366_v59, %v1776_v4  ;;  %v5697_v50 = vld [vmem:[#allocation25_spill] sm:$0xff] }
 0x228   : > { %v1807_v26 = vrot.slane %v4817_v10, 7  ;;  %v1808_v56 = vrot.slane %v4820_v11, 7  ;;  %v1809_v29 = vrot.slane %v4814_v22, 7  ;;  %v1810_v25 = vrot.slane %v4823_v37, 7 }
 0x229   : > { %v1793_v2 = vadd.f32 %v1791_v34, %v1745_v57  ;;  %v1794_v13 = vadd.f32 %v1792_v54, %v1746_v14  ;;  %v1797_v58 = vadd.f32 %v1795_v5, %v1749_v44  ;;  %v1798_v60 = vadd.f32 %v1796_v41, %v1750_v17  ;;  %v3367_v54 = vld [vmem:[#allocation3 + $0xb0] sm:$0xff]  ;;  %v3368_v5 = vld [vmem:[#allocation3 + $0xb8] sm:$0xff] }
 0x22a   : > { %v1811_v24 = vsel %vm884_vm2, %v1805_v55, %v1807_v26  ;;  %v1812_v35 = vsel %vm884_vm2, %v1806_v31, %v1808_v56  ;;  %v1813_v21 = vsel %vm884_vm2, %v1809_v29, %v1803_v48  ;;  %v1814_v4 = vsel %vm884_vm2, %v1810_v25, %v1804_v6  ;;  %v5699_v26 = vld [vmem:[#allocation34_spill] sm:$0xff]  ;;  %v5702_v29 = vld [vmem:[#allocation24_spill] sm:$0xff] }
 0x22b   : > { %v1815_v7 = vmul.f32 %v1813_v21, %v5697_v50  ;;  %v1816_v62 = vmul.f32 %v1814_v4, %v5698_v61  ;;  %v1819_v57 = vmul.f32 %v1811_v24, %v5697_v50  ;;  %v1820_v41 = vmul.f32 %v1812_v35, %v5698_v61 }
 0x22c   : > { %v1801_v14 = vadd.f32 %v1799_v46, %v1753_v18  ;;  %v1802_v44 = vadd.f32 %v1800_v28, %v1754_v0  ;;  %v1823_v17 = vmul.f32 %v1813_v21, %v5699_v26  ;;  %v1824_v56 = vmul.f32 %v1814_v4, %v5700_v3  ;;  %v5701_v18 = vld [vmem:[#allocation23_spill] sm:$0xff] }
 0x22d   : > { %v1817_v23 = vadd.f32 %v1815_v7, %v1781_v1  ;;  %v1818_v45 = vadd.f32 %v1816_v62, %v1782_v47  ;;  %v1827_v48 = vmul.f32 %v1811_v24, %v5699_v26  ;;  %v1828_v6 = vmul.f32 %v1812_v35, %v5700_v3 }
 0x22e   : > { %v1821_v40 = vadd.f32 %v1819_v57, %v1785_v9  ;;  %v1822_v55 = vadd.f32 %v1820_v41, %v1786_v33  ;;  %v1825_v31 = vadd.f32 %v1823_v17, %v1789_v63  ;;  %v1826_v34 = vadd.f32 %v1824_v56, %v1790_v38 }
 0x22f   : > { %v1831_v16 = vmul.f32 %v3367_v54, %v1813_v21  ;;  %v1832_v59 = vmul.f32 %v3368_v5, %v1814_v4  ;;  %v1835_v46 = vmul.f32 %v3367_v54, %v1811_v24  ;;  %v1836_v28 = vmul.f32 %v3368_v5, %v1812_v35 }
 0x230   : > { %v1839_v0 = vmul.f32 %v4776_v32, %v5701_v18  ;;  %v1840_v1 = vmul.f32 %v4779_v42, %v5702_v29  ;;  %v1843_v47 = vmul.f32 %v4817_v10, %v5701_v18  ;;  %v1844_v9 = vmul.f32 %v4820_v11, %v5702_v29 }
 0x231   : > { %v1829_v33 = vadd.f32 %v1827_v48, %v1793_v2  ;;  %v1830_v63 = vadd.f32 %v1828_v6, %v1794_v13  ;;  %v1833_v38 = vadd.f32 %v1831_v16, %v1797_v58  ;;  %v1834_v25 = vadd.f32 %v1832_v59, %v1798_v60  ;;  %v3369_v58 = vld [vmem:[#allocation3 + $0xc0] sm:$0xff] }
 0x232   : > { %v1837_v21 = vadd.f32 %v1835_v46, %v1801_v14  ;;  %v1838_v4 = vadd.f32 %v1836_v28, %v1802_v44  ;;  %v1841_v24 = vadd.f32 %v1839_v0, %v1817_v23  ;;  %v1842_v35 = vadd.f32 %v1840_v1, %v1818_v45  ;;  %v3370_v14 = vld [vmem:[#allocation3 + $0xc8] sm:$0xff] }
 0x233   : > { %v1847_v7 = vmul.f32 %v4776_v32, %v5682_v36  ;;  %v1848_v62 = vmul.f32 %v4779_v42, %v5683_v53  ;;  %v1851_v57 = vmul.f32 %v4817_v10, %v5682_v36  ;;  %v1852_v41 = vmul.f32 %v4820_v11, %v5683_v53 }
 0x234   : > { %v1845_v2 = vadd.f32 %v1843_v47, %v1821_v40  ;;  %v1846_v13 = vadd.f32 %v1844_v9, %v1822_v55  ;;  %v1855_v60 = vmul.f32 %v3369_v58, %v4776_v32  ;;  %v1856_v44 = vmul.f32 %v3370_v14, %v4779_v42 }
 0x235   : > { %v1849_v26 = vadd.f32 %v1847_v7, %v1825_v31  ;;  %v1850_v17 = vadd.f32 %v1848_v62, %v1826_v34  ;;  %v1859_v3 = vmul.f32 %v3369_v58, %v4817_v10  ;;  %v1860_v56 = vmul.f32 %v3370_v14, %v4820_v11 }
 0x236   : > { %v1853_v23 = vadd.f32 %v1851_v57, %v1829_v33  ;;  %v1854_v45 = vadd.f32 %v1852_v41, %v1830_v63  ;;  %v1857_v36 = vadd.f32 %v1855_v60, %v1833_v38  ;;  %v1858_v48 = vadd.f32 %v1856_v44, %v1834_v25 }
 0x237   : > { %v1863_v53 = vrot.slane %v4776_v32, 1  ;;  %v1864_v6 = vrot.slane %v4779_v42, 1  ;;  %v1865_v40 = vrot.slane %v4808_v12, 1  ;;  %v1866_v55 = vrot.slane %v4811_v27, 1 }
 0x238   : > { %v1867_v54 = vrot.slane %v4817_v10, 1  ;;  %v1868_v31 = vrot.slane %v4820_v11, 1  ;;  %v1869_v34 = vrot.slane %v4814_v22, 1  ;;  %v1870_v16 = vrot.slane %v4823_v37, 1 }
 0x239   : > { %v1861_v5 = vadd.f32 %v1859_v3, %v1837_v21  ;;  %v1862_v59 = vadd.f32 %v1860_v56, %v1838_v4  ;;  %v1873_v46 = vsel %vm917_vm3, %v1863_v53, %v1865_v40  ;;  %v1874_v28 = vsel %vm917_vm3, %v1864_v6, %v1866_v55  ;;  %v3371_v3 = vld [vmem:[#allocation3 + $0xd0] sm:$0xff]  ;;  %v3372_v53 = vld [vmem:[#allocation3 + $0xd8] sm:$0xff] }
 0x23a   : > { %v1871_v0 = vsel %vm917_vm3, %v1867_v54, %v1869_v34  ;;  %v1872_v1 = vsel %vm917_vm3, %v1868_v31, %v1870_v16  ;;  %v1875_v47 = vmul.f32 %v1873_v46, %v4731_v51  ;;  %v1876_v9 = vmul.f32 %v1874_v28, %v4733_v43 }
 0x23b   : > { %v1879_v33 = vmul.f32 %v1871_v0, %v4731_v51  ;;  %v1880_v63 = vmul.f32 %v1872_v1, %v4733_v43  ;;  %v1883_v38 = vmul.f32 %v1873_v46, %v4547_v8  ;;  %v1884_v25 = vmul.f32 %v1874_v28, %v4549_v30 }
 0x23c   : > { %v1887_v21 = vmul.f32 %v1871_v0, %v4547_v8  ;;  %v1888_v4 = vmul.f32 %v1872_v1, %v4549_v30  ;;  %v1899_v7 = vrot.slane %v4776_v32, 2  ;;  %v1900_v62 = vrot.slane %v4779_v42, 2 }
 0x23d   : > { %v1877_v57 = vadd.f32 %v1875_v47, %v1841_v24  ;;  %v1878_v41 = vadd.f32 %v1876_v9, %v1842_v35  ;;  %v1881_v58 = vadd.f32 %v1879_v33, %v1845_v2  ;;  %v1882_v60 = vadd.f32 %v1880_v63, %v1846_v13 }
 0x23e   : > { %v1885_v14 = vadd.f32 %v1883_v38, %v1849_v26  ;;  %v1886_v44 = vadd.f32 %v1884_v25, %v1850_v17  ;;  %v1891_v56 = vmul.f32 %v3371_v3, %v1873_v46  ;;  %v1892_v6 = vmul.f32 %v3372_v53, %v1874_v28  ;;  %v4946_v46 = vld [vmem:[%s3943_s24 + $0x190] sm:$0xff]  ;;  %v4949_v28 = vld [vmem:[%s3943_s24 + $0x198] sm:$0xff] }
 0x23f   : > { %v1895_v40 = vmul.f32 %v3371_v3, %v1871_v0  ;;  %v1896_v55 = vmul.f32 %v3372_v53, %v1872_v1  ;;  %v1901_v8 = vrot.slane %v4808_v12, 2  ;;  %v1902_v30 = vrot.slane %v4811_v27, 2  ;;  %v4968_v3 = vld [vmem:[%s3943_s24 + $0x1b0] sm:$0xff] }
 0x240   : > { %v1889_v32 = vadd.f32 %v1887_v21, %v1853_v23  ;;  %v1890_v42 = vadd.f32 %v1888_v4, %v1854_v45  ;;  %v1903_v24 = vrot.slane %v4817_v10, 2  ;;  %v1904_v35 = vrot.slane %v4820_v11, 2  ;;  %v4928_v23 = vld [vmem:[%s3943_s24 + $0x180] sm:$0xff]  ;;  %v4931_v10 = vld [vmem:[%s3943_s24 + $0x188] sm:$0xff] }
 0x241   : > { %v1893_v2 = vadd.f32 %v1891_v56, %v1857_v36  ;;  %v1894_v13 = vadd.f32 %v1892_v6, %v1858_v48  ;;  %v1905_v26 = vrot.slane %v4814_v22, 2  ;;  %v1906_v17 = vrot.slane %v4823_v37, 2  ;;  %v3373_v21 = vld [vmem:[#allocation3 + $0xe0] sm:$0xff] }
 0x242   : > { %v1897_v54 = vadd.f32 %v1895_v40, %v1861_v5  ;;  %v1898_v31 = vadd.f32 %v1896_v55, %v1862_v59  ;;  %v1909_v12 = vsel %vm940_vm4, %v1899_v7, %v1901_v8  ;;  %v1910_v27 = vsel %vm940_vm4, %v1900_v62, %v1902_v30  ;;  %v3374_v7 = vld [vmem:[#allocation3 + $0xe8] sm:$0xff] }
 0x243   : > { %v1907_v11 = vsel %vm940_vm4, %v1903_v24, %v1905_v26  ;;  %v1908_v22 = vsel %vm940_vm4, %v1904_v35, %v1906_v17  ;;  %v1911_v37 = vmul.f32 %v1909_v12, %v4763_v52  ;;  %v1912_v45 = vmul.f32 %v1910_v27, %v4765_v19 }
 0x244   : > { %v1915_v36 = vmul.f32 %v1907_v11, %v4763_v52  ;;  %v1916_v48 = vmul.f32 %v1908_v22, %v4765_v19  ;;  %v1919_v34 = vmul.f32 %v1909_v12, %v5685_v39  ;;  %v1920_v16 = vmul.f32 %v1910_v27, %v5686_v49 }
 0x245   : > { %v1923_v5 = vmul.f32 %v1907_v11, %v5685_v39  ;;  %v1924_v59 = vmul.f32 %v1908_v22, %v5686_v49  ;;  %v1947_v0 = vrot.slane %v4928_v23, 6  ;;  %v1948_v1 = vrot.slane %v4931_v10, 6  ;;  %v4962_v39 = vld [vmem:[%s3943_s24 + $0x1a0] sm:$0xff]  ;;  %v4965_v49 = vld [vmem:[%s3943_s24 + $0x1a8] sm:$0xff] }
 0x246   : > { %v4953_v47 = vadd.f32 %v1911_v37, %v1877_v57  ;;  %v4955_v9 = vadd.f32 %v1912_v45, %v1878_v41  ;;  %v4957_v33 = vadd.f32 %v1915_v36, %v1881_v58  ;;  %v4959_v63 = vadd.f32 %v1916_v48, %v1882_v60  ;;  %v4971_v57 = vld [vmem:[%s3943_s24 + $0x1b8] sm:$0xff] }
 0x247   : > { %v1921_v38 = vadd.f32 %v1919_v34, %v1885_v14  ;;  %v1922_v25 = vadd.f32 %v1920_v16, %v1886_v44  ;;  %v1927_v4 = vmul.f32 %v3373_v21, %v1909_v12  ;;  %v1928_v62 = vmul.f32 %v3374_v7, %v1910_v27 }
 0x248   : > { %v1931_v41 = vmul.f32 %v3373_v21, %v1907_v11  ;;  %v1932_v56 = vmul.f32 %v3374_v7, %v1908_v22  ;;  %v1949_v58 = vrot.slane %v4946_v46, 6  ;;  %v1950_v60 = vrot.slane %v4949_v28, 6  ;;  %v3376_v22 = vld [vmem:[#allocation3 + $0xf8] sm:$0xff] }
 0x249   : > { %v1925_v53 = vadd.f32 %v1923_v5, %v1889_v32  ;;  %v1926_v6 = vadd.f32 %v1924_v59, %v1890_v42  ;;  %v1951_v40 = vrot.slane %v4962_v39, 6  ;;  %v1952_v14 = vrot.slane %v4965_v49, 6 }
 0x24a   : > { %v1929_v44 = vadd.f32 %v1927_v4, %v1893_v2  ;;  %v1930_v55 = vadd.f32 %v1928_v62, %v1894_v13  ;;  %v1953_v8 = vrot.slane %v4968_v3, 6  ;;  %v1954_v30 = vrot.slane %v4971_v57, 6  ;;  %v5703_v13 = vld [vmem:[#allocation28_spill] sm:$0xff] }
 0x24b   : > { %v1933_v24 = vadd.f32 %v1931_v41, %v1897_v54  ;;  %v1934_v35 = vadd.f32 %v1932_v56, %v1898_v31  ;;  %v1955_v26 = vsel %vm861_vm1, %v1949_v58, %v1951_v40  ;;  %v1956_v17 = vsel %vm861_vm1, %v1950_v60, %v1952_v14  ;;  %v3375_v31 = vld [vmem:[#allocation3 + $0xf0] sm:$0xff] }
 0x24c   : > { %v1957_v32 = vsel %vm861_vm1, %v1953_v8, %v1947_v0  ;;  %v1958_v42 = vsel %vm861_vm1, %v1954_v30, %v1948_v1  ;;  %v1963_v2 = vmul.f32 %v1955_v26, %v5693_v20  ;;  %v1964_v12 = vmul.f32 %v1956_v17, %v5703_v13 }
 0x24d   : > { %v1959_v27 = vmul.f32 %v1957_v32, %v5693_v20  ;;  %v1960_v54 = vmul.f32 %v1958_v42, %v5703_v13  ;;  %v1967_v11 = vmul.f32 %v3375_v31, %v1957_v32  ;;  %v1968_v37 = vmul.f32 %v3376_v22, %v1958_v42 }
 0x24e   : > { %v1971_v45 = vmul.f32 %v3375_v31, %v1955_v26  ;;  %v1972_v36 = vmul.f32 %v3376_v22, %v1956_v17  ;;  %v1975_v48 = vrot.slane %v4928_v23, 7  ;;  %v1976_v34 = vrot.slane %v4931_v10, 7  ;;  %v3378_v26 = vld [vmem:[#allocation3 + $0x108] sm:$0xff] }
 0x24f   : > { %v1961_v16 = vadd.f32 %v1959_v27, %v1921_v38  ;;  %v1962_v5 = vadd.f32 %v1960_v54, %v1922_v25  ;;  %v1965_v59 = vadd.f32 %v1963_v2, %v1925_v53  ;;  %v1966_v0 = vadd.f32 %v1964_v12, %v1926_v6 }
 0x250   : > { %v1969_v1 = vadd.f32 %v1967_v11, %v1929_v44  ;;  %v1970_v21 = vadd.f32 %v1968_v37, %v1930_v55  ;;  %v1977_v20 = vrot.slane %v4946_v46, 7  ;;  %v1978_v4 = vrot.slane %v4949_v28, 7 }
 0x251   : > { %v1979_v7 = vrot.slane %v4962_v39, 7  ;;  %v1980_v62 = vrot.slane %v4965_v49, 7  ;;  %v1981_v41 = vrot.slane %v4968_v3, 7  ;;  %v1982_v56 = vrot.slane %v4971_v57, 7 }
 0x252   : > { %v1973_v58 = vadd.f32 %v1971_v45, %v1933_v24  ;;  %v1974_v60 = vadd.f32 %v1972_v36, %v1934_v35  ;;  %v2003_v38 = vmul.f32 %v4928_v23, %v5701_v18  ;;  %v2004_v25 = vmul.f32 %v4931_v10, %v5702_v29  ;;  %v3377_v24 = vld [vmem:[#allocation3 + $0x100] sm:$0xff]  ;;  %v3379_v36 = vld [vmem:[#allocation3 + $0x110] sm:$0xff] }
 0x253   : > { %v1983_v53 = vsel %vm884_vm2, %v1977_v20, %v1979_v7  ;;  %v1984_v6 = vsel %vm884_vm2, %v1978_v4, %v1980_v62  ;;  %v1985_v40 = vsel %vm884_vm2, %v1981_v41, %v1975_v48  ;;  %v1986_v14 = vsel %vm884_vm2, %v1982_v56, %v1976_v34  ;;  %v3380_v34 = vld [vmem:[#allocation3 + $0x118] sm:$0xff] }
 0x254   : > { %v1987_v44 = vmul.f32 %v1985_v40, %v5697_v50  ;;  %v1988_v55 = vmul.f32 %v1986_v14, %v5698_v61  ;;  %v1991_v8 = vmul.f32 %v1983_v53, %v5697_v50  ;;  %v1992_v30 = vmul.f32 %v1984_v6, %v5698_v61 }
 0x255   : > { %v1995_v35 = vmul.f32 %v3377_v24, %v1985_v40  ;;  %v1996_v17 = vmul.f32 %v3378_v26, %v1986_v14  ;;  %v1999_v32 = vmul.f32 %v3377_v24, %v1983_v53  ;;  %v2000_v42 = vmul.f32 %v3378_v26, %v1984_v6 }
 0x256   : > { %v1989_v2 = vadd.f32 %v1987_v44, %v1961_v16  ;;  %v1990_v13 = vadd.f32 %v1988_v55, %v1962_v5  ;;  %v2007_v12 = vmul.f32 %v4962_v39, %v5701_v18  ;;  %v2008_v27 = vmul.f32 %v4965_v49, %v5702_v29 }
 0x257   : > { %v1993_v54 = vadd.f32 %v1991_v8, %v1965_v59  ;;  %v1994_v31 = vadd.f32 %v1992_v30, %v1966_v0  ;;  %v1997_v11 = vadd.f32 %v1995_v35, %v1969_v1  ;;  %v1998_v50 = vadd.f32 %v1996_v17, %v1970_v21  ;;  %v3381_v30 = vld [vmem:[#allocation3 + $0x120] sm:$0xff]  ;;  %v3382_v35 = vld [vmem:[#allocation3 + $0x128] sm:$0xff] }
 0x258   : > { %v2001_v22 = vadd.f32 %v1999_v32, %v1973_v58  ;;  %v2002_v61 = vadd.f32 %v2000_v42, %v1974_v60  ;;  %v2005_v37 = vadd.f32 %v2003_v38, %v1989_v2  ;;  %v2006_v45 = vadd.f32 %v2004_v25, %v1990_v13 }
 0x259   : > { %v2011_v48 = vmul.f32 %v3379_v36, %v4928_v23  ;;  %v2012_v16 = vmul.f32 %v3380_v34, %v4931_v10  ;;  %v2015_v5 = vmul.f32 %v3379_v36, %v4962_v39  ;;  %v2016_v18 = vmul.f32 %v3380_v34, %v4965_v49 }
 0x25a   : > { %v2019_v29 = vrot.slane %v4928_v23, 1  ;;  %v2020_v59 = vrot.slane %v4931_v10, 1  ;;  %v2021_v0 = vrot.slane %v4946_v46, 1  ;;  %v2022_v1 = vrot.slane %v4949_v28, 1 }
 0x25b   : > { %v2009_v21 = vadd.f32 %v2007_v12, %v1993_v54  ;;  %v2010_v20 = vadd.f32 %v2008_v27, %v1994_v31  ;;  %v2013_v4 = vadd.f32 %v2011_v48, %v1997_v11  ;;  %v2014_v7 = vadd.f32 %v2012_v16, %v1998_v50  ;;  %v3383_v16 = vld [vmem:[#allocation3 + $0x130] sm:$0xff] }
 0x25c   : > { %v2023_v62 = vrot.slane %v4962_v39, 1  ;;  %v2024_v41 = vrot.slane %v4965_v49, 1  ;;  %v2025_v56 = vrot.slane %v4968_v3, 1  ;;  %v2026_v58 = vrot.slane %v4971_v57, 1 }
 0x25d   : > { %v2017_v60 = vadd.f32 %v2015_v5, %v2001_v22  ;;  %v2018_v38 = vadd.f32 %v2016_v18, %v2002_v61  ;;  %v2029_v25 = vsel %vm917_vm3, %v2019_v29, %v2021_v0  ;;  %v2030_v53 = vsel %vm917_vm3, %v2020_v59, %v2022_v1  ;;  %v3384_v18 = vld [vmem:[#allocation3 + $0x138] sm:$0xff]  ;;  %v5072_v59 = vld [vmem:[%s3943_s24 + $0x1d0] sm:$0xff] }
 0x25e   : > { %v2027_v6 = vsel %vm917_vm3, %v2023_v62, %v2025_v56  ;;  %v2028_v40 = vsel %vm917_vm3, %v2024_v41, %v2026_v58  ;;  %v2031_v14 = vmul.f32 %v2029_v25, %v4731_v51  ;;  %v2032_v44 = vmul.f32 %v2030_v53, %v4733_v43  ;;  %v5075_v0 = vld [vmem:[%s3943_s24 + $0x1d8] sm:$0xff]  ;;  %v5078_v1 = vld [vmem:[%s3943_s24 + $0x1f0] sm:$0xff]  ;;  %v5089_v56 = vld [vmem:[%s3943_s24 + $0x1e0] sm:$0xff] }
 0x25f   : > { %v2035_v55 = vmul.f32 %v2027_v6, %v4731_v51  ;;  %v2036_v8 = vmul.f32 %v2028_v40, %v4733_v43  ;;  %v2039_v24 = vmul.f32 %v3381_v30, %v2029_v25  ;;  %v2040_v26 = vmul.f32 %v3382_v35, %v2030_v53  ;;  %v5092_v58 = vld [vmem:[%s3943_s24 + $0x1e8] sm:$0xff] }
 0x260   : > { %v2043_v17 = vmul.f32 %v3381_v30, %v2027_v6  ;;  %v2044_v32 = vmul.f32 %v3382_v35, %v2028_v40  ;;  %v2047_v42 = vrot.slane %v4928_v23, 2  ;;  %v2048_v2 = vrot.slane %v4931_v10, 2 }
 0x261   : > { %v2033_v13 = vadd.f32 %v2031_v14, %v2005_v37  ;;  %v2034_v12 = vadd.f32 %v2032_v44, %v2006_v45  ;;  %v5045_v27 = vadd.f32 %v2035_v55, %v2009_v21  ;;  %v5047_v54 = vadd.f32 %v2036_v8, %v2010_v20  ;;  %v5056_v37 = vld [vmem:[%s3943_s24 + $0x1c0] sm:$0xff]  ;;  %v5059_v45 = vld [vmem:[%s3943_s24 + $0x1c8] sm:$0xff] }
 0x262   : > { %v2041_v31 = vadd.f32 %v2039_v24, %v2013_v4  ;;  %v2042_v11 = vadd.f32 %v2040_v26, %v2014_v7  ;;  %v2049_v50 = vrot.slane %v4946_v46, 2  ;;  %v2050_v22 = vrot.slane %v4949_v28, 2 }
 0x263   : > { %v2051_v61 = vrot.slane %v4962_v39, 2  ;;  %v2052_v36 = vrot.slane %v4965_v49, 2  ;;  %v2053_v23 = vrot.slane %v4968_v3, 2  ;;  %v2054_v10 = vrot.slane %v4971_v57, 2 }
 0x264   : > { %v2045_v48 = vadd.f32 %v2043_v17, %v2017_v60  ;;  %v2046_v34 = vadd.f32 %v2044_v32, %v2018_v38  ;;  %v2057_v46 = vsel %vm940_vm4, %v2047_v42, %v2049_v50  ;;  %v2058_v28 = vsel %vm940_vm4, %v2048_v2, %v2050_v22  ;;  %v5095_v60 = vld [vmem:[%s3943_s24 + $0x1f8] sm:$0xff]  ;;  %v3386_v22 = vld [vmem:[#allocation3 + $0x148] sm:$0xff] }
 0x265   : > { %v2055_v39 = vsel %vm940_vm4, %v2051_v61, %v2053_v23  ;;  %v2056_v49 = vsel %vm940_vm4, %v2052_v36, %v2054_v10  ;;  %v2059_v3 = vmul.f32 %v2057_v46, %v4763_v52  ;;  %v2060_v57 = vmul.f32 %v2058_v28, %v4765_v19 }
 0x266   : > { %v2067_v5 = vmul.f32 %v3383_v16, %v2057_v46  ;;  %v2068_v29 = vmul.f32 %v3384_v18, %v2058_v28  ;;  %v2087_v21 = vrot.slane %v5056_v37, 6  ;;  %v2088_v20 = vrot.slane %v5059_v45, 6 }
 0x267   : > { %v5083_v4 = vmul.f32 %v2055_v39, %v4763_v52  ;;  %v5086_v7 = vmul.f32 %v2056_v49, %v4765_v19  ;;  %v2071_v62 = vmul.f32 %v3383_v16, %v2055_v39  ;;  %v2072_v41 = vmul.f32 %v3384_v18, %v2056_v49 }
 0x268   : > { %v5097_v38 = vadd.f32 %v2059_v3, %v2033_v13  ;;  %v5099_v25 = vadd.f32 %v2060_v57, %v2034_v12  ;;  %v2069_v53 = vadd.f32 %v2067_v5, %v2041_v31  ;;  %v2070_v6 = vadd.f32 %v2068_v29, %v2042_v11  ;;  %v3385_v11 = vld [vmem:[#allocation3 + $0x140] sm:$0xff]  ;;  %v3387_v29 = vld [vmem:[#allocation3 + $0x150] sm:$0xff] }
 0x269   : > { %v2073_v40 = vadd.f32 %v2071_v62, %v2045_v48  ;;  %v2074_v14 = vadd.f32 %v2072_v41, %v2046_v34  ;;  %v2089_v44 = vrot.slane %v5072_v59, 6  ;;  %v2090_v55 = vrot.slane %v5075_v0, 6 }
 0x26a   : > { %v2091_v8 = vrot.slane %v5089_v56, 6  ;;  %v2092_v30 = vrot.slane %v5092_v58, 6  ;;  %v2093_v24 = vrot.slane %v5078_v1, 6  ;;  %v2094_v35 = vrot.slane %v5095_v60, 6 }
 0x26b   : > { %v2107_v26 = vrot.slane %v5056_v37, 7  ;;  %v2108_v17 = vrot.slane %v5059_v45, 7  ;;  %v2109_v32 = vrot.slane %v5072_v59, 7  ;;  %v2110_v42 = vrot.slane %v5075_v0, 7 }
 0x26c   : > { %v2095_v2 = vsel %vm861_vm1, %v2089_v44, %v2091_v8  ;;  %v2096_v13 = vsel %vm861_vm1, %v2090_v55, %v2092_v30  ;;  %v2097_v12 = vsel %vm861_vm1, %v2093_v24, %v2087_v21  ;;  %v2098_v31 = vsel %vm861_vm1, %v2094_v35, %v2088_v20  ;;  %v3388_v20 = vld [vmem:[#allocation3 + $0x158] sm:$0xff] }
 0x26d   : > { %v2099_v50 = vmul.f32 %v3385_v11, %v2097_v12  ;;  %v2100_v61 = vmul.f32 %v3386_v22, %v2098_v31  ;;  %v2103_v36 = vmul.f32 %v3385_v11, %v2095_v2  ;;  %v2104_v23 = vmul.f32 %v3386_v22, %v2096_v13 }
 0x26e   : > { %v2111_v10 = vrot.slane %v5089_v56, 7  ;;  %v2112_v48 = vrot.slane %v5092_v58, 7  ;;  %v2113_v34 = vrot.slane %v5078_v1, 7  ;;  %v2114_v46 = vrot.slane %v5095_v60, 7 }
 0x26f   : > { %v2101_v28 = vadd.f32 %v2099_v50, %v2069_v53  ;;  %v2102_v39 = vadd.f32 %v2100_v61, %v2070_v6  ;;  %v2105_v49 = vadd.f32 %v2103_v36, %v2073_v40  ;;  %v2106_v3 = vadd.f32 %v2104_v23, %v2074_v14  ;;  %v3389_v6 = vld [vmem:[#allocation3 + $0x160] sm:$0xff]  ;;  %v3390_v14 = vld [vmem:[#allocation3 + $0x168] sm:$0xff] }
 0x270   : > { %v2115_v57 = vsel %vm884_vm2, %v2109_v32, %v2111_v10  ;;  %v2116_v16 = vsel %vm884_vm2, %v2110_v42, %v2112_v48  ;;  %v2117_v5 = vsel %vm884_vm2, %v2113_v34, %v2107_v26  ;;  %v2118_v18 = vsel %vm884_vm2, %v2114_v46, %v2108_v17 }
 0x271   : > { %v2119_v21 = vmul.f32 %v3387_v29, %v2117_v5  ;;  %v2120_v62 = vmul.f32 %v3388_v20, %v2118_v18  ;;  %v2123_v41 = vmul.f32 %v3387_v29, %v2115_v57  ;;  %v2124_v53 = vmul.f32 %v3388_v20, %v2116_v16 }
 0x272   : > { %v2127_v40 = vmul.f32 %v3389_v6, %v5056_v37  ;;  %v2128_v44 = vmul.f32 %v3390_v14, %v5059_v45  ;;  %v2131_v55 = vmul.f32 %v3389_v6, %v5089_v56  ;;  %v2132_v8 = vmul.f32 %v3390_v14, %v5092_v58 }
 0x273   : > { %v2121_v30 = vadd.f32 %v2119_v21, %v2101_v28  ;;  %v2122_v24 = vadd.f32 %v2120_v62, %v2102_v39  ;;  %v2125_v35 = vadd.f32 %v2123_v41, %v2105_v49  ;;  %v2126_v26 = vadd.f32 %v2124_v53, %v2106_v3 }
 0x274   : > { %v2135_v17 = vrot.slane %v5056_v37, 1  ;;  %v2136_v32 = vrot.slane %v5059_v45, 1  ;;  %v2137_v42 = vrot.slane %v5072_v59, 1  ;;  %v2138_v2 = vrot.slane %v5075_v0, 1 }
 0x275   : > { %v2129_v13 = vadd.f32 %v2127_v40, %v2121_v30  ;;  %v2130_v12 = vadd.f32 %v2128_v44, %v2122_v24  ;;  %v2133_v31 = vadd.f32 %v2131_v55, %v2125_v35  ;;  %v2134_v11 = vadd.f32 %v2132_v8, %v2126_v26  ;;  %v5706_v24 = vld [vmem:[#allocation19_spill] sm:$0xff] }
 0x276   : > { %v2139_v50 = vrot.slane %v5089_v56, 1  ;;  %v2140_v22 = vrot.slane %v5092_v58, 1  ;;  %v2141_v61 = vrot.slane %v5078_v1, 1  ;;  %v2142_v36 = vrot.slane %v5095_v60, 1  ;;  %v3397_v26 = vld [vmem:[#allocation8 + $0x24] ss:$8 sps:$4 sm:$0xff] (%p835_p10)  }
 0x277   : > { %v2145_v23 = vsel %vm917_vm3, %v2135_v17, %v2137_v42  ;;  %v2146_v10 = vsel %vm917_vm3, %v2136_v32, %v2138_v2  ;;  %v2155_v48 = vrot.slane %v5056_v37, 2  ;;  %v2156_v34 = vrot.slane %v5059_v45, 2  ;;  %v3399_v17 = vld [vmem:[#allocation8 + $0x20] ss:$8 sps:$4 sm:$0xff] (%p835_p10)   ;;  %v3400_v32 = vld [vmem:[#allocation8 + $0x34] ss:$8 sps:$4 sm:$0xff] (%p835_p10)  }
 0x278   : > { %v2143_v46 = vsel %vm917_vm3, %v2139_v50, %v2141_v61  ;;  %v2144_v28 = vsel %vm917_vm3, %v2140_v22, %v2142_v36  ;;  %v2147_v39 = vmul.f32 %v2145_v23, %v4731_v51  ;;  %v2148_v49 = vmul.f32 %v2146_v10, %v4733_v43  ;;  %v3402_v42 = vld [vmem:[#allocation8 + $0x30] ss:$8 sps:$4 sm:$0xff] (%p835_p10)   ;;  %v3403_v2 = vld [vmem:[#allocation8 + $0x44] ss:$8 sps:$4 sm:$0xff] (%p835_p10)   ;;  %v3411_v22 = vld [vmem:[#allocation8 + $0x60] ss:$8 sps:$4 sm:$0xff] (%p835_p10)  }
 0x279   : > { %v2151_v3 = vmul.f32 %v2143_v46, %v4731_v51  ;;  %v2152_v37 = vmul.f32 %v2144_v28, %v4733_v43  ;;  %v2157_v45 = vrot.slane %v5072_v59, 2  ;;  %v2158_v57 = vrot.slane %v5075_v0, 2  ;;  %v5704_v59 = vld [vmem:[#allocation29_spill] sm:$0xff]  ;;  %v3415_v23 = vld [vmem:[#allocation8 + $0x84] ss:$8 sps:$4 sm:$0xff] (%p835_p10)  }
 0x27a   : > { %v2149_v16 = vadd.f32 %v2147_v39, %v2129_v13  ;;  %v2150_v5 = vadd.f32 %v2148_v49, %v2130_v12  ;;  %v2159_v18 = vrot.slane %v5089_v56, 2  ;;  %v2160_v29 = vrot.slane %v5092_v58, 2  ;;  %v5705_v56 = vld [vmem:[#allocation30_spill] sm:$0xff]  ;;  %v3421_v46 = vld [vmem:[#allocation8 + $0xa4] ss:$8 sps:$4 sm:$0xff] (%p835_p10)  }
 0x27b   : > { %v2153_v21 = vadd.f32 %v2151_v3, %v2133_v31  ;;  %v2154_v20 = vadd.f32 %v2152_v37, %v2134_v11  ;;  %v2161_v62 = vrot.slane %v5078_v1, 2  ;;  %v2162_v41 = vrot.slane %v5095_v60, 2  ;;  %v3405_v13 = vld [vmem:[#allocation8 + $0x40] ss:$8 sps:$4 sm:$0xff] (%p835_p10)   ;;  %v3406_v12 = vld [vmem:[#allocation8 + $0x54] ss:$8 sps:$4 sm:$0xff] (%p835_p10)  }
 0x27c   : > { %v2165_v51 = vsel %vm940_vm4, %v2155_v48, %v2157_v45  ;;  %v2166_v43 = vsel %vm940_vm4, %v2156_v34, %v2158_v57  ;;  %v2176_v0 = vpack.c.bf16 %v4953_v47, %v5704_v59  ;;  %v2177_v58 = vpack.c.bf16 %v4955_v9, %v5705_v56  ;;  %v3408_v31 = vld [vmem:[#allocation8 + $0x50] ss:$8 sps:$4 sm:$0xff] (%p835_p10)   ;;  %v3409_v11 = vld [vmem:[#allocation8 + $0x64] ss:$8 sps:$4 sm:$0xff] (%p835_p10)   ;;  %v3412_v61 = vld [vmem:[#allocation8 + $0x74] ss:$8 sps:$4 sm:$0xff] (%p835_p10)  }
 0x27d   : > { %v2163_v53 = vsel %vm940_vm4, %v2159_v18, %v2161_v62  ;;  %v2164_v1 = vsel %vm940_vm4, %v2160_v29, %v2162_v41  ;;  %v2167_v60 = vmul.f32 %v2165_v51, %v4763_v52  ;;  %v2168_v6 = vmul.f32 %v2166_v43, %v4765_v19  ;;  %v3414_v36 = vld [vmem:[#allocation8 + $0x70] ss:$8 sps:$4 sm:$0xff] (%p835_p10)   ;;  %v3417_v10 = vld [vmem:[#allocation8 + $0x80] ss:$8 sps:$4 sm:$0xff] (%p835_p10)   ;;  %v3418_v48 = vld [vmem:[#allocation8 + $0x94] ss:$8 sps:$4 sm:$0xff] (%p835_p10)  }
 0x27e   : > { %v2065_v40 = vadd.f32 %v5083_v4, %v5045_v27  ;;  %v2066_v14 = vadd.f32 %v5086_v7, %v5047_v54  ;;  %v2171_v47 = vmul.f32 %v2163_v53, %v4763_v52  ;;  %v2172_v9 = vmul.f32 %v2164_v1, %v4765_v19  ;;  %2185 = vst [vmem:[%s2184_s12] sm:$0xff] %v2176_v0  ;;  %v5707_v27 = vld [vmem:[#allocation20_spill] sm:$0xff]  ;;  %v3424_v39 = vld [vmem:[#allocation8 + $0xb4] ss:$8 sps:$4 sm:$0xff] (%p835_p10)  }
 0x27f   : > { %2186 = vst [vmem:[%s2184_s12 + $0x8] sm:$0xff] %v2177_v58  ;;  %v2169_v44 = vadd.f32 %v2167_v60, %v2149_v16  ;;  %v2170_v55 = vadd.f32 %v2168_v6, %v2150_v5  ;;  %v2190_v35 = vpack.c.bf16 %v4957_v33, %v5706_v24  ;;  %v2191_v4 = vpack.c.bf16 %v4959_v63, %v5707_v27  ;;  %837 = sbr.rel (!%p835_p10) target bundleno = 340 (0x154), region = 135  ;;  %v3391_v33 = vld [vmem:[#allocation8 + $0x4] ss:$8 sps:$4 sm:$0xff] (%p835_p10)   ;;  %v3393_v63 = vld [vmem:[#allocation8] ss:$8 sps:$4 sm:$0xff] (%p835_p10)  }
 0x280   : > { %v2173_v8 = vadd.f32 %v2171_v47, %v2153_v21  ;;  %v2174_v30 = vadd.f32 %v2172_v9, %v2154_v20  ;;  %2411 = vmatprep.subr.bf16.mxu1 (%p835_p10), %v3391_v33  ;;  %v3420_v34 = vld [vmem:[#allocation8 + $0x90] ss:$8 sps:$4 sm:$0xff] (%p835_p10)   ;;  %v3423_v28 = vld [vmem:[#allocation8 + $0xa0] ss:$8 sps:$4 sm:$0xff] (%p835_p10)   ;;  %v3427_v3 = vld [vmem:[#allocation8 + $0xc4] ss:$8 sps:$4 sm:$0xff] (%p835_p10)  }
 0x281   : > { %v2178_v54 = vpack.c.bf16 %v2169_v44, %v5097_v38  ;;  %v2179_v52 = vpack.c.bf16 %v2170_v55, %v5099_v25  ;;  %v3394_v38 = vld [vmem:[#allocation8 + $0x14] ss:$8 sps:$4 sm:$0xff] (%p835_p10)   ;;  %2412 = vmatpush1.bf16.msra.mxu1 (%p835_p10), %v3393_v63  ;;  %v3396_v25 = vld [vmem:[#allocation8 + $0x10] ss:$8 sps:$4 sm:$0xff] (%p835_p10)   ;;  %v3429_v37 = vld [vmem:[#allocation8 + $0xc0] ss:$8 sps:$4 sm:$0xff] (%p835_p10)  }
 0x282   : > { %v2192_v19 = vpack.c.bf16 %v2173_v8, %v2065_v40  ;;  %v2193_v7 = vpack.c.bf16 %v2174_v30, %v2066_v14  ;;  %2413 = vmatprep.subr.bf16.mxu1 (%p835_p10), %v3394_v38  ;;  %v3426_v49 = vld [vmem:[#allocation8 + $0xb0] ss:$8 sps:$4 sm:$0xff] (%p835_p10)   ;;  %v3430_v45 = vld [vmem:[#allocation8 + $0xd4] ss:$8 sps:$4 sm:$0xff] (%p835_p10)   ;;  %v3433_v16 = vld [vmem:[#allocation8 + $0xe4] ss:$8 sps:$4 sm:$0xff] (%p835_p10)  }
 0x283   : > { %2187 = vst [vmem:[%s2184_s12 + $0x10] sm:$0xff] %v2178_v54  ;;  %2188 = vst [vmem:[%s2184_s12 + $0x18] sm:$0xff] %v2179_v52  ;;  %v3432_v57 = vld [vmem:[#allocation8 + $0xd0] ss:$8 sps:$4 sm:$0xff] (%p835_p10)   ;;  %v3435_v5 = vld [vmem:[#allocation8 + $0xe0] ss:$8 sps:$4 sm:$0xff] (%p835_p10)  }
 0x284   : > { %2199 = vst [vmem:[%s2198_s22] sm:$0xff] %v2190_v35  ;;  %2200 = vst [vmem:[%s2198_s22 + $0x8] sm:$0xff] %v2191_v4  ;;  %v3436_v18 = vld [vmem:[#allocation8 + $0xf4] ss:$8 sps:$4 sm:$0xff] (%p835_p10)   ;;  %v3438_v29 = vld [vmem:[#allocation8 + $0xf0] ss:$8 sps:$4 sm:$0xff] (%p835_p10)  }
 0x285   : > { %2201 = vst [vmem:[%s2198_s22 + $0x10] sm:$0xff] %v2192_v19  ;;  %2202 = vst [vmem:[%s2198_s22 + $0x18] sm:$0xff] %v2193_v7  ;;  %2414 = vmatpush1.bf16.msra.mxu1 (%p835_p10), %v3396_v25 }
 0x286   :  { %2415 = vmatprep.subr.bf16.mxu1 %v3397_v26 }
 0x289   :  { %2416 = vmatpush1.bf16.msra.mxu1 %v3399_v17 }
 0x28a   :  { %2417 = vmatprep.subr.bf16.mxu1 %v3400_v32 }
 0x28c   :  { %v2204_v50 = vld [vmem:[#allocation4 + $0x8] sm:$0xff]  ;;  %v2203_v21 = vld [vmem:[#allocation4] sm:$0xff]  ;;  %v2206_v20 = vld [vmem:[#allocation4 + $0x18] sm:$0xff] }
 0x28d   :  { %2418 = vmatpush1.bf16.msra.mxu1 %v3402_v42  ;;  %2443 = vmatprep.mubr.bf16.mxu1 %v2204_v50  ;;  %v2205_v62 = vld [vmem:[#allocation4 + $0x10] sm:$0xff]  ;;  %v2208_v41 = vld [vmem:[#allocation4 + $0x28] sm:$0xff]  ;;  %v2207_v51 = vld [vmem:[#allocation4 + $0x20] sm:$0xff] }
 0x28e   :  { %2419 = vmatprep.subr.bf16.mxu1 %v3403_v2  ;;  %v2210_v43 = vld [vmem:[#allocation4 + $0x38] sm:$0xff]  ;;  %v2209_v59 = vld [vmem:[#allocation4 + $0x30] sm:$0xff]  ;;  %v2212_v0 = vld [vmem:[#allocation4 + $0x48] sm:$0xff] }
 0x28f   :  { %v2211_v56 = vld [vmem:[#allocation4 + $0x40] sm:$0xff]  ;;  %v2214_v58 = vld [vmem:[#allocation4 + $0x58] sm:$0xff]  ;;  %v2213_v53 = vld [vmem:[#allocation4 + $0x50] sm:$0xff] }
 0x290   :  { %v2216_v1 = vld [vmem:[#allocation4 + $0x68] sm:$0xff]  ;;  %v2215_v60 = vld [vmem:[#allocation4 + $0x60] sm:$0xff]  ;;  %v2218_v6 = vld [vmem:[#allocation4 + $0x78] sm:$0xff] }
 0x291   :  { %2420 = vmatpush1.bf16.msra.mxu1 %v3405_v13  ;;  %v2217_v40 = vld [vmem:[#allocation4 + $0x70] sm:$0xff] }
 0x292   :  { %2421 = vmatprep.subr.bf16.mxu1 %v3406_v12 }
 0x295   :  { %2422 = vmatpush1.bf16.msra.mxu1 %v3408_v31 }
 0x296   :  { %2423 = vmatprep.subr.bf16.mxu1 %v3409_v11 }
 0x299   :  { %2424 = vmatpush1.bf16.msra.mxu1 %v3411_v22 }
 0x29a   :  { %2425 = vmatprep.subr.bf16.mxu1 %v3412_v61 }
 0x29d   :  { %2426 = vmatpush1.bf16.msra.mxu1 %v3414_v36 }
 0x29e   :  { %2427 = vmatprep.subr.bf16.mxu1 %v3415_v23 }
 0x2a1   :  { %2428 = vmatpush1.bf16.msra.mxu1 %v3417_v10 }
 0x2a2   :  { %2429 = vmatprep.subr.bf16.mxu1 %v3418_v48 }
 0x2a5   :  { %2430 = vmatpush1.bf16.msra.mxu1 %v3420_v34 }
 0x2a6   :  { %2431 = vmatprep.subr.bf16.mxu1 %v3421_v46 }
 0x2a9   :  { %2432 = vmatpush1.bf16.msra.mxu1 %v3423_v28 }
 0x2aa   :  { %2433 = vmatprep.subr.bf16.mxu1 %v3424_v39  ;;  %v3439_v39 = vld [vmem:[#allocation10 + $0x40] sm:$0xff]  }
 0x2ab   :  { %3294 = vmatprep.subr.bf16.mxu0 %v3439_v39  ;;  %v3454_v39 = vld [vmem:[#allocation10 + $0x38] sm:$0xff]  }
 0x2ad   :  { %2434 = vmatpush1.bf16.msra.mxu1 %v3426_v49  ;;  %v3440_v49 = vld [vmem:[#allocation10] sm:$0xff]  }
 0x2ae   :  { %2435 = vmatprep.subr.bf16.mxu1 %v3427_v3  ;;  %3295 = vmatpush3.bf16.msra.mxu0 %v3440_v49 }
 0x2b1   :  { %2436 = vmatpush1.bf16.msra.mxu1 %v3429_v37 }
 0x2b2   :  { %2437 = vmatprep.subr.bf16.mxu1 %v3430_v45 }
 0x2b5   :  { %2438 = vmatpush1.bf16.msra.mxu1 %v3432_v57  ;;  %v3441_v57 = vld [vmem:[#allocation10 + $0x48] sm:$0xff]  }
 0x2b6   :  { %2439 = vmatprep.subr.bf16.mxu1 %v3433_v16  ;;  %3296 = vmatprep.subr.bf16.mxu0 %v3441_v57 }
 0x2b9   :  { %2440 = vmatpush1.bf16.msra.mxu1 %v3435_v5 }
 0x2ba   :  { %2441 = vmatprep.subr.bf16.mxu1 %v3436_v18  ;;  %v3442_v18 = vld [vmem:[#allocation10 + $0x8] sm:$0xff]  }
 0x2bb   :  { %3297 = vmatpush3.bf16.msra.mxu0 %v3442_v18 }
 0x2bd   :  { %2442 = vmatpush1.bf16.msra.mxu1 %v3438_v29 }
 0x2c0   :  { %2444 = vmatmul.mubr.bf16.vlgmr.msra.gmra.mrb[0].mxu1 %v2203_v21 }
 0x2c1   :  { %2453 = vmatprep.mubr.bf16.mxu1 %v2206_v20 }
 0x2c8   :  { %2454 = vmatmul.mubr.bf16.gmra.mrb[4].mxu1 %v2205_v62  ;;  %v3443_v62 = vld [vmem:[#allocation10 + $0x50] sm:$0xff]  }
 0x2c9   :  { %2463 = vmatprep.mubr.bf16.mxu1 %v2208_v41  ;;  %v3444_v41 = vld [vmem:[#allocation10 + $0x10] sm:$0xff]   ;;  %3298 = vmatprep.subr.bf16.mxu0 %v3443_v62 }
 0x2ca   :  { %3299 = vmatpush3.bf16.msra.mxu0 %v3444_v41 }
 0x2d0   :  { %2464 = vmatmul.mubr.bf16.gmra.mrb[8].mxu1 %v2207_v51 }
 0x2d1   :  { %2473 = vmatprep.mubr.bf16.mxu1 %v2210_v43 }
 0x2d8   :  { %2474 = vmatmul.mubr.bf16.gmra.mrb[12].mxu1 %v2209_v59 }
 0x2d9   :  { %2483 = vmatprep.mubr.bf16.mxu1 %v2212_v0  ;;  %v3445_v0 = vld [vmem:[#allocation10 + $0x58] sm:$0xff]  }
 0x2da   :  { %3300 = vmatprep.subr.bf16.mxu0 %v3445_v0 }
 0x2e0   :  { %2484 = vmatmul.mubr.bf16.gmra.mrb[16].mxu1 %v2211_v56 }
 0x2e1   :  { %2493 = vmatprep.mubr.bf16.mxu1 %v2214_v58 }
 0x2e8   :  { %2494 = vmatmul.mubr.bf16.gmra.mrb[20].mxu1 %v2213_v53  ;;  %v3446_v53 = vld [vmem:[#allocation10 + $0x18] sm:$0xff]  }
 0x2e9   :  { %2503 = vmatprep.mubr.bf16.mxu1 %v2216_v1  ;;  %3301 = vmatpush3.bf16.msra.mxu0 %v3446_v53 }
 0x2f0   :  { %2504 = vmatmul.mubr.bf16.gmra.mrb[24].mxu1 %v2215_v60 }
 0x2f1   :  { %2513 = vmatprep.mubr.bf16.mxu1 %v2218_v6 }
 0x2f8   :  { %2514 = vmatmul.mubr.bf16.gmra.mrb[28].mxu1 %v2217_v40  ;;  %v3447_v40 = vld [vmem:[#allocation10 + $0x60] sm:$0xff]  }
 0x2f9   :  { %3302 = vmatprep.subr.bf16.mxu0 %v3447_v40 }
 0x393   :  { %v5200_v14 = vpop.f32.mrb[0].mxu1 }
 0x394   :  { %v5202_v47 = vpop.f32.mrb[1].mxu1 }
 0x395   :  { %v5204_v9 = vpop.f32.mrb[2].mxu1 }
 0x396   :  { %v2524_v44 = vadd.f32 %v5204_v9, %v5200_v14  ;;  %v5208_v55 = vpop.f32.mrb[3].mxu1 }
 0x397   :  { %v2545_v8 = vadd.f32 %v5208_v55, %v5202_v47 }
 0x39b   :  { %v5212_v30 = vpop.f32.mrb[4].mxu1 }
 0x39c   :  { %v2525_v24 = vadd.f32 %v2524_v44, %v5212_v30  ;;  %v5215_v35 = vpop.f32.mrb[5].mxu1  ;;  %v3448_v44 = vld [vmem:[#allocation10 + $0x20] sm:$0xff]  }
 0x39d   :  { %v2546_v27 = vadd.f32 %v2545_v8, %v5215_v35  ;;  %v5218_v4 = vpop.f32.mrb[6].mxu1  ;;  %v3449_v8 = vld [vmem:[#allocation10 + $0x68] sm:$0xff]   ;;  %3303 = vmatpush3.bf16.msra.mxu0 %v3448_v44 }
 0x39e   :  { %v2526_v54 = vadd.f32 %v2525_v24, %v5218_v4  ;;  %v5221_v52 = vpop.f32.mrb[7].mxu1  ;;  %3304 = vmatprep.subr.bf16.mxu0 %v3449_v8 }
 0x39f   :  { %v2547_v19 = vadd.f32 %v2546_v27, %v5221_v52  ;;  %v3450_v27 = vld [vmem:[#allocation10 + $0x28] sm:$0xff]  }
 0x3a1   :  { %3305 = vmatpush3.bf16.msra.mxu0 %v3450_v27 }
 0x3a3   :  { %v5224_v7 = vpop.f32.mrb[8].mxu1 }
 0x3a4   :  { %v2527_v33 = vadd.f32 %v2526_v54, %v5224_v7  ;;  %v5227_v63 = vpop.f32.mrb[9].mxu1 }
 0x3a5   :  { %v2548_v38 = vadd.f32 %v2547_v19, %v5227_v63  ;;  %v5230_v25 = vpop.f32.mrb[10].mxu1 }
 0x3a6   :  { %v2528_v26 = vadd.f32 %v2527_v33, %v5230_v25  ;;  %v5233_v17 = vpop.f32.mrb[11].mxu1  ;;  %v3451_v33 = vld [vmem:[#allocation10 + $0x70] sm:$0xff]  }
 0x3a7   :  { %v2549_v32 = vadd.f32 %v2548_v38, %v5233_v17  ;;  %3306 = vmatprep.subr.bf16.mxu0 %v3451_v33 }
 0x3ab   :  { %v5236_v42 = vpop.f32.mrb[12].mxu1 }
 0x3ac   :  { %v2529_v2 = vadd.f32 %v2528_v26, %v5236_v42  ;;  %v5239_v13 = vpop.f32.mrb[13].mxu1 }
 0x3ad   :  { %v2550_v12 = vadd.f32 %v2549_v32, %v5239_v13  ;;  %v5242_v31 = vpop.f32.mrb[14].mxu1 }
 0x3ae   :  { %v2530_v11 = vadd.f32 %v2529_v2, %v5242_v31  ;;  %v5245_v50 = vpop.f32.mrb[15].mxu1 }
 0x3af   :  { %v2551_v22 = vadd.f32 %v2550_v12, %v5245_v50 }
 0x3b3   :  { %v5248_v61 = vpop.f32.mrb[16].mxu1 }
 0x3b4   :  { %v2531_v36 = vadd.f32 %v2530_v11, %v5248_v61  ;;  %v5251_v23 = vpop.f32.mrb[17].mxu1  ;;  %v3452_v11 = vld [vmem:[#allocation10 + $0x30] sm:$0xff]  }
 0x3b5   :  { %v2552_v10 = vadd.f32 %v2551_v22, %v5251_v23  ;;  %v5254_v48 = vpop.f32.mrb[18].mxu1  ;;  %3307 = vmatpush3.bf16.msra.mxu0 %v3452_v11 }
 0x3b6   :  { %v2532_v34 = vadd.f32 %v2531_v36, %v5254_v48  ;;  %v5257_v46 = vpop.f32.mrb[19].mxu1  ;;  %v3453_v36 = vld [vmem:[#allocation10 + $0x78] sm:$0xff]  }
 0x3b7   :  { %v2553_v28 = vadd.f32 %v2552_v10, %v5257_v46  ;;  %3308 = vmatprep.subr.bf16.mxu0 %v3453_v36 }
 0x3b9   :  { %3309 = vmatpush3.bf16.msra.mxu0 %v3454_v39 }
 0x3bb   :  { %v5260_v3 = vpop.f32.mrb[20].mxu1 }
 0x3bc   :  { %v2533_v37 = vadd.f32 %v2532_v34, %v5260_v3  ;;  %v5263_v45 = vpop.f32.mrb[21].mxu1 }
 0x3bd   :  { %v2554_v16 = vadd.f32 %v2553_v28, %v5263_v45  ;;  %v5266_v5 = vpop.f32.mrb[22].mxu1 }
 0x3be   :  { %v2534_v29 = vadd.f32 %v2533_v37, %v5266_v5  ;;  %v5269_v21 = vpop.f32.mrb[23].mxu1 }
 0x3bf   :  { %v2555_v20 = vadd.f32 %v2554_v16, %v5269_v21 }
 0x3c3   :  { %v2505_v51 = vpop.f32.mrb[24].mxu1 }
 0x3c4   :  { %v2535_v43 = vadd.f32 %v2534_v29, %v2505_v51  ;;  %v5272_v59 = vpop.f32.mrb[25].mxu1 }
 0x3c5   :  { %v2556_v56 = vadd.f32 %v2555_v20, %v5272_v59  ;;  %v2509_v58 = vpop.f32.mrb[26].mxu1 }
 0x3c6   :  { %v2536_v1 = vadd.f32 %v2535_v43, %v2509_v58  ;;  %v5275_v60 = vpop.f32.mrb[27].mxu1 }
 0x3c7   :  { %v2557_v6 = vadd.f32 %v2556_v56, %v5275_v60 }
 0x3cb   :  { %v2515_v24 = vpop.f32.mrb[28].mxu1 }
 0x3cc   :  { %v2537_v54 = vadd.f32 %v2536_v1, %v2515_v24  ;;  %v5278_v19 = vpop.f32.mrb[29].mxu1 }
 0x3cd   :  { %v2558_v38 = vadd.f32 %v2557_v6, %v5278_v19  ;;  %v2519_v26 = vpop.f32.mrb[30].mxu1 }
 0x3ce   :  { %v2538_v32 = vadd.f32 %v2537_v54, %v2519_v26  ;;  %v5281_v2 = vpop.f32.mrb[31].mxu1 }
 0x3cf   :  { %v2559_v12 = vadd.f32 %v2558_v38, %v5281_v2 }
 0x3d0   :  { %v2539_v22 = vrot.slane %v2538_v32, 4 }
 0x3d1   :  { %v2560_v10 = vrot.slane %v2559_v12, 4 }
 0x3d2   :  { %v2540_v34 = vadd.f32 %v2539_v22, %v2538_v32 }
 0x3d3   :  { %v2561_v28 = vadd.f32 %v2560_v10, %v2559_v12 }
 0x3d4   :  { %v2541_v49 = vrot.slane %v2540_v34, 2 }
 0x3d5   :  { %v2562_v37 = vrot.slane %v2561_v28, 2 }
 0x3d6   :  { %v2542_v57 = vadd.f32 %v2541_v49, %v2540_v34 }
 0x3d7   :  { %v2563_v16 = vadd.f32 %v2562_v37, %v2561_v28 }
 0x3d8   :  { %v2543_v18 = vrot.slane %v2542_v57, 1 }
 0x3d9   :  { %v2564_v29 = vrot.slane %v2563_v16, 1 }
 0x3da   :  { %v2544_v20 = vadd.f32 %v2543_v18, %v2542_v57 }
 0x3db   :  { %v2565_v41 = vadd.f32 %v2564_v29, %v2563_v16 }
 0x3dc   :  { %v2567_v62 = vmul.f32 0.0078125, %v2544_v20 }
 0x3dd   :  { %v2568_v8 = vmul.f32 0.0078125, %v2565_v41 }
 0x3de   :  { %v5285_v43 = vsub.f32 %v5200_v14, %v2567_v62  ;;  %v5288_v0 = vsub.f32 %v5204_v9, %v2567_v62  ;;  %v5291_v56 = vsub.f32 %v5212_v30, %v2567_v62  ;;  %v5294_v53 = vsub.f32 %v5218_v4, %v2567_v62 }
 0x3df   :  { %v5297_v1 = vsub.f32 %v5224_v7, %v2567_v62  ;;  %v5300_v6 = vsub.f32 %v5230_v25, %v2567_v62  ;;  %v5303_v40 = vsub.f32 %v5236_v42, %v2567_v62  ;;  %v5306_v14 = vsub.f32 %v5242_v31, %v2567_v62 }
 0x3e0   :  { %v5309_v9 = vsub.f32 %v5248_v61, %v2567_v62  ;;  %v5312_v30 = vsub.f32 %v5254_v48, %v2567_v62  ;;  %v5315_v4 = vsub.f32 %v5260_v3, %v2567_v62  ;;  %v5318_v7 = vsub.f32 %v5266_v5, %v2567_v62 }
 0x3e1   :  { %v5320_v25 = vsub.f32 %v2505_v51, %v2567_v62  ;;  %v5322_v44 = vsub.f32 %v2509_v58, %v2567_v62  ;;  %v5324_v42 = vsub.f32 %v2515_v24, %v2567_v62  ;;  %v5326_v31 = vsub.f32 %v2519_v26, %v2567_v62 }
 0x3e2   :  { %v2601_v61 = vmul.f32 %v5285_v43, %v5285_v43  ;;  %v2603_v48 = vmul.f32 %v5288_v0, %v5288_v0  ;;  %v2605_v3 = vmul.f32 %v5291_v56, %v5291_v56  ;;  %v2607_v5 = vmul.f32 %v5294_v53, %v5294_v53 }
 0x3e3   :  { %v5337_v58 = vsub.f32 %v5202_v47, %v2568_v8  ;;  %v5340_v24 = vsub.f32 %v5208_v55, %v2568_v8  ;;  %v5343_v27 = vsub.f32 %v5215_v35, %v2568_v8  ;;  %v5346_v54 = vsub.f32 %v5221_v52, %v2568_v8 }
 0x3e4   :  { %v2633_v51 = vadd.f32 %v2603_v48, %v2601_v61  ;;  %v5349_v33 = vsub.f32 %v5227_v63, %v2568_v8  ;;  %v5352_v38 = vsub.f32 %v5233_v17, %v2568_v8  ;;  %v5355_v26 = vsub.f32 %v5239_v13, %v2568_v8 }
 0x3e5   :  { %v5358_v32 = vsub.f32 %v5245_v50, %v2568_v8  ;;  %v5361_v55 = vsub.f32 %v5251_v23, %v2568_v8  ;;  %v5364_v35 = vsub.f32 %v5257_v46, %v2568_v8  ;;  %v5367_v52 = vsub.f32 %v5263_v45, %v2568_v8 }
 0x3e6   :  { %v2634_v47 = vadd.f32 %v2633_v51, %v2605_v3  ;;  %v5370_v63 = vsub.f32 %v5269_v21, %v2568_v8  ;;  %v5373_v17 = vsub.f32 %v5272_v59, %v2568_v8  ;;  %v5376_v13 = vsub.f32 %v5275_v60, %v2568_v8 }
 0x3e7   :  { %v2609_v50 = vmul.f32 %v5297_v1, %v5297_v1  ;;  %v5381_v12 = vsub.f32 %v5278_v19, %v2568_v8  ;;  %v5384_v46 = vsub.f32 %v5281_v2, %v2568_v8  ;;  %v2602_v45 = vmul.f32 %v5337_v58, %v5337_v58 }
 0x3e8   :  { %v2635_v23 = vadd.f32 %v2634_v47, %v2607_v5  ;;  %v2604_v21 = vmul.f32 %v5340_v24, %v5340_v24  ;;  %v2611_v59 = vmul.f32 %v5300_v6, %v5300_v6  ;;  %v2613_v11 = vmul.f32 %v5303_v40, %v5303_v40 }
 0x3e9   :  { %v2606_v19 = vmul.f32 %v5343_v27, %v5343_v27  ;;  %v2615_v2 = vmul.f32 %v5306_v14, %v5306_v14  ;;  %v2608_v34 = vmul.f32 %v5346_v54, %v5346_v54  ;;  %v2617_v39 = vmul.f32 %v5309_v9, %v5309_v9 }
 0x3ea   :  { %v2636_v60 = vadd.f32 %v2635_v23, %v2609_v50  ;;  %v2654_v36 = vadd.f32 %v2604_v21, %v2602_v45  ;;  %v2610_v37 = vmul.f32 %v5349_v33, %v5349_v33  ;;  %v2619_v16 = vmul.f32 %v5312_v30, %v5312_v30 }
 0x3eb   :  { %v2612_v29 = vmul.f32 %v5352_v38, %v5352_v38  ;;  %v2621_v62 = vmul.f32 %v5315_v4, %v5315_v4  ;;  %v2614_v61 = vmul.f32 %v5355_v26, %v5355_v26  ;;  %v2623_v8 = vmul.f32 %v5318_v7, %v5318_v7 }
 0x3ec   :  { %v2637_v22 = vadd.f32 %v2636_v60, %v2611_v59  ;;  %v2655_v28 = vadd.f32 %v2654_v36, %v2606_v19  ;;  %v2616_v5 = vmul.f32 %v5358_v32, %v5358_v32  ;;  %v2625_v47 = vmul.f32 %v5320_v25, %v5320_v25 }
 0x3ed   :  { %v2618_v23 = vmul.f32 %v5361_v55, %v5361_v55  ;;  %v2627_v21 = vmul.f32 %v5322_v44, %v5322_v44  ;;  %v2620_v60 = vmul.f32 %v5364_v35, %v5364_v35  ;;  %v2622_v36 = vmul.f32 %v5367_v52, %v5367_v52 }
 0x3ee   :  { %v2638_v10 = vadd.f32 %v2637_v22, %v2613_v11  ;;  %v2656_v57 = vadd.f32 %v2655_v28, %v2608_v34  ;;  %v2629_v22 = vmul.f32 %v5324_v42, %v5324_v42  ;;  %v2624_v28 = vmul.f32 %v5370_v63, %v5370_v63 }
 0x3f0   :  { %v2639_v49 = vadd.f32 %v2638_v10, %v2615_v2  ;;  %v2657_v20 = vadd.f32 %v2656_v57, %v2610_v37  ;;  %v2631_v10 = vmul.f32 %v5326_v31, %v5326_v31  ;;  %v2626_v37 = vmul.f32 %v5373_v17, %v5373_v17 }
 0x3f2   :  { %v2640_v18 = vadd.f32 %v2639_v49, %v2617_v39  ;;  %v2658_v48 = vadd.f32 %v2657_v20, %v2612_v29 }
 0x3f4   :  { %v2641_v41 = vadd.f32 %v2640_v18, %v2619_v16  ;;  %v2659_v51 = vadd.f32 %v2658_v48, %v2614_v61  ;;  %v2628_v18 = vmul.f32 %v5376_v13, %v5376_v13  ;;  %v2632_v48 = vmul.f32 %v5384_v46, %v5384_v46 }
 0x3f6   :  { %v2642_v3 = vadd.f32 %v2641_v41, %v2621_v62  ;;  %v2660_v45 = vadd.f32 %v2659_v51, %v2616_v5  ;;  %v2630_v62 = vmul.f32 %v5381_v12, %v5381_v12 }
 0x3f8   :  { %v2643_v50 = vadd.f32 %v2642_v3, %v2623_v8  ;;  %v2661_v11 = vadd.f32 %v2660_v45, %v2618_v23 }
 0x3fa   :  { %v2644_v59 = vadd.f32 %v2643_v50, %v2625_v47  ;;  %v2662_v2 = vadd.f32 %v2661_v11, %v2620_v60 }
 0x3fc   :  { %v2645_v19 = vadd.f32 %v2644_v59, %v2627_v21  ;;  %v2663_v39 = vadd.f32 %v2662_v2, %v2622_v36  ;;  %v3570_v2 = vmov 1966171168  }
 0x3fe   :  { %v2646_v34 = vadd.f32 %v2645_v19, %v2629_v22  ;;  %v2664_v57 = vadd.f32 %v2663_v39, %v2624_v28 }
 0x400   :  { %v2647_v49 = vadd.f32 %v2646_v34, %v2631_v10  ;;  %v2665_v29 = vadd.f32 %v2664_v57, %v2626_v37  ;;  %v2686_v10 = vunpack.c.l.s4 %v3570_v2 }
 0x402   :  { %v2648_v16 = vrot.slane %v2647_v49, 4  ;;  %v2666_v41 = vadd.f32 %v2665_v29, %v2628_v18  ;;  %v2687_v34 = vunpack.c.0.s8 %v2686_v10  ;;  %v2744_v29 = vld [vmem:[%s5542_s6] sm:$0x3] }
 0x404   :  { %v2649_v20 = vadd.f32 %v2648_v16, %v2647_v49  ;;  %v2667_v8 = vadd.f32 %v2666_v41, %v2630_v62  ;;  %v2690_v39 = vsub.s32 %v2687_v34, %v3761_v15  ;;  %v2677_v16 = vld [vmem:[%s5541_s5] sm:$0x3] }
 0x405   :  { %v5708_v62 = vld [vmem:[#allocation16_spill] sm:$0xff] }
 0x406   :  { %v2650_v61 = vrot.slane %v2649_v20, 2  ;;  %v2668_v5 = vadd.f32 %v2667_v8, %v2632_v48 }
 0x408   :  { %v2651_v3 = vadd.f32 %v2650_v61, %v2649_v20  ;;  %v2669_v47 = vrot.slane %v2668_v5, 4  ;;  %v2753_v61 = vrot.slane %v2744_v29, %v5708_v62 }
 0x40a   :  { %v2652_v51 = vrot.slane %v2651_v3, 1  ;;  %v2670_v23 = vadd.f32 %v2669_v47, %v2668_v5 }
 0x40c   :  { %v2653_v50 = vadd.f32 %v2652_v51, %v2651_v3  ;;  %v2671_v45 = vrot.slane %v2670_v23, 2 }
 0x40e   :  { %v2675_v21 = vmul.f32 0.0078125, %v2653_v50  ;;  %v2672_v59 = vadd.f32 %v2671_v45, %v2670_v23 }
 0x410   :  { %v2673_v60 = vrot.slane %v2672_v59, 1  ;;  %v2678_v11 = vadd.f32 1e-05, %v2675_v21 }
 0x412   :  { %v2674_v22 = vadd.f32 %v2673_v60, %v2672_v59  ;;  %3455 = vrsqrt.f32 %v2678_v11 }
 0x414   :  { %v2676_v19 = vmul.f32 0.0078125, %v2674_v22 }
 0x416   :  { %v2679_v36 = vadd.f32 1e-05, %v2676_v19 }
 0x418   :  { %3457 = vrsqrt.f32 %v2679_v36 }
 0x41c   :  { %v3456_v28 = vpop.eup %3455 }
 0x422   :  { %v3458_v49 = vpop.eup %3457 }
 0x423   :  { %v2684_v37 = vcombine.low %v3456_v28, %v3458_v49 }
 0x425   :  { %v2691_v57 = vrot.slane %v2684_v37, %v2690_v39 }
 0x427   :  { %v2698_v18 = vrot.slane %v2691_v57, %v2690_v39 }
 0x429   :  { %v2700_v20 = vmul.f32 %v2698_v18, %v2677_v16 }
 0x42b   :  { %v2709_v41 = vrot.slane %v2700_v20, %v5708_v62 }
 0x42d   :  { %v2729_v48 = vmul.f32 %v2709_v41, %v5361_v55  ;;  %v2731_v15 = vmul.f32 %v2709_v41, %v5364_v35  ;;  %v2733_v8 = vmul.f32 %v2709_v41, %v5367_v52  ;;  %v2735_v3 = vmul.f32 %v2709_v41, %v5370_v63 }
 0x42e   :  { %v2737_v5 = vmul.f32 %v2709_v41, %v5373_v17  ;;  %v2739_v51 = vmul.f32 %v2709_v41, %v5376_v13  ;;  %v2741_v47 = vmul.f32 %v2709_v41, %v5381_v12  ;;  %v2743_v50 = vmul.f32 %v2709_v41, %v5384_v46 }
 0x42f   :  { %v2773_v23 = vadd.f32 %v2753_v61, %v2729_v48  ;;  %v2775_v45 = vadd.f32 %v2753_v61, %v2731_v15  ;;  %v2777_v21 = vadd.f32 %v2753_v61, %v2733_v8  ;;  %v2779_v59 = vadd.f32 %v2753_v61, %v2735_v3  ;;  %v5709_v48 = vld [vmem:[#allocation15_spill] sm:$0xff] }
 0x430   :  { %v2781_v11 = vadd.f32 %v2753_v61, %v2737_v5  ;;  %v2713_v52 = vmul.f32 %v2709_v41, %v5337_v58  ;;  %v2715_v63 = vmul.f32 %v2709_v41, %v5340_v24  ;;  %v2717_v17 = vmul.f32 %v2709_v41, %v5343_v27 }
 0x431   :  { %v2805_v60 = vmax.f32 %v2773_v23, 0.0  ;;  %v2807_v55 = vmax.f32 %v2775_v45, 0.0  ;;  %v2809_v35 = vmax.f32 %v2777_v21, 0.0  ;;  %v2783_v13 = vadd.f32 %v2753_v61, %v2739_v51 }
 0x432   :  { %v2719_v12 = vmul.f32 %v2709_v41, %v5346_v54  ;;  %v2811_v19 = vmax.f32 %v2779_v59, 0.0  ;;  %v2757_v36 = vadd.f32 %v2753_v61, %v2713_v52  ;;  %v2759_v2 = vadd.f32 %v2753_v61, %v2715_v63 }
 0x433   :  { %v2861_v22 = vadd.f32 %v2807_v55, %v2805_v60  ;;  %v2721_v10 = vmul.f32 %v2709_v41, %v5349_v33  ;;  %v2761_v34 = vadd.f32 %v2753_v61, %v2717_v17  ;;  %v2785_v28 = vadd.f32 %v2753_v61, %v2741_v47 }
 0x434   :  { %v2813_v39 = vmax.f32 %v2781_v11, 0.0  ;;  %v2789_v37 = vmax.f32 %v2757_v36, 0.0  ;;  %v2723_v58 = vmul.f32 %v2709_v41, %v5352_v38  ;;  %v2725_v24 = vmul.f32 %v2709_v41, %v5355_v26 }
 0x435   :  { %v2862_v46 = vadd.f32 %v2861_v22, %v2809_v35  ;;  %v2763_v57 = vadd.f32 %v2753_v61, %v2719_v12  ;;  %v2791_v27 = vmax.f32 %v2759_v2, 0.0  ;;  %v2787_v16 = vadd.f32 %v2753_v61, %v2743_v50 }
 0x436   :  { %v2815_v18 = vmax.f32 %v2783_v13, 0.0  ;;  %v2727_v62 = vmul.f32 %v2709_v41, %v5358_v32  ;;  %v5466_v15 = vrot.slane %v2700_v20, %v5709_v48  ;;  %v2765_v33 = vadd.f32 %v2753_v61, %v2721_v10 }
 0x437   :  { %v2863_v49 = vadd.f32 %v2862_v46, %v2811_v19  ;;  %v2793_v8 = vmax.f32 %v2761_v34, 0.0  ;;  %v2833_v3 = vadd.f32 %v2791_v27, %v2789_v37  ;;  %v2817_v5 = vmax.f32 %v2785_v28, 0.0 }
 0x438   :  { %v2767_v47 = vadd.f32 %v2753_v61, %v2723_v58  ;;  %v2769_v23 = vadd.f32 %v2753_v61, %v2725_v24  ;;  %v2795_v38 = vmax.f32 %v2763_v57, 0.0  ;;  %v5469_v26 = vrot.slane %v2744_v29, %v5709_v48 }
 0x439   :  { %v2864_v54 = vadd.f32 %v2863_v49, %v2813_v39  ;;  %v2834_v45 = vadd.f32 %v2833_v3, %v2793_v8  ;;  %v2819_v50 = vmax.f32 %v2787_v16, 0.0  ;;  %v2771_v59 = vadd.f32 %v2753_v61, %v2727_v62 }
 0x43a   :  { %v2797_v60 = vmax.f32 %v2765_v33, 0.0  ;;  %v2712_v20 = vmul.f32 %v5466_v15, %v5285_v43  ;;  %v2714_v41 = vmul.f32 %v5466_v15, %v5288_v0  ;;  %v2728_v11 = vmul.f32 %v5466_v15, %v5309_v9 }
 0x43b   :  { %v2865_v51 = vadd.f32 %v2864_v54, %v2815_v18  ;;  %v2835_v32 = vadd.f32 %v2834_v45, %v2795_v38  ;;  %v2730_v35 = vmul.f32 %v5466_v15, %v5312_v30  ;;  %v2799_v29 = vmax.f32 %v2767_v47, 0.0 }
 0x43c   :  { %v2801_v22 = vmax.f32 %v2769_v23, 0.0  ;;  %v2803_v61 = vmax.f32 %v2771_v59, 0.0  ;;  %v2716_v17 = vmul.f32 %v5466_v15, %v5291_v56  ;;  %v2732_v43 = vmul.f32 %v5466_v15, %v5315_v4 }
 0x43d   :  { %v2866_v21 = vadd.f32 %v2865_v51, %v2817_v5  ;;  %v2836_v52 = vadd.f32 %v2835_v32, %v2797_v60  ;;  %v2718_v0 = vmul.f32 %v5466_v15, %v5294_v53  ;;  %v2756_v9 = vadd.f32 %v5469_v26, %v2712_v20 }
 0x43e   :  { %v2758_v12 = vadd.f32 %v5469_v26, %v2714_v41  ;;  %v2720_v19 = vmul.f32 %v5466_v15, %v5297_v1  ;;  %v2772_v46 = vadd.f32 %v5469_v26, %v2728_v11  ;;  %v2774_v36 = vadd.f32 %v5469_v26, %v2730_v35 }
 0x43f   :  { %v2867_v55 = vadd.f32 %v2866_v21, %v2819_v50  ;;  %v2837_v13 = vadd.f32 %v2836_v52, %v2799_v29  ;;  %v2722_v4 = vmul.f32 %v5466_v15, %v5300_v6  ;;  %v2724_v2 = vmul.f32 %v5466_v15, %v5303_v40 }
 0x440   :  { %v2734_v53 = vmul.f32 %v5466_v15, %v5318_v7  ;;  %v2736_v34 = vmul.f32 %v5466_v15, %v5320_v25  ;;  %v2760_v1 = vadd.f32 %v5469_v26, %v2716_v17  ;;  %v2776_v28 = vadd.f32 %v5469_v26, %v2732_v43 }
 0x441   :  { %v2868_v63 = vrot.slane %v2867_v55, 4  ;;  %v2838_v56 = vadd.f32 %v2837_v13, %v2801_v22  ;;  %v2738_v49 = vmul.f32 %v5466_v15, %v5322_v44  ;;  %v2788_v37 = vmax.f32 %v2756_v9, 0.0 }
 0x442   :  { %v2790_v6 = vmax.f32 %v2758_v12, 0.0  ;;  %v2762_v40 = vadd.f32 %v5469_v26, %v2718_v0  ;;  %v2804_v24 = vmax.f32 %v2772_v46, 0.0  ;;  %v2806_v57 = vmax.f32 %v2774_v36, 0.0 }
 0x443   :  { %v2869_v30 = vadd.f32 %v2868_v63, %v2867_v55  ;;  %v2839_v39 = vadd.f32 %v2838_v56, %v2803_v61  ;;  %v2726_v27 = vmul.f32 %v5466_v15, %v5306_v14  ;;  %v2740_v25 = vmul.f32 %v5466_v15, %v5324_v42 }
 0x444   :  { %v2778_v16 = vadd.f32 %v5469_v26, %v2734_v53  ;;  %v2764_v18 = vadd.f32 %v5469_v26, %v2720_v19  ;;  %v2780_v44 = vadd.f32 %v5469_v26, %v2736_v34  ;;  %v2792_v54 = vmax.f32 %v2760_v1, 0.0 }
 0x445   :  { %v2870_v10 = vrot.slane %v2869_v30, 2  ;;  %v2840_v7 = vrot.slane %v2839_v39, 4  ;;  %v2808_v62 = vmax.f32 %v2776_v28, 0.0  ;;  %v2820_v8 = vadd.f32 %v2790_v6, %v2788_v37 }
 0x446   :  { %v2848_v3 = vadd.f32 %v2806_v57, %v2804_v24  ;;  %v2742_v5 = vmul.f32 %v5466_v15, %v5326_v31  ;;  %v2766_v14 = vadd.f32 %v5469_v26, %v2722_v4  ;;  %v2782_v51 = vadd.f32 %v5469_v26, %v2738_v49 }
 0x447   :  { %v2871_v58 = vadd.f32 %v2870_v10, %v2869_v30  ;;  %v2841_v48 = vadd.f32 %v2840_v7, %v2839_v39  ;;  %v2794_v42 = vmax.f32 %v2762_v40, 0.0  ;;  %v2810_v23 = vmax.f32 %v2778_v16, 0.0 }
 0x448   :  { %v2821_v38 = vadd.f32 %v2820_v8, %v2792_v54  ;;  %v2849_v45 = vadd.f32 %v2848_v3, %v2808_v62  ;;  %v2768_v50 = vadd.f32 %v5469_v26, %v2724_v2  ;;  %v2784_v21 = vadd.f32 %v5469_v26, %v2740_v25 }
 0x449   :  { %v2872_v33 = vrot.slane %v2871_v58, 1  ;;  %v2842_v47 = vrot.slane %v2841_v48, 2  ;;  %v2796_v59 = vmax.f32 %v2764_v18, 0.0  ;;  %v2812_v60 = vmax.f32 %v2780_v44, 0.0  ;;  %v3266_v18 = vld [vmem:[%s5544_s8] ss:$0 sm:$0xff] }
 0x44a   :  { %v2822_v41 = vadd.f32 %v2821_v38, %v2794_v42  ;;  %v2850_v55 = vadd.f32 %v2849_v45, %v2810_v23  ;;  %v2770_v31 = vadd.f32 %v5469_v26, %v2726_v27  ;;  %v2786_v15 = vadd.f32 %v5469_v26, %v2742_v5 }
 0x44b   :  { %v2843_v32 = vadd.f32 %v2842_v47, %v2841_v48  ;;  %v2873_v20 = vadd.f32 %v2872_v33, %v2871_v58  ;;  %v2798_v11 = vmax.f32 %v2766_v14, 0.0  ;;  %v2814_v29 = vmax.f32 %v2782_v51, 0.0 }
 0x44c   :  { %v2823_v22 = vadd.f32 %v2822_v41, %v2796_v59  ;;  %v2851_v52 = vadd.f32 %v2850_v55, %v2812_v60  ;;  %v2800_v63 = vmax.f32 %v2768_v50, 0.0  ;;  %v2816_v61 = vmax.f32 %v2784_v21, 0.0 }
 0x44d   :  { %v2844_v35 = vrot.slane %v2843_v32, 1  ;;  %v2875_v43 = vmul.f32 0.015625, %v2873_v20  ;;  %v2802_v9 = vmax.f32 %v2770_v31, 0.0  ;;  %v2818_v30 = vmax.f32 %v2786_v15, 0.0 }
 0x44e   :  { %v2824_v13 = vadd.f32 %v2823_v22, %v2798_v11  ;;  %v2852_v0 = vadd.f32 %v2851_v52, %v2814_v29 }
 0x44f   :  { %v2845_v17 = vadd.f32 %v2844_v35, %v2843_v32 }
 0x450   :  { %v2825_v19 = vadd.f32 %v2824_v13, %v2800_v63  ;;  %v2853_v46 = vadd.f32 %v2852_v0, %v2816_v61 }
 0x451   :  { %v2847_v12 = vmul.f32 0.015625, %v2845_v17 }
 0x452   :  { %v2826_v26 = vadd.f32 %v2825_v19, %v2802_v9  ;;  %v2854_v56 = vadd.f32 %v2853_v46, %v2818_v30 }
 0x453   :  { %v2878_v36 = vsel %vm2876_vm5, %v2847_v12, %v2875_v43 }
 0x454   :  { %v2880_v4 = vpack.c.bf16 %v2878_v36, %v2878_v36  ;;  %v2827_v2 = vrot.slane %v2826_v26, 4  ;;  %v2855_v53 = vrot.slane %v2854_v56, 4 }
 0x456   :  { %3048 = vmatprep.mubr.bf16.mxu0 %v2880_v4  ;;  %v2828_v10 = vadd.f32 %v2827_v2, %v2826_v26  ;;  %v2856_v34 = vadd.f32 %v2855_v53, %v2854_v56 }
 0x458   :  { %v2829_v1 = vrot.slane %v2828_v10, 2  ;;  %v2857_v28 = vrot.slane %v2856_v34, 2 }
 0x45a   :  { %v2830_v39 = vadd.f32 %v2829_v1, %v2828_v10  ;;  %v2858_v49 = vadd.f32 %v2857_v28, %v2856_v34 }
 0x45c   :  { %v2831_v37 = vrot.slane %v2830_v39, 1  ;;  %v2859_v6 = vrot.slane %v2858_v49, 1 }
 0x45e   :  { %v2832_v58 = vadd.f32 %v2831_v37, %v2830_v39  ;;  %v2860_v40 = vadd.f32 %v2859_v6, %v2858_v49 }
 0x460   :  { %v2846_v24 = vmul.f32 0.015625, %v2832_v58  ;;  %v2874_v57 = vmul.f32 0.015625, %v2860_v40 }
 0x462   :  { %v2877_v7 = vsel %vm2876_vm5, %v2846_v24, %v2874_v57 }
 0x463   :  { %v2879_v27 = vpack.c.bf16 %v2877_v7, %v2877_v7 }
 0x465   :  { %3049 = vmatmul.mubr.bf16.vlgmr.msra.gmra.mrb[32].mxu0 %v2879_v27 }
 0x538   :  { %v3310_v25 = vpop.f32.mrb[32].mxu0 }
 0x539   :  { %v3311_v16 = vpop.f32.mrb[33].mxu0 }
 0x53a   :  { %v3312_v44 = vadd.f32 %v3311_v16, %v3310_v25  ;;  %v3313_v54 = vpop.f32.mrb[34].mxu0 }
 0x53b   :  { %v3314_v62 = vpop.f32.mrb[35].mxu0 }
 0x53c   :  { %v3051_v48 = vadd.f32 %v3312_v44, %v3266_v18 }
 0x53e   :  { %3056 = vst [vmem:[#allocation11] sm:$0x3] %v3051_v48 }
 0x53f   :  { %3536 = shalt.err (!%p3533_p1)
}
 0x540   :  { %s3537_s10 = scalar_lea.hbm %s5545_s9, 32 }
 0x541   :  { %p3538_p2 = scmp.ne.s32.totalorder %s5545_s9, %s3537_s10  ;;  %p3541_p3 = scmp.lt.u32.totalorder %s3537_s10, %s5545_s9 }
 0x543   :  { %p3543_p4 = pnand %p3541_p3, %p3538_p2 }
 0x545   :  { %3546 = shalt.err (!%p3543_p4)
}
 0x546   :  { %3066 = dma.vmem_to_hbm [thread:$0]  %s3064_s30, 32, %s5545_s9, [#allocation7]  }
 0x547   :  { %3555 = dma.done.wait [#allocation7], 32  }
 0x548   :  { %3556 = vsyncadd [#allocation7], 4294967264 }
 0x549   :  { %3070 = vsyncpa [#allocation6], 1 }
 0x54a   :  { %3071 = vsyncpa [#allocation9], 1 }
 0x54b   :  { %3072 = vsyncpa [#allocation7], 1 }

</bundles_post_ra>
